<compile_context>
chip_gen: v6e
topology: v6e:2x2x1
jax: 0.10.0
libtpu: 0.0.40
codegen_flags: <defaults>
</compile_context>

<pallas_src>
import math
import functools

import jax
import jax.numpy as jnp
import numpy as np
from jax.experimental import pallas as pl
from jax.experimental.pallas import tpu as pltpu


# ----------------------------- kernel helpers ------------------------------

def _layer_norm(x, gamma, beta, eps=1e-5):
    mu = jnp.mean(x, axis=-1, keepdims=True)
    xc = x - mu
    var = jnp.mean(xc * xc, axis=-1, keepdims=True)
    return xc * jax.lax.rsqrt(var + eps) * gamma + beta


def _mha(q_in, k_in, v_in, params, num_heads, bt, lq, lk):
    """Multi-head attention over a batch tile of `bt` items at once.

    q_in: (bt*lq, D) fp32 rows, k_in / v_in: (bt*lk, D) fp32 rows.
    params = (wq, bq, wk, bk, wv, bv, wo, bo). Weight matrices are bf16 MXU
    operands; wq/bq already carry the 1/sqrt(head_dim) scale; wo is pre-split
    per head as (H, Dh, D). Scores, softmax and accumulation stay fp32.
    """
    wq, bq, wk, bk, wv, bv, wo, bo = params
    d = q_in.shape[-1]
    dh = d // num_heads
    cd = wq.dtype  # bf16 MXU operand dtype

    # Full-width QKV projections on sublane-dense (rows, D) slabs.
    q = jnp.dot(q_in.astype(cd), wq, preferred_element_type=jnp.float32) + bq
    k = jnp.dot(k_in.astype(cd), wk, preferred_element_type=jnp.float32) + bk
    v = jnp.dot(v_in.astype(cd), wv, preferred_element_type=jnp.float32) + bv

    # concat_h(o_h) @ Wo == sum_h o_h @ Wo[h] -> accumulate, no concat copy.
    out = jnp.zeros((bt * lq, d), jnp.float32) + bo
    for h in range(num_heads):  # static unroll; num_heads is small
        sl = slice(h * dh, (h + 1) * dh)
        qh = q[:, sl].reshape(bt, lq, dh).astype(cd)
        kh = k[:, sl].reshape(bt, lk, dh).astype(cd)
        vh = v[:, sl].reshape(bt, lk, dh).astype(cd)
        # Batched over the batch tile; contraction over the head dim
        # (no explicit kh.T).
        s = jnp.einsum("bqd,bkd->bqk", qh, kh,
                       preferred_element_type=jnp.float32)
        s = s - jnp.max(s, axis=-1, keepdims=True)
        p = jnp.exp(s)
        p = p / jnp.sum(p, axis=-1, keepdims=True)
        o = jnp.einsum("bqk,bkd->bqd", p.astype(cd), vh,
                       preferred_element_type=jnp.float32)
        out = out + jnp.dot(o.reshape(bt * lq, dh).astype(cd), wo[h],
                            preferred_element_type=jnp.float32)
    return out


# --------------------------------- kernel ----------------------------------

def decoder_layer_kernel(
    # per-batch-tile data (block = (bt, L, D))
    tgt_ref, mem_ref, qpos_ref, pos_ref,
    # self-attn params
    sa_wq, sa_bq, sa_wk, sa_bk, sa_wv, sa_bv, sa_wo, sa_bo, ln1_g, ln1_b,
    # cross-attn params
    ca_wq, ca_bq, ca_wk, ca_bk, ca_wv, ca_bv, ca_wo, ca_bo, ln2_g, ln2_b,
    # ffn params
    ff_w1, ff_b1, ff_w2, ff_b2, ln3_g, ln3_b,
    # output
    out_ref,
    *, num_heads,
):
    bt, lq, d = tgt_ref.shape
    lk = mem_ref.shape[1]

    # Flatten (bt, L, D) -> (bt*L, D): sublane-dense rows for QKV/FFN/LN.
    # (lq/lk are multiples of 8 here, so these reshapes are layout-compatible.)
    tgt = tgt_ref[...].reshape(bt * lq, d).astype(jnp.float32)
    mem = mem_ref[...].reshape(bt * lk, d).astype(jnp.float32)
    qpos = qpos_ref[...].reshape(bt * lq, d).astype(jnp.float32)
    pos = pos_ref[...].reshape(bt * lk, d).astype(jnp.float32)

    # Hoist all parameter loads once.
    sa_p = tuple(r[...] for r in (sa_wq, sa_bq, sa_wk, sa_bk,
                                  sa_wv, sa_bv, sa_wo, sa_bo))
    ca_p = tuple(r[...] for r in (ca_wq, ca_bq, ca_wk, ca_bk,
                                  ca_wv, ca_bv, ca_wo, ca_bo))
    g1, be1 = ln1_g[...], ln1_b[...]
    g2, be2 = ln2_g[...], ln2_b[...]
    g3, be3 = ln3_g[...], ln3_b[...]
    w1, fb1 = ff_w1[...], ff_b1[...]
    w2, fb2 = ff_w2[...], ff_b2[...]
    cd = w1.dtype  # bf16 MXU operand dtype

    # ---- self attention: q = k = tgt + query_pos, v = tgt ----
    q1 = tgt + qpos
    x = _layer_norm(tgt + _mha(q1, q1, tgt, sa_p, num_heads, bt, lq, lq),
                    g1, be1)

    # ---- cross attention: q = x + query_pos, k = memory + pos, v = memory ----
    x = _layer_norm(
        x + _mha(x + qpos, mem + pos, mem, ca_p, num_heads, bt, lq, lk),
        g2, be2)

    # ---- FFN (relu); dropout is identity in eval mode ----
    h = jnp.maximum(
        jnp.dot(x.astype(cd), w1, preferred_element_type=jnp.float32) + fb1,
        0.0)
    y = jnp.dot(h.astype(cd), w2, preferred_element_type=jnp.float32) + fb2
    x = _layer_norm(x + y, g3, be3)

    out_ref[...] = x.reshape(bt, lq, d).astype(out_ref.dtype)


# -------------------------------- wrapper ----------------------------------

_PARAM_ORDER = (
    "sa_wq", "sa_bq", "sa_wk", "sa_bk", "sa_wv", "sa_bv", "sa_wo", "sa_bo",
    "ln1_g", "ln1_b",
    "ca_wq", "ca_bq", "ca_wk", "ca_bk", "ca_wv", "ca_bv", "ca_wo", "ca_bo",
    "ln2_g", "ln2_b",
    "ff_w1", "ff_b1", "ff_w2", "ff_b2", "ln3_g", "ln3_b",
)


def _prep_params(params, num_heads, mxu_dtype=jnp.bfloat16):
    """One-time parameter transform for the kernel.

    * folds the 1/sqrt(head_dim) attention scale into wq/bq,
    * casts matmul weights to bf16 (MXU operands; accumulation stays fp32),
    * pre-splits the attention output projection per head (D, D) -> (H, Dh, D)
      so the kernel accumulates head outputs instead of concatenating them.
    Biases / LayerNorm params stay fp32 (elementwise math stays fp32).
    """
    d_model = params["sa_wq"].shape[0]
    dh = d_model // num_heads
    scale = 1.0 / math.sqrt(dh)
    out = {}
    for p in ("sa", "ca"):
        out[f"{p}_wq"] = (params[f"{p}_wq"] * scale).astype(mxu_dtype)
        out[f"{p}_bq"] = params[f"{p}_bq"] * scale
        out[f"{p}_wk"] = params[f"{p}_wk"].astype(mxu_dtype)
        out[f"{p}_bk"] = params[f"{p}_bk"]
        out[f"{p}_wv"] = params[f"{p}_wv"].astype(mxu_dtype)
        out[f"{p}_bv"] = params[f"{p}_bv"]
        out[f"{p}_wo"] = params[f"{p}_wo"].reshape(
            num_heads, dh, d_model).astype(mxu_dtype)
        out[f"{p}_bo"] = params[f"{p}_bo"]
    for i in (1, 2, 3):
        out[f"ln{i}_g"] = params[f"ln{i}_g"]
        out[f"ln{i}_b"] = params[f"ln{i}_b"]
    out["ff_w1"] = params["ff_w1"].astype(mxu_dtype)
    out["ff_b1"] = params["ff_b1"]
    out["ff_w2"] = params["ff_w2"].astype(mxu_dtype)
    out["ff_b2"] = params["ff_b2"]
    return out


def detr_decoder_layer(tgt, memory, query_pos, pos, params, num_heads,
                       batch_tile=None):
    """tgt/query_pos: (Lq, B, D); memory/pos: (Lk, B, D). Returns (Lq, B, D)."""
    Lq, B, D = tgt.shape
    Lk = memory.shape[0]
    bt = B if batch_tile is None else batch_tile
    assert B % bt == 0, "batch_tile must divide the batch size"

    # Seq-first (PyTorch nn.MultiheadAttention layout) -> batch-major slabs.
    # TODO(synk): at production scale keep activations batch-major upstream so
    #             these HBM relayout passes are not needed.
    tgt_b = jnp.transpose(tgt, (1, 0, 2))
    mem_b = jnp.transpose(memory, (1, 0, 2))
    qpos_b = jnp.transpose(query_pos, (1, 0, 2))
    pos_b = jnp.transpose(pos, (1, 0, 2))

    prepped = _prep_params(params, num_heads)
    param_list = [prepped[k] for k in _PARAM_ORDER]

    def const_spec(shape):
        nd = len(shape)
        return pl.BlockSpec(shape, lambda i, _nd=nd: (0,) * _nd)

    data_spec_q = pl.BlockSpec((bt, Lq, D), lambda i: (i, 0, 0))
    data_spec_k = pl.BlockSpec((bt, Lk, D), lambda i: (i, 0, 0))
    param_specs = [const_spec(p.shape) for p in param_list]

    out_b = pl.pallas_call(
        functools.partial(decoder_layer_kernel, num_heads=num_heads),
        out_shape=jax.ShapeDtypeStruct((B, Lq, D), tgt.dtype),
        grid=(B // bt,),
        in_specs=[data_spec_q, data_spec_k, data_spec_q, data_spec_k]
                 + param_specs,
        out_specs=pl.BlockSpec((bt, Lq, D), lambda i: (i, 0, 0)),
        compiler_params=pltpu.CompilerParams(
            dimension_semantics=("parallel",),
            vmem_limit_bytes=32 * 1024 * 1024),
    )(tgt_b, mem_b, qpos_b, pos_b, *param_list)

    # (B, Lq, D) -> (Lq, B, D)
    return jnp.transpose(out_b, (1, 0, 2))


# --------------------------- pure-JAX reference ----------------------------

def _ref_mha(q_in, k_in, v_in, wq, bq, wk, bk, wv, bv, wo, bo, H):
    Lq, D = q_in.shape
    Dh = D // H
    q = q_in @ wq + bq
    k = k_in @ wk + bk
    v = v_in @ wv + bv
    q = q.reshape(Lq, H, Dh).transpose(1, 0, 2) / math.sqrt(Dh)
    k = k.reshape(-1, H, Dh).transpose(1, 0, 2)
    v = v.reshape(-1, H, Dh).transpose(1, 0, 2)
    s = jnp.einsum("hqd,hkd->hqk", q, k)
    p = jax.nn.softmax(s, axis=-1)
    o = jnp.einsum("hqk,hkd->hqd", p, v).transpose(1, 0, 2).reshape(Lq, D)
    return o @ wo + bo


def _ref_ln(x, g, b, eps=1e-5):
    mu = jnp.mean(x, -1, keepdims=True)
    var = jnp.mean((x - mu) ** 2, -1, keepdims=True)
    return (x - mu) / jnp.sqrt(var + eps) * g + b


def reference_decoder_layer(tgt, memory, query_pos, pos, p, H):
    def one(t, m, qp, ps):
        q1 = t + qp
        t2 = _ref_mha(q1, q1, t, p["sa_wq"], p["sa_bq"], p["sa_wk"], p["sa_bk"],
                      p["sa_wv"], p["sa_bv"], p["sa_wo"], p["sa_bo"], H)
        t = _ref_ln(t + t2, p["ln1_g"], p["ln1_b"])
        q2 = t + qp
        k2 = m + ps
        t2 = _ref_mha(q2, k2, m, p["ca_wq"], p["ca_bq"], p["ca_wk"], p["ca_bk"],
                      p["ca_wv"], p["ca_bv"], p["ca_wo"], p["ca_bo"], H)
        t = _ref_ln(t + t2, p["ln2_g"], p["ln2_b"])
        h = jnp.maximum(t @ p["ff_w1"] + p["ff_b1"], 0.0)
        t2 = h @ p["ff_w2"] + p["ff_b2"]
        return _ref_ln(t + t2, p["ln3_g"], p["ln3_b"])

    # vmap over batch axis (axis 1 of (L, B, D))
    return jax.vmap(one, in_axes=(1, 1, 1, 1), out_axes=1)(
        tgt, memory, query_pos, pos)


# ---------------------------------- main -----------------------------------

def _make_params(key, d_model, d_ff):
    keys = jax.random.split(key, 32)
    it = iter(keys)

    def w(shape, scale):
        return (scale * jax.random.normal(next(it), shape)).astype(jnp.float32)

    def wmat(shape, scale):
        # Weight matrices are stored bf16-representable (as a bf16 checkpoint
        # would be); the fp32 reference and the bf16-fed kernel then share the
        # exact same weight values.
        return w(shape, scale).astype(jnp.bfloat16).astype(jnp.float32)

    s_attn = 1.0 / math.sqrt(d_model)
    s_ff1 = 1.0 / math.sqrt(d_model)
    s_ff2 = 1.0 / math.sqrt(d_ff)
    params = {}
    for prefix in ("sa", "ca"):
        for name in ("wq", "wk", "wv", "wo"):
            params[f"{prefix}_{name}"] = wmat((d_model, d_model), s_attn)
        for name in ("bq", "bk", "bv", "bo"):
            params[f"{prefix}_{name}"] = w((1, d_model), 0.02)
    for i in (1, 2, 3):
        params[f"ln{i}_g"] = jnp.ones((1, d_model), jnp.float32)
        params[f"ln{i}_b"] = jnp.zeros((1, d_model), jnp.float32)
    params["ff_w1"] = wmat((d_model, d_ff), s_ff1)
    params["ff_b1"] = w((1, d_ff), 0.02)
    params["ff_w2"] = wmat((d_ff, d_model), s_ff2)
    params["ff_b2"] = w((1, d_model), 0.02)
    return params


if __name__ == "__main__":
    d_model = 32
    num_heads = 4
    mlp_ratio = 4.0
    d_ff = int(d_model * mlp_ratio)
    Lq = 8      # number of object queries
    Lk = 16     # flattened memory (H*W) length
    B = 2

    key = jax.random.PRNGKey(0)
    k_tgt, k_mem, k_qp, k_pos, k_par = jax.random.split(key, 5)

    tgt = jax.random.normal(k_tgt, (Lq, B, d_model), jnp.float32)
    memory = jax.random.normal(k_mem, (Lk, B, d_model), jnp.float32)
    query_pos = jax.random.normal(k_qp, (Lq, B, d_model), jnp.float32)
    pos = jax.random.normal(k_pos, (Lk, B, d_model), jnp.float32)

    params = _make_params(k_par, d_model, d_ff)

    out = detr_decoder_layer(tgt, memory, query_pos, pos, params, num_heads)
    out = jax.block_until_ready(out)

    ref = reference_decoder_layer(tgt, memory, query_pos, pos, params,
                                  num_heads)
    # Tolerance accounts for bf16 MXU operands with fp32 accumulation in the
    # kernel vs. the all-fp32 reference.
    np.testing.assert_allclose(np.asarray(out), np.asarray(ref),
                               rtol=2e-2, atol=2e-2)
    assert out.shape == (Lq, B, d_model)
    print("KERNEL_OK")
</pallas_src>

<mosaic_0001>
module attributes {stable_mosaic.version = 11 : i64} {
  func.func @decoder_layer_kernel(%arg0: i32, %arg1: memref<2x8x32xf32, #tpu.memory_space<vmem>>, %arg2: memref<2x16x32xf32, #tpu.memory_space<vmem>>, %arg3: memref<2x8x32xf32, #tpu.memory_space<vmem>>, %arg4: memref<2x16x32xf32, #tpu.memory_space<vmem>>, %arg5: memref<32x32xbf16, #tpu.memory_space<vmem>>, %arg6: memref<1x32xf32, #tpu.memory_space<vmem>>, %arg7: memref<32x32xbf16, #tpu.memory_space<vmem>>, %arg8: memref<1x32xf32, #tpu.memory_space<vmem>>, %arg9: memref<32x32xbf16, #tpu.memory_space<vmem>>, %arg10: memref<1x32xf32, #tpu.memory_space<vmem>>, %arg11: memref<4x8x32xbf16, #tpu.memory_space<vmem>>, %arg12: memref<1x32xf32, #tpu.memory_space<vmem>>, %arg13: memref<1x32xf32, #tpu.memory_space<vmem>>, %arg14: memref<1x32xf32, #tpu.memory_space<vmem>>, %arg15: memref<32x32xbf16, #tpu.memory_space<vmem>>, %arg16: memref<1x32xf32, #tpu.memory_space<vmem>>, %arg17: memref<32x32xbf16, #tpu.memory_space<vmem>>, %arg18: memref<1x32xf32, #tpu.memory_space<vmem>>, %arg19: memref<32x32xbf16, #tpu.memory_space<vmem>>, %arg20: memref<1x32xf32, #tpu.memory_space<vmem>>, %arg21: memref<4x8x32xbf16, #tpu.memory_space<vmem>>, %arg22: memref<1x32xf32, #tpu.memory_space<vmem>>, %arg23: memref<1x32xf32, #tpu.memory_space<vmem>>, %arg24: memref<1x32xf32, #tpu.memory_space<vmem>>, %arg25: memref<32x128xbf16, #tpu.memory_space<vmem>>, %arg26: memref<1x128xf32, #tpu.memory_space<vmem>>, %arg27: memref<128x32xbf16, #tpu.memory_space<vmem>>, %arg28: memref<1x32xf32, #tpu.memory_space<vmem>>, %arg29: memref<1x32xf32, #tpu.memory_space<vmem>>, %arg30: memref<1x32xf32, #tpu.memory_space<vmem>>, %arg31: memref<2x8x32xf32, #tpu.memory_space<vmem>>) attributes {dimension_semantics = [#tpu.dimension_semantics<parallel>], iteration_bounds = array<i64: 1>, scalar_prefetch = 0 : i64, scratch_operands = 0 : i64, tpu.core_type = #tpu.core_type<tc>, window_params = [{transform_indices = @transform_0, window_bounds = array<i64: 2, 8, 32>}, {transform_indices = @transform_1, window_bounds = array<i64: 2, 16, 32>}, {transform_indices = @transform_2, window_bounds = array<i64: 2, 8, 32>}, {transform_indices = @transform_3, window_bounds = array<i64: 2, 16, 32>}, {pipeline_mode = #tpu.pipeline_mode<synchronous>, transform_indices = @transform_4, window_bounds = array<i64: 32, 32>}, {pipeline_mode = #tpu.pipeline_mode<synchronous>, transform_indices = @transform_5, window_bounds = array<i64: 1, 32>}, {pipeline_mode = #tpu.pipeline_mode<synchronous>, transform_indices = @transform_6, window_bounds = array<i64: 32, 32>}, {pipeline_mode = #tpu.pipeline_mode<synchronous>, transform_indices = @transform_7, window_bounds = array<i64: 1, 32>}, {pipeline_mode = #tpu.pipeline_mode<synchronous>, transform_indices = @transform_8, window_bounds = array<i64: 32, 32>}, {pipeline_mode = #tpu.pipeline_mode<synchronous>, transform_indices = @transform_9, window_bounds = array<i64: 1, 32>}, {pipeline_mode = #tpu.pipeline_mode<synchronous>, transform_indices = @transform_10, window_bounds = array<i64: 4, 8, 32>}, {pipeline_mode = #tpu.pipeline_mode<synchronous>, transform_indices = @transform_11, window_bounds = array<i64: 1, 32>}, {pipeline_mode = #tpu.pipeline_mode<synchronous>, transform_indices = @transform_12, window_bounds = array<i64: 1, 32>}, {pipeline_mode = #tpu.pipeline_mode<synchronous>, transform_indices = @transform_13, window_bounds = array<i64: 1, 32>}, {pipeline_mode = #tpu.pipeline_mode<synchronous>, transform_indices = @transform_14, window_bounds = array<i64: 32, 32>}, {pipeline_mode = #tpu.pipeline_mode<synchronous>, transform_indices = @transform_15, window_bounds = array<i64: 1, 32>}, {pipeline_mode = #tpu.pipeline_mode<synchronous>, transform_indices = @transform_16, window_bounds = array<i64: 32, 32>}, {pipeline_mode = #tpu.pipeline_mode<synchronous>, transform_indices = @transform_17, window_bounds = array<i64: 1, 32>}, {pipeline_mode = #tpu.pipeline_mode<synchronous>, transform_indices = @transform_18, window_bounds = array<i64: 32, 32>}, {pipeline_mode = #tpu.pipeline_mode<synchronous>, transform_indices = @transform_19, window_bounds = array<i64: 1, 32>}, {pipeline_mode = #tpu.pipeline_mode<synchronous>, transform_indices = @transform_20, window_bounds = array<i64: 4, 8, 32>}, {pipeline_mode = #tpu.pipeline_mode<synchronous>, transform_indices = @transform_21, window_bounds = array<i64: 1, 32>}, {pipeline_mode = #tpu.pipeline_mode<synchronous>, transform_indices = @transform_22, window_bounds = array<i64: 1, 32>}, {pipeline_mode = #tpu.pipeline_mode<synchronous>, transform_indices = @transform_23, window_bounds = array<i64: 1, 32>}, {pipeline_mode = #tpu.pipeline_mode<synchronous>, transform_indices = @transform_24, window_bounds = array<i64: 32, 128>}, {pipeline_mode = #tpu.pipeline_mode<synchronous>, transform_indices = @transform_25, window_bounds = array<i64: 1, 128>}, {pipeline_mode = #tpu.pipeline_mode<synchronous>, transform_indices = @transform_26, window_bounds = array<i64: 128, 32>}, {pipeline_mode = #tpu.pipeline_mode<synchronous>, transform_indices = @transform_27, window_bounds = array<i64: 1, 32>}, {pipeline_mode = #tpu.pipeline_mode<synchronous>, transform_indices = @transform_28, window_bounds = array<i64: 1, 32>}, {pipeline_mode = #tpu.pipeline_mode<synchronous>, transform_indices = @transform_29, window_bounds = array<i64: 1, 32>}, {transform_indices = @transform_30, window_bounds = array<i64: 2, 8, 32>}]} {
    %c0 = arith.constant 0 : index
    %c0_0 = arith.constant 0 : index
    %c0_1 = arith.constant 0 : index
    %0 = vector.load %arg1[%c0, %c0_0, %c0_1] : memref<2x8x32xf32, #tpu.memory_space<vmem>>, vector<2x8x32xf32>
    %1 = vector.shape_cast %0 : vector<2x8x32xf32> to vector<16x32xf32>
    %c0_2 = arith.constant 0 : index
    %c0_3 = arith.constant 0 : index
    %c0_4 = arith.constant 0 : index
    %2 = vector.load %arg2[%c0_2, %c0_3, %c0_4] : memref<2x16x32xf32, #tpu.memory_space<vmem>>, vector<2x16x32xf32>
    %3 = vector.shape_cast %2 : vector<2x16x32xf32> to vector<32x32xf32>
    %c0_5 = arith.constant 0 : index
    %c0_6 = arith.constant 0 : index
    %c0_7 = arith.constant 0 : index
    %4 = vector.load %arg3[%c0_5, %c0_6, %c0_7] : memref<2x8x32xf32, #tpu.memory_space<vmem>>, vector<2x8x32xf32>
    %5 = vector.shape_cast %4 : vector<2x8x32xf32> to vector<16x32xf32>
    %c0_8 = arith.constant 0 : index
    %c0_9 = arith.constant 0 : index
    %c0_10 = arith.constant 0 : index
    %6 = vector.load %arg4[%c0_8, %c0_9, %c0_10] : memref<2x16x32xf32, #tpu.memory_space<vmem>>, vector<2x16x32xf32>
    %7 = vector.shape_cast %6 : vector<2x16x32xf32> to vector<32x32xf32>
    %c0_11 = arith.constant 0 : index
    %c0_12 = arith.constant 0 : index
    %8 = vector.load %arg5[%c0_11, %c0_12] : memref<32x32xbf16, #tpu.memory_space<vmem>>, vector<32x32xbf16>
    %c0_13 = arith.constant 0 : index
    %c0_14 = arith.constant 0 : index
    %9 = vector.load %arg6[%c0_13, %c0_14] : memref<1x32xf32, #tpu.memory_space<vmem>>, vector<1x32xf32>
    %c0_15 = arith.constant 0 : index
    %c0_16 = arith.constant 0 : index
    %10 = vector.load %arg7[%c0_15, %c0_16] : memref<32x32xbf16, #tpu.memory_space<vmem>>, vector<32x32xbf16>
    %c0_17 = arith.constant 0 : index
    %c0_18 = arith.constant 0 : index
    %11 = vector.load %arg8[%c0_17, %c0_18] : memref<1x32xf32, #tpu.memory_space<vmem>>, vector<1x32xf32>
    %c0_19 = arith.constant 0 : index
    %c0_20 = arith.constant 0 : index
    %12 = vector.load %arg9[%c0_19, %c0_20] : memref<32x32xbf16, #tpu.memory_space<vmem>>, vector<32x32xbf16>
    %c0_21 = arith.constant 0 : index
    %c0_22 = arith.constant 0 : index
    %13 = vector.load %arg10[%c0_21, %c0_22] : memref<1x32xf32, #tpu.memory_space<vmem>>, vector<1x32xf32>
    %c0_23 = arith.constant 0 : index
    %c0_24 = arith.constant 0 : index
    %c0_25 = arith.constant 0 : index
    %14 = vector.load %arg11[%c0_23, %c0_24, %c0_25] : memref<4x8x32xbf16, #tpu.memory_space<vmem>>, vector<4x8x32xbf16>
    %c0_26 = arith.constant 0 : index
    %c0_27 = arith.constant 0 : index
    %15 = vector.load %arg12[%c0_26, %c0_27] : memref<1x32xf32, #tpu.memory_space<vmem>>, vector<1x32xf32>
    %c0_28 = arith.constant 0 : index
    %c0_29 = arith.constant 0 : index
    %16 = vector.load %arg15[%c0_28, %c0_29] : memref<32x32xbf16, #tpu.memory_space<vmem>>, vector<32x32xbf16>
    %c0_30 = arith.constant 0 : index
    %c0_31 = arith.constant 0 : index
    %17 = vector.load %arg16[%c0_30, %c0_31] : memref<1x32xf32, #tpu.memory_space<vmem>>, vector<1x32xf32>
    %c0_32 = arith.constant 0 : index
    %c0_33 = arith.constant 0 : index
    %18 = vector.load %arg17[%c0_32, %c0_33] : memref<32x32xbf16, #tpu.memory_space<vmem>>, vector<32x32xbf16>
    %c0_34 = arith.constant 0 : index
    %c0_35 = arith.constant 0 : index
    %19 = vector.load %arg18[%c0_34, %c0_35] : memref<1x32xf32, #tpu.memory_space<vmem>>, vector<1x32xf32>
    %c0_36 = arith.constant 0 : index
    %c0_37 = arith.constant 0 : index
    %20 = vector.load %arg19[%c0_36, %c0_37] : memref<32x32xbf16, #tpu.memory_space<vmem>>, vector<32x32xbf16>
    %c0_38 = arith.constant 0 : index
    %c0_39 = arith.constant 0 : index
    %21 = vector.load %arg20[%c0_38, %c0_39] : memref<1x32xf32, #tpu.memory_space<vmem>>, vector<1x32xf32>
    %c0_40 = arith.constant 0 : index
    %c0_41 = arith.constant 0 : index
    %c0_42 = arith.constant 0 : index
    %22 = vector.load %arg21[%c0_40, %c0_41, %c0_42] : memref<4x8x32xbf16, #tpu.memory_space<vmem>>, vector<4x8x32xbf16>
    %c0_43 = arith.constant 0 : index
    %c0_44 = arith.constant 0 : index
    %23 = vector.load %arg22[%c0_43, %c0_44] : memref<1x32xf32, #tpu.memory_space<vmem>>, vector<1x32xf32>
    %c0_45 = arith.constant 0 : index
    %c0_46 = arith.constant 0 : index
    %24 = vector.load %arg13[%c0_45, %c0_46] : memref<1x32xf32, #tpu.memory_space<vmem>>, vector<1x32xf32>
    %c0_47 = arith.constant 0 : index
    %c0_48 = arith.constant 0 : index
    %25 = vector.load %arg14[%c0_47, %c0_48] : memref<1x32xf32, #tpu.memory_space<vmem>>, vector<1x32xf32>
    %c0_49 = arith.constant 0 : index
    %c0_50 = arith.constant 0 : index
    %26 = vector.load %arg23[%c0_49, %c0_50] : memref<1x32xf32, #tpu.memory_space<vmem>>, vector<1x32xf32>
    %c0_51 = arith.constant 0 : index
    %c0_52 = arith.constant 0 : index
    %27 = vector.load %arg24[%c0_51, %c0_52] : memref<1x32xf32, #tpu.memory_space<vmem>>, vector<1x32xf32>
    %c0_53 = arith.constant 0 : index
    %c0_54 = arith.constant 0 : index
    %28 = vector.load %arg29[%c0_53, %c0_54] : memref<1x32xf32, #tpu.memory_space<vmem>>, vector<1x32xf32>
    %c0_55 = arith.constant 0 : index
    %c0_56 = arith.constant 0 : index
    %29 = vector.load %arg30[%c0_55, %c0_56] : memref<1x32xf32, #tpu.memory_space<vmem>>, vector<1x32xf32>
    %c0_57 = arith.constant 0 : index
    %c0_58 = arith.constant 0 : index
    %30 = vector.load %arg25[%c0_57, %c0_58] : memref<32x128xbf16, #tpu.memory_space<vmem>>, vector<32x128xbf16>
    %c0_59 = arith.constant 0 : index
    %c0_60 = arith.constant 0 : index
    %31 = vector.load %arg26[%c0_59, %c0_60] : memref<1x128xf32, #tpu.memory_space<vmem>>, vector<1x128xf32>
    %c0_61 = arith.constant 0 : index
    %c0_62 = arith.constant 0 : index
    %32 = vector.load %arg27[%c0_61, %c0_62] : memref<128x32xbf16, #tpu.memory_space<vmem>>, vector<128x32xbf16>
    %c0_63 = arith.constant 0 : index
    %c0_64 = arith.constant 0 : index
    %33 = vector.load %arg28[%c0_63, %c0_64] : memref<1x32xf32, #tpu.memory_space<vmem>>, vector<1x32xf32>
    %34 = arith.addf %1, %5 : vector<16x32xf32>
    %35 = arith.truncf %34 : vector<16x32xf32> to vector<16x32xbf16>
    %cst = arith.constant dense<0.000000e+00> : vector<16x32xf32>
    %36 = tpu.matmul %35, %8, %cst {dimension_numbers = #tpu.dot_dimension_numbers<[1], [0], [0], [1], [0, 0, 1, 1], [], []>} : vector<16x32xbf16>, vector<32x32xbf16>, vector<16x32xf32> -> vector<16x32xf32>
    %37 = vector.broadcast %9 : vector<1x32xf32> to vector<16x32xf32>
    %38 = arith.addf %36, %37 : vector<16x32xf32>
    %39 = arith.truncf %34 : vector<16x32xf32> to vector<16x32xbf16>
    %cst_65 = arith.constant dense<0.000000e+00> : vector<16x32xf32>
    %40 = tpu.matmul %39, %10, %cst_65 {dimension_numbers = #tpu.dot_dimension_numbers<[1], [0], [0], [1], [0, 0, 1, 1], [], []>} : vector<16x32xbf16>, vector<32x32xbf16>, vector<16x32xf32> -> vector<16x32xf32>
    %41 = vector.broadcast %11 : vector<1x32xf32> to vector<16x32xf32>
    %42 = arith.addf %40, %41 : vector<16x32xf32>
    %43 = arith.truncf %1 : vector<16x32xf32> to vector<16x32xbf16>
    %cst_66 = arith.constant dense<0.000000e+00> : vector<16x32xf32>
    %44 = tpu.matmul %43, %12, %cst_66 {dimension_numbers = #tpu.dot_dimension_numbers<[1], [0], [0], [1], [0, 0, 1, 1], [], []>} : vector<16x32xbf16>, vector<32x32xbf16>, vector<16x32xf32> -> vector<16x32xf32>
    %45 = vector.broadcast %13 : vector<1x32xf32> to vector<16x32xf32>
    %46 = arith.addf %44, %45 : vector<16x32xf32>
    %cst_67 = arith.constant 0.000000e+00 : f32
    %47 = vector.broadcast %cst_67 : f32 to vector<16x32xf32>
    %48 = vector.broadcast %15 : vector<1x32xf32> to vector<16x32xf32>
    %49 = arith.addf %47, %48 : vector<16x32xf32>
    %50 = vector.extract_strided_slice %38 {offsets = [0, 0], sizes = [16, 8], strides = [1, 1]} : vector<16x32xf32> to vector<16x8xf32>
    %51 = vector.shape_cast %50 : vector<16x8xf32> to vector<2x8x8xf32>
    %52 = arith.truncf %51 : vector<2x8x8xf32> to vector<2x8x8xbf16>
    %53 = vector.extract_strided_slice %42 {offsets = [0, 0], sizes = [16, 8], strides = [1, 1]} : vector<16x32xf32> to vector<16x8xf32>
    %54 = vector.shape_cast %53 : vector<16x8xf32> to vector<2x8x8xf32>
    %55 = arith.truncf %54 : vector<2x8x8xf32> to vector<2x8x8xbf16>
    %56 = vector.extract_strided_slice %46 {offsets = [0, 0], sizes = [16, 8], strides = [1, 1]} : vector<16x32xf32> to vector<16x8xf32>
    %57 = vector.shape_cast %56 : vector<16x8xf32> to vector<2x8x8xf32>
    %58 = arith.truncf %57 : vector<2x8x8xf32> to vector<2x8x8xbf16>
    "tpu.trace_start"() <{level = 10 : i32, message = "bqd,bkd->bqk"}> : () -> ()
    %cst_68 = arith.constant dense<0.000000e+00> : vector<2x8x8xf32>
    %59 = tpu.matmul %52, %55, %cst_68 {dimension_numbers = #tpu.dot_dimension_numbers<[2], [2], [1], [1], [0, 0, 0, 1, 1, 1], [0], [0]>} : vector<2x8x8xbf16>, vector<2x8x8xbf16>, vector<2x8x8xf32> -> vector<2x8x8xf32>
    "tpu.trace_stop"() : () -> ()
    %cst_69 = arith.constant dense<0xFF800000> : vector<2x8xf32>
    %60 = vector.multi_reduction <maximumf>, %59, %cst_69 [2] : vector<2x8x8xf32> to vector<2x8xf32>
    %61 = vector.shape_cast %60 : vector<2x8xf32> to vector<2x8x1xf32>
    %62 = vector.broadcast %61 : vector<2x8x1xf32> to vector<2x8x8xf32>
    %63 = arith.subf %59, %62 : vector<2x8x8xf32>
    %64 = math.exp %63 : vector<2x8x8xf32>
    %cst_70 = arith.constant dense<0.000000e+00> : vector<2x8xf32>
    %65 = vector.multi_reduction <add>, %64, %cst_70 [2] : vector<2x8x8xf32> to vector<2x8xf32>
    %66 = vector.shape_cast %65 : vector<2x8xf32> to vector<2x8x1xf32>
    %67 = vector.broadcast %66 : vector<2x8x1xf32> to vector<2x8x8xf32>
    %68 = arith.divf %64, %67 : vector<2x8x8xf32>
    %69 = arith.truncf %68 : vector<2x8x8xf32> to vector<2x8x8xbf16>
    "tpu.trace_start"() <{level = 10 : i32, message = "bqk,bkd->bqd"}> : () -> ()
    %cst_71 = arith.constant dense<0.000000e+00> : vector<2x8x8xf32>
    %70 = tpu.matmul %69, %58, %cst_71 {dimension_numbers = #tpu.dot_dimension_numbers<[2], [1], [1], [2], [0, 0, 0, 1, 1, 2], [0], [0]>} : vector<2x8x8xbf16>, vector<2x8x8xbf16>, vector<2x8x8xf32> -> vector<2x8x8xf32>
    "tpu.trace_stop"() : () -> ()
    %71 = vector.shape_cast %70 : vector<2x8x8xf32> to vector<16x8xf32>
    %72 = arith.truncf %71 : vector<16x8xf32> to vector<16x8xbf16>
    %73 = vector.extract_strided_slice %14 {offsets = [0, 0, 0], sizes = [1, 8, 32], strides = [1, 1, 1]} : vector<4x8x32xbf16> to vector<1x8x32xbf16>
    %74 = vector.shape_cast %73 : vector<1x8x32xbf16> to vector<8x32xbf16>
    %cst_72 = arith.constant dense<0.000000e+00> : vector<16x32xf32>
    %75 = tpu.matmul %72, %74, %cst_72 {dimension_numbers = #tpu.dot_dimension_numbers<[1], [0], [0], [1], [0, 0, 1, 1], [], []>} : vector<16x8xbf16>, vector<8x32xbf16>, vector<16x32xf32> -> vector<16x32xf32>
    %76 = arith.addf %49, %75 : vector<16x32xf32>
    %77 = vector.extract_strided_slice %38 {offsets = [0, 8], sizes = [16, 8], strides = [1, 1]} : vector<16x32xf32> to vector<16x8xf32>
    %78 = vector.shape_cast %77 : vector<16x8xf32> to vector<2x8x8xf32>
    %79 = arith.truncf %78 : vector<2x8x8xf32> to vector<2x8x8xbf16>
    %80 = vector.extract_strided_slice %42 {offsets = [0, 8], sizes = [16, 8], strides = [1, 1]} : vector<16x32xf32> to vector<16x8xf32>
    %81 = vector.shape_cast %80 : vector<16x8xf32> to vector<2x8x8xf32>
    %82 = arith.truncf %81 : vector<2x8x8xf32> to vector<2x8x8xbf16>
    %83 = vector.extract_strided_slice %46 {offsets = [0, 8], sizes = [16, 8], strides = [1, 1]} : vector<16x32xf32> to vector<16x8xf32>
    %84 = vector.shape_cast %83 : vector<16x8xf32> to vector<2x8x8xf32>
    %85 = arith.truncf %84 : vector<2x8x8xf32> to vector<2x8x8xbf16>
    "tpu.trace_start"() <{level = 10 : i32, message = "bqd,bkd->bqk"}> : () -> ()
    %cst_73 = arith.constant dense<0.000000e+00> : vector<2x8x8xf32>
    %86 = tpu.matmul %79, %82, %cst_73 {dimension_numbers = #tpu.dot_dimension_numbers<[2], [2], [1], [1], [0, 0, 0, 1, 1, 1], [0], [0]>} : vector<2x8x8xbf16>, vector<2x8x8xbf16>, vector<2x8x8xf32> -> vector<2x8x8xf32>
    "tpu.trace_stop"() : () -> ()
    %cst_74 = arith.constant dense<0xFF800000> : vector<2x8xf32>
    %87 = vector.multi_reduction <maximumf>, %86, %cst_74 [2] : vector<2x8x8xf32> to vector<2x8xf32>
    %88 = vector.shape_cast %87 : vector<2x8xf32> to vector<2x8x1xf32>
    %89 = vector.broadcast %88 : vector<2x8x1xf32> to vector<2x8x8xf32>
    %90 = arith.subf %86, %89 : vector<2x8x8xf32>
    %91 = math.exp %90 : vector<2x8x8xf32>
    %cst_75 = arith.constant dense<0.000000e+00> : vector<2x8xf32>
    %92 = vector.multi_reduction <add>, %91, %cst_75 [2] : vector<2x8x8xf32> to vector<2x8xf32>
    %93 = vector.shape_cast %92 : vector<2x8xf32> to vector<2x8x1xf32>
    %94 = vector.broadcast %93 : vector<2x8x1xf32> to vector<2x8x8xf32>
    %95 = arith.divf %91, %94 : vector<2x8x8xf32>
    %96 = arith.truncf %95 : vector<2x8x8xf32> to vector<2x8x8xbf16>
    "tpu.trace_start"() <{level = 10 : i32, message = "bqk,bkd->bqd"}> : () -> ()
    %cst_76 = arith.constant dense<0.000000e+00> : vector<2x8x8xf32>
    %97 = tpu.matmul %96, %85, %cst_76 {dimension_numbers = #tpu.dot_dimension_numbers<[2], [1], [1], [2], [0, 0, 0, 1, 1, 2], [0], [0]>} : vector<2x8x8xbf16>, vector<2x8x8xbf16>, vector<2x8x8xf32> -> vector<2x8x8xf32>
    "tpu.trace_stop"() : () -> ()
    %98 = vector.shape_cast %97 : vector<2x8x8xf32> to vector<16x8xf32>
    %99 = arith.truncf %98 : vector<16x8xf32> to vector<16x8xbf16>
    %100 = vector.extract_strided_slice %14 {offsets = [1, 0, 0], sizes = [1, 8, 32], strides = [1, 1, 1]} : vector<4x8x32xbf16> to vector<1x8x32xbf16>
    %101 = vector.shape_cast %100 : vector<1x8x32xbf16> to vector<8x32xbf16>
    %cst_77 = arith.constant dense<0.000000e+00> : vector<16x32xf32>
    %102 = tpu.matmul %99, %101, %cst_77 {dimension_numbers = #tpu.dot_dimension_numbers<[1], [0], [0], [1], [0, 0, 1, 1], [], []>} : vector<16x8xbf16>, vector<8x32xbf16>, vector<16x32xf32> -> vector<16x32xf32>
    %103 = arith.addf %76, %102 : vector<16x32xf32>
    %104 = vector.extract_strided_slice %38 {offsets = [0, 16], sizes = [16, 8], strides = [1, 1]} : vector<16x32xf32> to vector<16x8xf32>
    %105 = vector.shape_cast %104 : vector<16x8xf32> to vector<2x8x8xf32>
    %106 = arith.truncf %105 : vector<2x8x8xf32> to vector<2x8x8xbf16>
    %107 = vector.extract_strided_slice %42 {offsets = [0, 16], sizes = [16, 8], strides = [1, 1]} : vector<16x32xf32> to vector<16x8xf32>
    %108 = vector.shape_cast %107 : vector<16x8xf32> to vector<2x8x8xf32>
    %109 = arith.truncf %108 : vector<2x8x8xf32> to vector<2x8x8xbf16>
    %110 = vector.extract_strided_slice %46 {offsets = [0, 16], sizes = [16, 8], strides = [1, 1]} : vector<16x32xf32> to vector<16x8xf32>
    %111 = vector.shape_cast %110 : vector<16x8xf32> to vector<2x8x8xf32>
    %112 = arith.truncf %111 : vector<2x8x8xf32> to vector<2x8x8xbf16>
    "tpu.trace_start"() <{level = 10 : i32, message = "bqd,bkd->bqk"}> : () -> ()
    %cst_78 = arith.constant dense<0.000000e+00> : vector<2x8x8xf32>
    %113 = tpu.matmul %106, %109, %cst_78 {dimension_numbers = #tpu.dot_dimension_numbers<[2], [2], [1], [1], [0, 0, 0, 1, 1, 1], [0], [0]>} : vector<2x8x8xbf16>, vector<2x8x8xbf16>, vector<2x8x8xf32> -> vector<2x8x8xf32>
    "tpu.trace_stop"() : () -> ()
    %cst_79 = arith.constant dense<0xFF800000> : vector<2x8xf32>
    %114 = vector.multi_reduction <maximumf>, %113, %cst_79 [2] : vector<2x8x8xf32> to vector<2x8xf32>
    %115 = vector.shape_cast %114 : vector<2x8xf32> to vector<2x8x1xf32>
    %116 = vector.broadcast %115 : vector<2x8x1xf32> to vector<2x8x8xf32>
    %117 = arith.subf %113, %116 : vector<2x8x8xf32>
    %118 = math.exp %117 : vector<2x8x8xf32>
    %cst_80 = arith.constant dense<0.000000e+00> : vector<2x8xf32>
    %119 = vector.multi_reduction <add>, %118, %cst_80 [2] : vector<2x8x8xf32> to vector<2x8xf32>
    %120 = vector.shape_cast %119 : vector<2x8xf32> to vector<2x8x1xf32>
    %121 = vector.broadcast %120 : vector<2x8x1xf32> to vector<2x8x8xf32>
    %122 = arith.divf %118, %121 : vector<2x8x8xf32>
    %123 = arith.truncf %122 : vector<2x8x8xf32> to vector<2x8x8xbf16>
    "tpu.trace_start"() <{level = 10 : i32, message = "bqk,bkd->bqd"}> : () -> ()
    %cst_81 = arith.constant dense<0.000000e+00> : vector<2x8x8xf32>
    %124 = tpu.matmul %123, %112, %cst_81 {dimension_numbers = #tpu.dot_dimension_numbers<[2], [1], [1], [2], [0, 0, 0, 1, 1, 2], [0], [0]>} : vector<2x8x8xbf16>, vector<2x8x8xbf16>, vector<2x8x8xf32> -> vector<2x8x8xf32>
    "tpu.trace_stop"() : () -> ()
    %125 = vector.shape_cast %124 : vector<2x8x8xf32> to vector<16x8xf32>
    %126 = arith.truncf %125 : vector<16x8xf32> to vector<16x8xbf16>
    %127 = vector.extract_strided_slice %14 {offsets = [2, 0, 0], sizes = [1, 8, 32], strides = [1, 1, 1]} : vector<4x8x32xbf16> to vector<1x8x32xbf16>
    %128 = vector.shape_cast %127 : vector<1x8x32xbf16> to vector<8x32xbf16>
    %cst_82 = arith.constant dense<0.000000e+00> : vector<16x32xf32>
    %129 = tpu.matmul %126, %128, %cst_82 {dimension_numbers = #tpu.dot_dimension_numbers<[1], [0], [0], [1], [0, 0, 1, 1], [], []>} : vector<16x8xbf16>, vector<8x32xbf16>, vector<16x32xf32> -> vector<16x32xf32>
    %130 = arith.addf %103, %129 : vector<16x32xf32>
    %131 = vector.extract_strided_slice %38 {offsets = [0, 24], sizes = [16, 8], strides = [1, 1]} : vector<16x32xf32> to vector<16x8xf32>
    %132 = vector.shape_cast %131 : vector<16x8xf32> to vector<2x8x8xf32>
    %133 = arith.truncf %132 : vector<2x8x8xf32> to vector<2x8x8xbf16>
    %134 = vector.extract_strided_slice %42 {offsets = [0, 24], sizes = [16, 8], strides = [1, 1]} : vector<16x32xf32> to vector<16x8xf32>
    %135 = vector.shape_cast %134 : vector<16x8xf32> to vector<2x8x8xf32>
    %136 = arith.truncf %135 : vector<2x8x8xf32> to vector<2x8x8xbf16>
    %137 = vector.extract_strided_slice %46 {offsets = [0, 24], sizes = [16, 8], strides = [1, 1]} : vector<16x32xf32> to vector<16x8xf32>
    %138 = vector.shape_cast %137 : vector<16x8xf32> to vector<2x8x8xf32>
    %139 = arith.truncf %138 : vector<2x8x8xf32> to vector<2x8x8xbf16>
    "tpu.trace_start"() <{level = 10 : i32, message = "bqd,bkd->bqk"}> : () -> ()
    %cst_83 = arith.constant dense<0.000000e+00> : vector<2x8x8xf32>
    %140 = tpu.matmul %133, %136, %cst_83 {dimension_numbers = #tpu.dot_dimension_numbers<[2], [2], [1], [1], [0, 0, 0, 1, 1, 1], [0], [0]>} : vector<2x8x8xbf16>, vector<2x8x8xbf16>, vector<2x8x8xf32> -> vector<2x8x8xf32>
    "tpu.trace_stop"() : () -> ()
    %cst_84 = arith.constant dense<0xFF800000> : vector<2x8xf32>
    %141 = vector.multi_reduction <maximumf>, %140, %cst_84 [2] : vector<2x8x8xf32> to vector<2x8xf32>
    %142 = vector.shape_cast %141 : vector<2x8xf32> to vector<2x8x1xf32>
    %143 = vector.broadcast %142 : vector<2x8x1xf32> to vector<2x8x8xf32>
    %144 = arith.subf %140, %143 : vector<2x8x8xf32>
    %145 = math.exp %144 : vector<2x8x8xf32>
    %cst_85 = arith.constant dense<0.000000e+00> : vector<2x8xf32>
    %146 = vector.multi_reduction <add>, %145, %cst_85 [2] : vector<2x8x8xf32> to vector<2x8xf32>
    %147 = vector.shape_cast %146 : vector<2x8xf32> to vector<2x8x1xf32>
    %148 = vector.broadcast %147 : vector<2x8x1xf32> to vector<2x8x8xf32>
    %149 = arith.divf %145, %148 : vector<2x8x8xf32>
    %150 = arith.truncf %149 : vector<2x8x8xf32> to vector<2x8x8xbf16>
    "tpu.trace_start"() <{level = 10 : i32, message = "bqk,bkd->bqd"}> : () -> ()
    %cst_86 = arith.constant dense<0.000000e+00> : vector<2x8x8xf32>
    %151 = tpu.matmul %150, %139, %cst_86 {dimension_numbers = #tpu.dot_dimension_numbers<[2], [1], [1], [2], [0, 0, 0, 1, 1, 2], [0], [0]>} : vector<2x8x8xbf16>, vector<2x8x8xbf16>, vector<2x8x8xf32> -> vector<2x8x8xf32>
    "tpu.trace_stop"() : () -> ()
    %152 = vector.shape_cast %151 : vector<2x8x8xf32> to vector<16x8xf32>
    %153 = arith.truncf %152 : vector<16x8xf32> to vector<16x8xbf16>
    %154 = vector.extract_strided_slice %14 {offsets = [3, 0, 0], sizes = [1, 8, 32], strides = [1, 1, 1]} : vector<4x8x32xbf16> to vector<1x8x32xbf16>
    %155 = vector.shape_cast %154 : vector<1x8x32xbf16> to vector<8x32xbf16>
    %cst_87 = arith.constant dense<0.000000e+00> : vector<16x32xf32>
    %156 = tpu.matmul %153, %155, %cst_87 {dimension_numbers = #tpu.dot_dimension_numbers<[1], [0], [0], [1], [0, 0, 1, 1], [], []>} : vector<16x8xbf16>, vector<8x32xbf16>, vector<16x32xf32> -> vector<16x32xf32>
    %157 = arith.addf %130, %156 : vector<16x32xf32>
    %158 = arith.addf %1, %157 : vector<16x32xf32>
    %cst_88 = arith.constant dense<0.000000e+00> : vector<16xf32>
    %159 = vector.multi_reduction <add>, %158, %cst_88 [1] : vector<16x32xf32> to vector<16xf32>
    %160 = vector.shape_cast %159 : vector<16xf32> to vector<16x1xf32>
    %cst_89 = arith.constant 3.200000e+01 : f32
    %161 = vector.broadcast %cst_89 : f32 to vector<16x1xf32>
    %162 = arith.divf %160, %161 : vector<16x1xf32>
    %163 = vector.broadcast %162 : vector<16x1xf32> to vector<16x32xf32>
    %164 = arith.subf %158, %163 : vector<16x32xf32>
    %165 = arith.mulf %164, %164 : vector<16x32xf32>
    %cst_90 = arith.constant dense<0.000000e+00> : vector<16xf32>
    %166 = vector.multi_reduction <add>, %165, %cst_90 [1] : vector<16x32xf32> to vector<16xf32>
    %167 = vector.shape_cast %166 : vector<16xf32> to vector<16x1xf32>
    %cst_91 = arith.constant 3.200000e+01 : f32
    %168 = vector.broadcast %cst_91 : f32 to vector<16x1xf32>
    %169 = arith.divf %167, %168 : vector<16x1xf32>
    %cst_92 = arith.constant 9.99999974E-6 : f32
    %170 = vector.broadcast %cst_92 : f32 to vector<16x1xf32>
    %171 = arith.addf %169, %170 : vector<16x1xf32>
    %172 = math.rsqrt %171 : vector<16x1xf32>
    %173 = vector.broadcast %172 : vector<16x1xf32> to vector<16x32xf32>
    %174 = arith.mulf %164, %173 : vector<16x32xf32>
    %175 = vector.broadcast %24 : vector<1x32xf32> to vector<16x32xf32>
    %176 = arith.mulf %174, %175 : vector<16x32xf32>
    %177 = vector.broadcast %25 : vector<1x32xf32> to vector<16x32xf32>
    %178 = arith.addf %176, %177 : vector<16x32xf32>
    %179 = arith.addf %178, %5 : vector<16x32xf32>
    %180 = arith.addf %3, %7 : vector<32x32xf32>
    %181 = arith.truncf %179 : vector<16x32xf32> to vector<16x32xbf16>
    %cst_93 = arith.constant dense<0.000000e+00> : vector<16x32xf32>
    %182 = tpu.matmul %181, %16, %cst_93 {dimension_numbers = #tpu.dot_dimension_numbers<[1], [0], [0], [1], [0, 0, 1, 1], [], []>} : vector<16x32xbf16>, vector<32x32xbf16>, vector<16x32xf32> -> vector<16x32xf32>
    %183 = vector.broadcast %17 : vector<1x32xf32> to vector<16x32xf32>
    %184 = arith.addf %182, %183 : vector<16x32xf32>
    %185 = arith.truncf %180 : vector<32x32xf32> to vector<32x32xbf16>
    %cst_94 = arith.constant dense<0.000000e+00> : vector<32x32xf32>
    %186 = tpu.matmul %185, %18, %cst_94 {dimension_numbers = #tpu.dot_dimension_numbers<[1], [0], [0], [1], [0, 0, 1, 1], [], []>} : vector<32x32xbf16>, vector<32x32xbf16>, vector<32x32xf32> -> vector<32x32xf32>
    %187 = vector.broadcast %19 : vector<1x32xf32> to vector<32x32xf32>
    %188 = arith.addf %186, %187 : vector<32x32xf32>
    %189 = arith.truncf %3 : vector<32x32xf32> to vector<32x32xbf16>
    %cst_95 = arith.constant dense<0.000000e+00> : vector<32x32xf32>
    %190 = tpu.matmul %189, %20, %cst_95 {dimension_numbers = #tpu.dot_dimension_numbers<[1], [0], [0], [1], [0, 0, 1, 1], [], []>} : vector<32x32xbf16>, vector<32x32xbf16>, vector<32x32xf32> -> vector<32x32xf32>
    %191 = vector.broadcast %21 : vector<1x32xf32> to vector<32x32xf32>
    %192 = arith.addf %190, %191 : vector<32x32xf32>
    %cst_96 = arith.constant 0.000000e+00 : f32
    %193 = vector.broadcast %cst_96 : f32 to vector<16x32xf32>
    %194 = vector.broadcast %23 : vector<1x32xf32> to vector<16x32xf32>
    %195 = arith.addf %193, %194 : vector<16x32xf32>
    %196 = vector.extract_strided_slice %184 {offsets = [0, 0], sizes = [16, 8], strides = [1, 1]} : vector<16x32xf32> to vector<16x8xf32>
    %197 = vector.shape_cast %196 : vector<16x8xf32> to vector<2x8x8xf32>
    %198 = arith.truncf %197 : vector<2x8x8xf32> to vector<2x8x8xbf16>
    %199 = vector.extract_strided_slice %188 {offsets = [0, 0], sizes = [32, 8], strides = [1, 1]} : vector<32x32xf32> to vector<32x8xf32>
    %200 = vector.shape_cast %199 : vector<32x8xf32> to vector<2x16x8xf32>
    %201 = arith.truncf %200 : vector<2x16x8xf32> to vector<2x16x8xbf16>
    %202 = vector.extract_strided_slice %192 {offsets = [0, 0], sizes = [32, 8], strides = [1, 1]} : vector<32x32xf32> to vector<32x8xf32>
    %203 = vector.shape_cast %202 : vector<32x8xf32> to vector<2x16x8xf32>
    %204 = arith.truncf %203 : vector<2x16x8xf32> to vector<2x16x8xbf16>
    "tpu.trace_start"() <{level = 10 : i32, message = "bqd,bkd->bqk"}> : () -> ()
    %cst_97 = arith.constant dense<0.000000e+00> : vector<2x8x16xf32>
    %205 = tpu.matmul %198, %201, %cst_97 {dimension_numbers = #tpu.dot_dimension_numbers<[2], [2], [1], [1], [0, 0, 0, 1, 1, 1], [0], [0]>} : vector<2x8x8xbf16>, vector<2x16x8xbf16>, vector<2x8x16xf32> -> vector<2x8x16xf32>
    "tpu.trace_stop"() : () -> ()
    %cst_98 = arith.constant dense<0xFF800000> : vector<2x8xf32>
    %206 = vector.multi_reduction <maximumf>, %205, %cst_98 [2] : vector<2x8x16xf32> to vector<2x8xf32>
    %207 = vector.shape_cast %206 : vector<2x8xf32> to vector<2x8x1xf32>
    %208 = vector.broadcast %207 : vector<2x8x1xf32> to vector<2x8x16xf32>
    %209 = arith.subf %205, %208 : vector<2x8x16xf32>
    %210 = math.exp %209 : vector<2x8x16xf32>
    %cst_99 = arith.constant dense<0.000000e+00> : vector<2x8xf32>
    %211 = vector.multi_reduction <add>, %210, %cst_99 [2] : vector<2x8x16xf32> to vector<2x8xf32>
    %212 = vector.shape_cast %211 : vector<2x8xf32> to vector<2x8x1xf32>
    %213 = vector.broadcast %212 : vector<2x8x1xf32> to vector<2x8x16xf32>
    %214 = arith.divf %210, %213 : vector<2x8x16xf32>
    %215 = arith.truncf %214 : vector<2x8x16xf32> to vector<2x8x16xbf16>
    "tpu.trace_start"() <{level = 10 : i32, message = "bqk,bkd->bqd"}> : () -> ()
    %cst_100 = arith.constant dense<0.000000e+00> : vector<2x8x8xf32>
    %216 = tpu.matmul %215, %204, %cst_100 {dimension_numbers = #tpu.dot_dimension_numbers<[2], [1], [1], [2], [0, 0, 0, 1, 1, 2], [0], [0]>} : vector<2x8x16xbf16>, vector<2x16x8xbf16>, vector<2x8x8xf32> -> vector<2x8x8xf32>
    "tpu.trace_stop"() : () -> ()
    %217 = vector.shape_cast %216 : vector<2x8x8xf32> to vector<16x8xf32>
    %218 = arith.truncf %217 : vector<16x8xf32> to vector<16x8xbf16>
    %219 = vector.extract_strided_slice %22 {offsets = [0, 0, 0], sizes = [1, 8, 32], strides = [1, 1, 1]} : vector<4x8x32xbf16> to vector<1x8x32xbf16>
    %220 = vector.shape_cast %219 : vector<1x8x32xbf16> to vector<8x32xbf16>
    %cst_101 = arith.constant dense<0.000000e+00> : vector<16x32xf32>
    %221 = tpu.matmul %218, %220, %cst_101 {dimension_numbers = #tpu.dot_dimension_numbers<[1], [0], [0], [1], [0, 0, 1, 1], [], []>} : vector<16x8xbf16>, vector<8x32xbf16>, vector<16x32xf32> -> vector<16x32xf32>
    %222 = arith.addf %195, %221 : vector<16x32xf32>
    %223 = vector.extract_strided_slice %184 {offsets = [0, 8], sizes = [16, 8], strides = [1, 1]} : vector<16x32xf32> to vector<16x8xf32>
    %224 = vector.shape_cast %223 : vector<16x8xf32> to vector<2x8x8xf32>
    %225 = arith.truncf %224 : vector<2x8x8xf32> to vector<2x8x8xbf16>
    %226 = vector.extract_strided_slice %188 {offsets = [0, 8], sizes = [32, 8], strides = [1, 1]} : vector<32x32xf32> to vector<32x8xf32>
    %227 = vector.shape_cast %226 : vector<32x8xf32> to vector<2x16x8xf32>
    %228 = arith.truncf %227 : vector<2x16x8xf32> to vector<2x16x8xbf16>
    %229 = vector.extract_strided_slice %192 {offsets = [0, 8], sizes = [32, 8], strides = [1, 1]} : vector<32x32xf32> to vector<32x8xf32>
    %230 = vector.shape_cast %229 : vector<32x8xf32> to vector<2x16x8xf32>
    %231 = arith.truncf %230 : vector<2x16x8xf32> to vector<2x16x8xbf16>
    "tpu.trace_start"() <{level = 10 : i32, message = "bqd,bkd->bqk"}> : () -> ()
    %cst_102 = arith.constant dense<0.000000e+00> : vector<2x8x16xf32>
    %232 = tpu.matmul %225, %228, %cst_102 {dimension_numbers = #tpu.dot_dimension_numbers<[2], [2], [1], [1], [0, 0, 0, 1, 1, 1], [0], [0]>} : vector<2x8x8xbf16>, vector<2x16x8xbf16>, vector<2x8x16xf32> -> vector<2x8x16xf32>
    "tpu.trace_stop"() : () -> ()
    %cst_103 = arith.constant dense<0xFF800000> : vector<2x8xf32>
    %233 = vector.multi_reduction <maximumf>, %232, %cst_103 [2] : vector<2x8x16xf32> to vector<2x8xf32>
    %234 = vector.shape_cast %233 : vector<2x8xf32> to vector<2x8x1xf32>
    %235 = vector.broadcast %234 : vector<2x8x1xf32> to vector<2x8x16xf32>
    %236 = arith.subf %232, %235 : vector<2x8x16xf32>
    %237 = math.exp %236 : vector<2x8x16xf32>
    %cst_104 = arith.constant dense<0.000000e+00> : vector<2x8xf32>
    %238 = vector.multi_reduction <add>, %237, %cst_104 [2] : vector<2x8x16xf32> to vector<2x8xf32>
    %239 = vector.shape_cast %238 : vector<2x8xf32> to vector<2x8x1xf32>
    %240 = vector.broadcast %239 : vector<2x8x1xf32> to vector<2x8x16xf32>
    %241 = arith.divf %237, %240 : vector<2x8x16xf32>
    %242 = arith.truncf %241 : vector<2x8x16xf32> to vector<2x8x16xbf16>
    "tpu.trace_start"() <{level = 10 : i32, message = "bqk,bkd->bqd"}> : () -> ()
    %cst_105 = arith.constant dense<0.000000e+00> : vector<2x8x8xf32>
    %243 = tpu.matmul %242, %231, %cst_105 {dimension_numbers = #tpu.dot_dimension_numbers<[2], [1], [1], [2], [0, 0, 0, 1, 1, 2], [0], [0]>} : vector<2x8x16xbf16>, vector<2x16x8xbf16>, vector<2x8x8xf32> -> vector<2x8x8xf32>
    "tpu.trace_stop"() : () -> ()
    %244 = vector.shape_cast %243 : vector<2x8x8xf32> to vector<16x8xf32>
    %245 = arith.truncf %244 : vector<16x8xf32> to vector<16x8xbf16>
    %246 = vector.extract_strided_slice %22 {offsets = [1, 0, 0], sizes = [1, 8, 32], strides = [1, 1, 1]} : vector<4x8x32xbf16> to vector<1x8x32xbf16>
    %247 = vector.shape_cast %246 : vector<1x8x32xbf16> to vector<8x32xbf16>
    %cst_106 = arith.constant dense<0.000000e+00> : vector<16x32xf32>
    %248 = tpu.matmul %245, %247, %cst_106 {dimension_numbers = #tpu.dot_dimension_numbers<[1], [0], [0], [1], [0, 0, 1, 1], [], []>} : vector<16x8xbf16>, vector<8x32xbf16>, vector<16x32xf32> -> vector<16x32xf32>
    %249 = arith.addf %222, %248 : vector<16x32xf32>
    %250 = vector.extract_strided_slice %184 {offsets = [0, 16], sizes = [16, 8], strides = [1, 1]} : vector<16x32xf32> to vector<16x8xf32>
    %251 = vector.shape_cast %250 : vector<16x8xf32> to vector<2x8x8xf32>
    %252 = arith.truncf %251 : vector<2x8x8xf32> to vector<2x8x8xbf16>
    %253 = vector.extract_strided_slice %188 {offsets = [0, 16], sizes = [32, 8], strides = [1, 1]} : vector<32x32xf32> to vector<32x8xf32>
    %254 = vector.shape_cast %253 : vector<32x8xf32> to vector<2x16x8xf32>
    %255 = arith.truncf %254 : vector<2x16x8xf32> to vector<2x16x8xbf16>
    %256 = vector.extract_strided_slice %192 {offsets = [0, 16], sizes = [32, 8], strides = [1, 1]} : vector<32x32xf32> to vector<32x8xf32>
    %257 = vector.shape_cast %256 : vector<32x8xf32> to vector<2x16x8xf32>
    %258 = arith.truncf %257 : vector<2x16x8xf32> to vector<2x16x8xbf16>
    "tpu.trace_start"() <{level = 10 : i32, message = "bqd,bkd->bqk"}> : () -> ()
    %cst_107 = arith.constant dense<0.000000e+00> : vector<2x8x16xf32>
    %259 = tpu.matmul %252, %255, %cst_107 {dimension_numbers = #tpu.dot_dimension_numbers<[2], [2], [1], [1], [0, 0, 0, 1, 1, 1], [0], [0]>} : vector<2x8x8xbf16>, vector<2x16x8xbf16>, vector<2x8x16xf32> -> vector<2x8x16xf32>
    "tpu.trace_stop"() : () -> ()
    %cst_108 = arith.constant dense<0xFF800000> : vector<2x8xf32>
    %260 = vector.multi_reduction <maximumf>, %259, %cst_108 [2] : vector<2x8x16xf32> to vector<2x8xf32>
    %261 = vector.shape_cast %260 : vector<2x8xf32> to vector<2x8x1xf32>
    %262 = vector.broadcast %261 : vector<2x8x1xf32> to vector<2x8x16xf32>
    %263 = arith.subf %259, %262 : vector<2x8x16xf32>
    %264 = math.exp %263 : vector<2x8x16xf32>
    %cst_109 = arith.constant dense<0.000000e+00> : vector<2x8xf32>
    %265 = vector.multi_reduction <add>, %264, %cst_109 [2] : vector<2x8x16xf32> to vector<2x8xf32>
    %266 = vector.shape_cast %265 : vector<2x8xf32> to vector<2x8x1xf32>
    %267 = vector.broadcast %266 : vector<2x8x1xf32> to vector<2x8x16xf32>
    %268 = arith.divf %264, %267 : vector<2x8x16xf32>
    %269 = arith.truncf %268 : vector<2x8x16xf32> to vector<2x8x16xbf16>
    "tpu.trace_start"() <{level = 10 : i32, message = "bqk,bkd->bqd"}> : () -> ()
    %cst_110 = arith.constant dense<0.000000e+00> : vector<2x8x8xf32>
    %270 = tpu.matmul %269, %258, %cst_110 {dimension_numbers = #tpu.dot_dimension_numbers<[2], [1], [1], [2], [0, 0, 0, 1, 1, 2], [0], [0]>} : vector<2x8x16xbf16>, vector<2x16x8xbf16>, vector<2x8x8xf32> -> vector<2x8x8xf32>
    "tpu.trace_stop"() : () -> ()
    %271 = vector.shape_cast %270 : vector<2x8x8xf32> to vector<16x8xf32>
    %272 = arith.truncf %271 : vector<16x8xf32> to vector<16x8xbf16>
    %273 = vector.extract_strided_slice %22 {offsets = [2, 0, 0], sizes = [1, 8, 32], strides = [1, 1, 1]} : vector<4x8x32xbf16> to vector<1x8x32xbf16>
    %274 = vector.shape_cast %273 : vector<1x8x32xbf16> to vector<8x32xbf16>
    %cst_111 = arith.constant dense<0.000000e+00> : vector<16x32xf32>
    %275 = tpu.matmul %272, %274, %cst_111 {dimension_numbers = #tpu.dot_dimension_numbers<[1], [0], [0], [1], [0, 0, 1, 1], [], []>} : vector<16x8xbf16>, vector<8x32xbf16>, vector<16x32xf32> -> vector<16x32xf32>
    %276 = arith.addf %249, %275 : vector<16x32xf32>
    %277 = vector.extract_strided_slice %184 {offsets = [0, 24], sizes = [16, 8], strides = [1, 1]} : vector<16x32xf32> to vector<16x8xf32>
    %278 = vector.shape_cast %277 : vector<16x8xf32> to vector<2x8x8xf32>
    %279 = arith.truncf %278 : vector<2x8x8xf32> to vector<2x8x8xbf16>
    %280 = vector.extract_strided_slice %188 {offsets = [0, 24], sizes = [32, 8], strides = [1, 1]} : vector<32x32xf32> to vector<32x8xf32>
    %281 = vector.shape_cast %280 : vector<32x8xf32> to vector<2x16x8xf32>
    %282 = arith.truncf %281 : vector<2x16x8xf32> to vector<2x16x8xbf16>
    %283 = vector.extract_strided_slice %192 {offsets = [0, 24], sizes = [32, 8], strides = [1, 1]} : vector<32x32xf32> to vector<32x8xf32>
    %284 = vector.shape_cast %283 : vector<32x8xf32> to vector<2x16x8xf32>
    %285 = arith.truncf %284 : vector<2x16x8xf32> to vector<2x16x8xbf16>
    "tpu.trace_start"() <{level = 10 : i32, message = "bqd,bkd->bqk"}> : () -> ()
    %cst_112 = arith.constant dense<0.000000e+00> : vector<2x8x16xf32>
    %286 = tpu.matmul %279, %282, %cst_112 {dimension_numbers = #tpu.dot_dimension_numbers<[2], [2], [1], [1], [0, 0, 0, 1, 1, 1], [0], [0]>} : vector<2x8x8xbf16>, vector<2x16x8xbf16>, vector<2x8x16xf32> -> vector<2x8x16xf32>
    "tpu.trace_stop"() : () -> ()
    %cst_113 = arith.constant dense<0xFF800000> : vector<2x8xf32>
    %287 = vector.multi_reduction <maximumf>, %286, %cst_113 [2] : vector<2x8x16xf32> to vector<2x8xf32>
    %288 = vector.shape_cast %287 : vector<2x8xf32> to vector<2x8x1xf32>
    %289 = vector.broadcast %288 : vector<2x8x1xf32> to vector<2x8x16xf32>
    %290 = arith.subf %286, %289 : vector<2x8x16xf32>
    %291 = math.exp %290 : vector<2x8x16xf32>
    %cst_114 = arith.constant dense<0.000000e+00> : vector<2x8xf32>
    %292 = vector.multi_reduction <add>, %291, %cst_114 [2] : vector<2x8x16xf32> to vector<2x8xf32>
    %293 = vector.shape_cast %292 : vector<2x8xf32> to vector<2x8x1xf32>
    %294 = vector.broadcast %293 : vector<2x8x1xf32> to vector<2x8x16xf32>
    %295 = arith.divf %291, %294 : vector<2x8x16xf32>
    %296 = arith.truncf %295 : vector<2x8x16xf32> to vector<2x8x16xbf16>
    "tpu.trace_start"() <{level = 10 : i32, message = "bqk,bkd->bqd"}> : () -> ()
    %cst_115 = arith.constant dense<0.000000e+00> : vector<2x8x8xf32>
    %297 = tpu.matmul %296, %285, %cst_115 {dimension_numbers = #tpu.dot_dimension_numbers<[2], [1], [1], [2], [0, 0, 0, 1, 1, 2], [0], [0]>} : vector<2x8x16xbf16>, vector<2x16x8xbf16>, vector<2x8x8xf32> -> vector<2x8x8xf32>
    "tpu.trace_stop"() : () -> ()
    %298 = vector.shape_cast %297 : vector<2x8x8xf32> to vector<16x8xf32>
    %299 = arith.truncf %298 : vector<16x8xf32> to vector<16x8xbf16>
    %300 = vector.extract_strided_slice %22 {offsets = [3, 0, 0], sizes = [1, 8, 32], strides = [1, 1, 1]} : vector<4x8x32xbf16> to vector<1x8x32xbf16>
    %301 = vector.shape_cast %300 : vector<1x8x32xbf16> to vector<8x32xbf16>
    %cst_116 = arith.constant dense<0.000000e+00> : vector<16x32xf32>
    %302 = tpu.matmul %299, %301, %cst_116 {dimension_numbers = #tpu.dot_dimension_numbers<[1], [0], [0], [1], [0, 0, 1, 1], [], []>} : vector<16x8xbf16>, vector<8x32xbf16>, vector<16x32xf32> -> vector<16x32xf32>
    %303 = arith.addf %276, %302 : vector<16x32xf32>
    %304 = arith.addf %178, %303 : vector<16x32xf32>
    %cst_117 = arith.constant dense<0.000000e+00> : vector<16xf32>
    %305 = vector.multi_reduction <add>, %304, %cst_117 [1] : vector<16x32xf32> to vector<16xf32>
    %306 = vector.shape_cast %305 : vector<16xf32> to vector<16x1xf32>
    %cst_118 = arith.constant 3.200000e+01 : f32
    %307 = vector.broadcast %cst_118 : f32 to vector<16x1xf32>
    %308 = arith.divf %306, %307 : vector<16x1xf32>
    %309 = vector.broadcast %308 : vector<16x1xf32> to vector<16x32xf32>
    %310 = arith.subf %304, %309 : vector<16x32xf32>
    %311 = arith.mulf %310, %310 : vector<16x32xf32>
    %cst_119 = arith.constant dense<0.000000e+00> : vector<16xf32>
    %312 = vector.multi_reduction <add>, %311, %cst_119 [1] : vector<16x32xf32> to vector<16xf32>
    %313 = vector.shape_cast %312 : vector<16xf32> to vector<16x1xf32>
    %cst_120 = arith.constant 3.200000e+01 : f32
    %314 = vector.broadcast %cst_120 : f32 to vector<16x1xf32>
    %315 = arith.divf %313, %314 : vector<16x1xf32>
    %cst_121 = arith.constant 9.99999974E-6 : f32
    %316 = vector.broadcast %cst_121 : f32 to vector<16x1xf32>
    %317 = arith.addf %315, %316 : vector<16x1xf32>
    %318 = math.rsqrt %317 : vector<16x1xf32>
    %319 = vector.broadcast %318 : vector<16x1xf32> to vector<16x32xf32>
    %320 = arith.mulf %310, %319 : vector<16x32xf32>
    %321 = vector.broadcast %26 : vector<1x32xf32> to vector<16x32xf32>
    %322 = arith.mulf %320, %321 : vector<16x32xf32>
    %323 = vector.broadcast %27 : vector<1x32xf32> to vector<16x32xf32>
    %324 = arith.addf %322, %323 : vector<16x32xf32>
    %325 = arith.truncf %324 : vector<16x32xf32> to vector<16x32xbf16>
    %cst_122 = arith.constant dense<0.000000e+00> : vector<16x128xf32>
    %326 = tpu.matmul %325, %30, %cst_122 {dimension_numbers = #tpu.dot_dimension_numbers<[1], [0], [0], [1], [0, 0, 1, 1], [], []>} : vector<16x32xbf16>, vector<32x128xbf16>, vector<16x128xf32> -> vector<16x128xf32>
    %327 = vector.broadcast %31 : vector<1x128xf32> to vector<16x128xf32>
    %328 = arith.addf %326, %327 : vector<16x128xf32>
    %cst_123 = arith.constant 0.000000e+00 : f32
    %329 = vector.broadcast %cst_123 : f32 to vector<16x128xf32>
    %330 = arith.maximumf %328, %329 : vector<16x128xf32>
    %331 = arith.truncf %330 : vector<16x128xf32> to vector<16x128xbf16>
    %cst_124 = arith.constant dense<0.000000e+00> : vector<16x32xf32>
    %332 = tpu.matmul %331, %32, %cst_124 {dimension_numbers = #tpu.dot_dimension_numbers<[1], [0], [0], [1], [0, 0, 1, 1], [], []>} : vector<16x128xbf16>, vector<128x32xbf16>, vector<16x32xf32> -> vector<16x32xf32>
    %333 = vector.broadcast %33 : vector<1x32xf32> to vector<16x32xf32>
    %334 = arith.addf %332, %333 : vector<16x32xf32>
    %335 = arith.addf %324, %334 : vector<16x32xf32>
    %cst_125 = arith.constant dense<0.000000e+00> : vector<16xf32>
    %336 = vector.multi_reduction <add>, %335, %cst_125 [1] : vector<16x32xf32> to vector<16xf32>
    %337 = vector.shape_cast %336 : vector<16xf32> to vector<16x1xf32>
    %cst_126 = arith.constant 3.200000e+01 : f32
    %338 = vector.broadcast %cst_126 : f32 to vector<16x1xf32>
    %339 = arith.divf %337, %338 : vector<16x1xf32>
    %340 = vector.broadcast %339 : vector<16x1xf32> to vector<16x32xf32>
    %341 = arith.subf %335, %340 : vector<16x32xf32>
    %342 = arith.mulf %341, %341 : vector<16x32xf32>
    %cst_127 = arith.constant dense<0.000000e+00> : vector<16xf32>
    %343 = vector.multi_reduction <add>, %342, %cst_127 [1] : vector<16x32xf32> to vector<16xf32>
    %344 = vector.shape_cast %343 : vector<16xf32> to vector<16x1xf32>
    %cst_128 = arith.constant 3.200000e+01 : f32
    %345 = vector.broadcast %cst_128 : f32 to vector<16x1xf32>
    %346 = arith.divf %344, %345 : vector<16x1xf32>
    %cst_129 = arith.constant 9.99999974E-6 : f32
    %347 = vector.broadcast %cst_129 : f32 to vector<16x1xf32>
    %348 = arith.addf %346, %347 : vector<16x1xf32>
    %349 = math.rsqrt %348 : vector<16x1xf32>
    %350 = vector.broadcast %349 : vector<16x1xf32> to vector<16x32xf32>
    %351 = arith.mulf %341, %350 : vector<16x32xf32>
    %352 = vector.broadcast %28 : vector<1x32xf32> to vector<16x32xf32>
    %353 = arith.mulf %351, %352 : vector<16x32xf32>
    %354 = vector.broadcast %29 : vector<1x32xf32> to vector<16x32xf32>
    %355 = arith.addf %353, %354 : vector<16x32xf32>
    %356 = vector.shape_cast %355 : vector<16x32xf32> to vector<2x8x32xf32>
    %c0_130 = arith.constant 0 : index
    %c0_131 = arith.constant 0 : index
    %c0_132 = arith.constant 0 : index
    %357 = vector.load %arg31[%c0_130, %c0_131, %c0_132] : memref<2x8x32xf32, #tpu.memory_space<vmem>>, vector<2x8x32xf32>
    tpu.vector_store %arg31[%c0_130, %c0_131, %c0_132], %356 {strides = array<i32>} : memref<2x8x32xf32, #tpu.memory_space<vmem>>, vector<2x8x32xf32>,
    return
  }
  func.func @transform_0(%arg0: i32) -> (i32, i32, i32) {
    %c0_i32 = arith.constant 0 : i32
    %c0_i32_0 = arith.constant 0 : i32
    %c0_i32_1 = arith.constant 0 : i32
    return %arg0, %c0_i32, %c0_i32_0 : i32, i32, i32
  }
  func.func @transform_1(%arg0: i32) -> (i32, i32, i32) {
    %c0_i32 = arith.constant 0 : i32
    %c0_i32_0 = arith.constant 0 : i32
    %c0_i32_1 = arith.constant 0 : i32
    return %arg0, %c0_i32, %c0_i32_0 : i32, i32, i32
  }
  func.func @transform_2(%arg0: i32) -> (i32, i32, i32) {
    %c0_i32 = arith.constant 0 : i32
    %c0_i32_0 = arith.constant 0 : i32
    %c0_i32_1 = arith.constant 0 : i32
    return %arg0, %c0_i32, %c0_i32_0 : i32, i32, i32
  }
  func.func @transform_3(%arg0: i32) -> (i32, i32, i32) {
    %c0_i32 = arith.constant 0 : i32
    %c0_i32_0 = arith.constant 0 : i32
    %c0_i32_1 = arith.constant 0 : i32
    return %arg0, %c0_i32, %c0_i32_0 : i32, i32, i32
  }
  func.func @transform_4(%arg0: i32) -> (i32, i32) {
    %c0_i32 = arith.constant 0 : i32
    %c0_i32_0 = arith.constant 0 : i32
    %c0_i32_1 = arith.constant 0 : i32
    return %c0_i32, %c0_i32_0 : i32, i32
  }
  func.func @transform_5(%arg0: i32) -> (i32, i32) {
    %c0_i32 = arith.constant 0 : i32
    %c0_i32_0 = arith.constant 0 : i32
    %c0_i32_1 = arith.constant 0 : i32
    return %c0_i32, %c0_i32_0 : i32, i32
  }
  func.func @transform_6(%arg0: i32) -> (i32, i32) {
    %c0_i32 = arith.constant 0 : i32
    %c0_i32_0 = arith.constant 0 : i32
    %c0_i32_1 = arith.constant 0 : i32
    return %c0_i32, %c0_i32_0 : i32, i32
  }
  func.func @transform_7(%arg0: i32) -> (i32, i32) {
    %c0_i32 = arith.constant 0 : i32
    %c0_i32_0 = arith.constant 0 : i32
    %c0_i32_1 = arith.constant 0 : i32
    return %c0_i32, %c0_i32_0 : i32, i32
  }
  func.func @transform_8(%arg0: i32) -> (i32, i32) {
    %c0_i32 = arith.constant 0 : i32
    %c0_i32_0 = arith.constant 0 : i32
    %c0_i32_1 = arith.constant 0 : i32
    return %c0_i32, %c0_i32_0 : i32, i32
  }
  func.func @transform_9(%arg0: i32) -> (i32, i32) {
    %c0_i32 = arith.constant 0 : i32
    %c0_i32_0 = arith.constant 0 : i32
    %c0_i32_1 = arith.constant 0 : i32
    return %c0_i32, %c0_i32_0 : i32, i32
  }
  func.func @transform_10(%arg0: i32) -> (i32, i32, i32) {
    %c0_i32 = arith.constant 0 : i32
    %c0_i32_0 = arith.constant 0 : i32
    %c0_i32_1 = arith.constant 0 : i32
    %c0_i32_2 = arith.constant 0 : i32
    return %c0_i32, %c0_i32_0, %c0_i32_1 : i32, i32, i32
  }
  func.func @transform_11(%arg0: i32) -> (i32, i32) {
    %c0_i32 = arith.constant 0 : i32
    %c0_i32_0 = arith.constant 0 : i32
    %c0_i32_1 = arith.constant 0 : i32
    return %c0_i32, %c0_i32_0 : i32, i32
  }
  func.func @transform_12(%arg0: i32) -> (i32, i32) {
    %c0_i32 = arith.constant 0 : i32
    %c0_i32_0 = arith.constant 0 : i32
    %c0_i32_1 = arith.constant 0 : i32
    return %c0_i32, %c0_i32_0 : i32, i32
  }
  func.func @transform_13(%arg0: i32) -> (i32, i32) {
    %c0_i32 = arith.constant 0 : i32
    %c0_i32_0 = arith.constant 0 : i32
    %c0_i32_1 = arith.constant 0 : i32
    return %c0_i32, %c0_i32_0 : i32, i32
  }
  func.func @transform_14(%arg0: i32) -> (i32, i32) {
    %c0_i32 = arith.constant 0 : i32
    %c0_i32_0 = arith.constant 0 : i32
    %c0_i32_1 = arith.constant 0 : i32
    return %c0_i32, %c0_i32_0 : i32, i32
  }
  func.func @transform_15(%arg0: i32) -> (i32, i32) {
    %c0_i32 = arith.constant 0 : i32
    %c0_i32_0 = arith.constant 0 : i32
    %c0_i32_1 = arith.constant 0 : i32
    return %c0_i32, %c0_i32_0 : i32, i32
  }
  func.func @transform_16(%arg0: i32) -> (i32, i32) {
    %c0_i32 = arith.constant 0 : i32
    %c0_i32_0 = arith.constant 0 : i32
    %c0_i32_1 = arith.constant 0 : i32
    return %c0_i32, %c0_i32_0 : i32, i32
  }
  func.func @transform_17(%arg0: i32) -> (i32, i32) {
    %c0_i32 = arith.constant 0 : i32
    %c0_i32_0 = arith.constant 0 : i32
    %c0_i32_1 = arith.constant 0 : i32
    return %c0_i32, %c0_i32_0 : i32, i32
  }
  func.func @transform_18(%arg0: i32) -> (i32, i32) {
    %c0_i32 = arith.constant 0 : i32
    %c0_i32_0 = arith.constant 0 : i32
    %c0_i32_1 = arith.constant 0 : i32
    return %c0_i32, %c0_i32_0 : i32, i32
  }
  func.func @transform_19(%arg0: i32) -> (i32, i32) {
    %c0_i32 = arith.constant 0 : i32
    %c0_i32_0 = arith.constant 0 : i32
    %c0_i32_1 = arith.constant 0 : i32
    return %c0_i32, %c0_i32_0 : i32, i32
  }
  func.func @transform_20(%arg0: i32) -> (i32, i32, i32) {
    %c0_i32 = arith.constant 0 : i32
    %c0_i32_0 = arith.constant 0 : i32
    %c0_i32_1 = arith.constant 0 : i32
    %c0_i32_2 = arith.constant 0 : i32
    return %c0_i32, %c0_i32_0, %c0_i32_1 : i32, i32, i32
  }
  func.func @transform_21(%arg0: i32) -> (i32, i32) {
    %c0_i32 = arith.constant 0 : i32
    %c0_i32_0 = arith.constant 0 : i32
    %c0_i32_1 = arith.constant 0 : i32
    return %c0_i32, %c0_i32_0 : i32, i32
  }
  func.func @transform_22(%arg0: i32) -> (i32, i32) {
    %c0_i32 = arith.constant 0 : i32
    %c0_i32_0 = arith.constant 0 : i32
    %c0_i32_1 = arith.constant 0 : i32
    return %c0_i32, %c0_i32_0 : i32, i32
  }
  func.func @transform_23(%arg0: i32) -> (i32, i32) {
    %c0_i32 = arith.constant 0 : i32
    %c0_i32_0 = arith.constant 0 : i32
    %c0_i32_1 = arith.constant 0 : i32
    return %c0_i32, %c0_i32_0 : i32, i32
  }
  func.func @transform_24(%arg0: i32) -> (i32, i32) {
    %c0_i32 = arith.constant 0 : i32
    %c0_i32_0 = arith.constant 0 : i32
    %c0_i32_1 = arith.constant 0 : i32
    return %c0_i32, %c0_i32_0 : i32, i32
  }
  func.func @transform_25(%arg0: i32) -> (i32, i32) {
    %c0_i32 = arith.constant 0 : i32
    %c0_i32_0 = arith.constant 0 : i32
    %c0_i32_1 = arith.constant 0 : i32
    return %c0_i32, %c0_i32_0 : i32, i32
  }
  func.func @transform_26(%arg0: i32) -> (i32, i32) {
    %c0_i32 = arith.constant 0 : i32
    %c0_i32_0 = arith.constant 0 : i32
    %c0_i32_1 = arith.constant 0 : i32
    return %c0_i32, %c0_i32_0 : i32, i32
  }
  func.func @transform_27(%arg0: i32) -> (i32, i32) {
    %c0_i32 = arith.constant 0 : i32
    %c0_i32_0 = arith.constant 0 : i32
    %c0_i32_1 = arith.constant 0 : i32
    return %c0_i32, %c0_i32_0 : i32, i32
  }
  func.func @transform_28(%arg0: i32) -> (i32, i32) {
    %c0_i32 = arith.constant 0 : i32
    %c0_i32_0 = arith.constant 0 : i32
    %c0_i32_1 = arith.constant 0 : i32
    return %c0_i32, %c0_i32_0 : i32, i32
  }
  func.func @transform_29(%arg0: i32) -> (i32, i32) {
    %c0_i32 = arith.constant 0 : i32
    %c0_i32_0 = arith.constant 0 : i32
    %c0_i32_1 = arith.constant 0 : i32
    return %c0_i32, %c0_i32_0 : i32, i32
  }
  func.func @transform_30(%arg0: i32) -> (i32, i32, i32) {
    %c0_i32 = arith.constant 0 : i32
    %c0_i32_0 = arith.constant 0 : i32
    %c0_i32_1 = arith.constant 0 : i32
    return %arg0, %c0_i32, %c0_i32_0 : i32, i32, i32
  }
}

</mosaic_0001>

<bundles_post_ra>
// kernel: tpu_custom_call.1
= control target key start
LH: loop header
LB: loop body
LE: loop exit
PB: predicated region body
PF: predicated region fallthrough
CT: control target
= control target key end

     0   :  { %s4389_s6 = smov 1   ;;  %s4390_s10 = smov 2   ;;  %s5119_s0 = inlined_call_operand.smem [shape: u32[31], index: -1, kind: input, shape index: {}] }
   0x1   :  { %s4454_s5 = sld [smem:[%s5119_s0]]   ;;  %s4391_s14 = smov 3  }
   0x2   :  { %s4459_s9 = sld [smem:[%s5119_s0 + %s4389_s6]]   ;;  %s4392_s18 = smov 4  }
   0x3   :  { %s4464_s13 = sld [smem:[%s5119_s0 + %s4390_s10]]   ;;  %s4393_s22 = smov 5  }
   0x4   :  { %s4469_s17 = sld [smem:[%s5119_s0 + %s4391_s14]]   ;;  %s4394_s26 = smov 6  }
   0x5   :  { %s4474_s21 = sld [smem:[%s5119_s0 + %s4392_s18]]   ;;  %s4395_s30 = smov 7  }
   0x6   :  { %s4479_s25 = sld [smem:[%s5119_s0 + %s4393_s22]]   ;;  %s4396_s4 = smov 8  }
   0x7   :  { %5125 = sst [smem:[#allocation40_spill]] %s4454_s5  ;;  %s4397_s10 = smov 9  }
   0x8   :  { %5126 = sst [smem:[#allocation41_spill]] %s4459_s9  ;;  %s4398_s15 = smov 10  }
   0x9   :  { %s4484_s29 = sld [smem:[%s5119_s0 + %s4394_s26]]   ;;  %s4399_s20 = smov 11  }
   0xa   :  { %5127 = sst [smem:[#allocation42_spill]] %s4469_s17  ;;  %s4400_s26 = smov 12  }
   0xb   :  { %s4489_s3 = sld [smem:[%s5119_s0 + %s4395_s30]]   ;;  %s4401_s1 = smov 13  }
   0xc   :  { %s4494_s8 = sld [smem:[%s5119_s0 + %s4396_s4]]   ;;  %s4402_s7 = smov 14  }
   0xd   :  { %s4499_s14 = sld [smem:[%s5119_s0 + %s4397_s10]]   ;;  %s4404_s22 = smov 16  }
   0xe   :  { %s4504_s19 = sld [smem:[%s5119_s0 + %s4398_s15]]   ;;  %s4403_s15 = smov 15  }
   0xf   :  { %s4509_s24 = sld [smem:[%s5119_s0 + %s4399_s20]]   ;;  %s4405_s28 = smov 17  }
  0x10   :  { %s4514_s30 = sld [smem:[%s5119_s0 + %s4400_s26]]  }
  0x11   :  { %s4519_s6 = sld [smem:[%s5119_s0 + %s4401_s1]]  }
  0x12   :  { %s4524_s12 = sld [smem:[%s5119_s0 + %s4402_s7]]   ;;  %s4406_s7 = smov 18  }
  0x13   :  { %s4529_s20 = sld [smem:[%s5119_s0 + %s4403_s15]]   ;;  %s4407_s15 = smov 19  }
  0x14   :  { %5128 = sst [smem:[#allocation43_spill]] %s4504_s19 }
  0x15   :  { %s4534_s27 = sld [smem:[%s5119_s0 + %s4404_s22]]   ;;  %s4408_s22 = smov 20  }
  0x16   :  { %s4539_s4 = sld [smem:[%s5119_s0 + %s4405_s28]]   ;;  %s4409_s28 = smov 21  }
  0x17   :  { %s4544_s17 = sld [smem:[%s5119_s0 + %s4406_s7]]   ;;  %s4410_s7 = smov 22  }
  0x18   :  { %s4549_s9 = sld [smem:[%s5119_s0 + %s4407_s15]]   ;;  %s4411_s15 = smov 23  }
  0x19   :  { %s4554_s19 = sld [smem:[%s5119_s0 + %s4408_s22]]   ;;  %s4412_s22 = smov 24  }
  0x1a   :  { %s4559_s5 = sld [smem:[%s5119_s0 + %s4409_s28]]   ;;  %s4413_s28 = smov 25  }
  0x1b   :  { %5129 = sst [smem:[#allocation44_spill]] %s4534_s27 }
  0x1c   :  { %s4574_s27 = sld [smem:[%s5119_s0 + %s4412_s22]]   ;;  %s4416_s22 = smov 28  }
  0x1d   :  { %5130 = sst [smem:[#allocation45_spill]] %s4544_s17 }
  0x1e   :  { %5131 = sst [smem:[#allocation46_spill]] %s4549_s9 }
  0x1f   :  { %s4564_s17 = sld [smem:[%s5119_s0 + %s4410_s7]]   ;;  %s4414_s7 = smov 26  }
  0x20   :  { %5132 = sst [smem:[#allocation47_spill]] %s4559_s5 }
  0x21   :  { %s4569_s9 = sld [smem:[%s5119_s0 + %s4411_s15]]   ;;  %s4415_s15 = smov 27  }
  0x22   :  { %5135 = sst [smem:[#allocation50_spill]] %s4574_s27 }
  0x23   :  { %s4579_s5 = sld [smem:[%s5119_s0 + %s4413_s28]]   ;;  %s4417_s28 = smov 29  }
  0x24   :  { %s4594_s27 = sld [smem:[%s5119_s0 + %s4416_s22]]  }
  0x25   :  { %5133 = sst [smem:[#allocation48_spill]] %s4564_s17 }
  0x26   :  { %s4584_s17 = sld [smem:[%s5119_s0 + %s4414_s7]]   ;;  %s4418_s7 = smov 30  }
  0x27   :  { %5134 = sst [smem:[#allocation49_spill]] %s4569_s9 }
  0x28   :  { %s4589_s9 = sld [smem:[%s5119_s0 + %s4415_s15]]  }
  0x29   :  { %5136 = sst [smem:[#allocation51_spill]] %s4579_s5 }
  0x2a   :  { %s4599_s5 = sld [smem:[%s5119_s0 + %s4417_s28]]  }
  0x2c   :  { %5137 = sst [smem:[#allocation52_spill]] %s4584_s17 }
  0x2d   :  { %s4604_s17 = sld [smem:[%s5119_s0 + %s4418_s7]]  }
  0x2e   :  { %66 = vsyncpa [#allocation3], 0 }
  0x2f   :  { %67 = vsyncpa [#allocation6], 0 }
  0x30   :  { %68 = vsyncpa [#allocation9], 0 }
  0x31   :  { %69 = vsyncpa [#allocation12], 0 }
  0x32   :  { %70 = vsyncpa [#allocation15], 0 }
  0x33   :  { %71 = vsyncpa [#allocation18], 0 }
  0x34   :  { %72 = vsyncpa [#allocation21], 0 }
  0x35   :  { %73 = vsyncpa [#allocation24], 0 }
  0x36   :  { %74 = vsyncpa [#allocation27], 0 }
  0x37   :  { %75 = vsyncpa [#allocation4], 0  ;;  %s4419_s15 = smov [#allocation5]  }
  0x38   :  { %s99_s16 = sshll.u32 %s4419_s15, 4  ;;  %s100_s16 = int_to_ptr.vmem [resolvable:$true] %s99_s16 }
  0x39   :  { %s4017_s18 = scalar_lea.vmem %s100_s16, 256  ;;  %p4022_p1 = scmp.lt.s32.totalorder %s100_s16, %s100_s16 }
  0x3a   :  { %p4018_p0 = scmp.ne.s32.totalorder %s100_s16, %s4017_s18  ;;  %p4023_p2 = scmp.lt.s32.totalorder %s4017_s18, %s4017_s18 }
  0x3c   :  { %p4024_p3 = por %p4023_p2, %p4022_p1 }
  0x3e   :  { %p4025_p4 = pnand %p4024_p3, %p4018_p0 }
  0x40   :  { %4028 = shalt.err (!%p4025_p4)
}
  0x41   :  { %s4420_s0 = smov 64   ;;  %s4421_s22 = smov 4  }
  0x42   :  { %105 = dma.hbm_to_vmem [thread:$0]  %s4474_s21, 256, %s100_s16, [#allocation6], %s4420_s0, %s4420_s0, %s4421_s22  }
  0x43   :  { %s4422_s23 = smov [#allocation8]   ;;  %s4423_s28 = smov [#allocation11]  }
  0x44   :  { %s121_s26 = sshll.u32 %s4422_s23, 4  ;;  %s143_s1 = sshll.u32 %s4423_s28, 4  ;;  %s122_s26 = int_to_ptr.vmem [resolvable:$true] %s121_s26  ;;  %s144_s1 = int_to_ptr.vmem [resolvable:$true] %s143_s1 }
  0x45   :  { %s4037_s2 = scalar_lea.vmem %s122_s26, 256  ;;  %p4042_p6 = scmp.lt.s32.totalorder %s122_s26, %s122_s26 }
  0x46   :  { %p4038_p5 = scmp.ne.s32.totalorder %s122_s26, %s4037_s2  ;;  %p4043_p7 = scmp.lt.s32.totalorder %s4037_s2, %s4037_s2 }
  0x48   :  { %p4044_p8 = por %p4043_p7, %p4042_p6 }
  0x4a   :  { %p4045_p9 = pnand %p4044_p8, %p4038_p5 }
  0x4c   :  { %4048 = shalt.err (!%p4045_p9)
}
  0x4d   :  { %127 = dma.hbm_to_vmem [thread:$0]  %s4484_s29, 256, %s122_s26, [#allocation9], %s4420_s0, %s4420_s0, %s4421_s22  }
  0x4e   :  { %s4057_s7 = scalar_lea.vmem %s144_s1, 256  ;;  %p4062_p11 = scmp.lt.s32.totalorder %s144_s1, %s144_s1 }
  0x4f   :  { %p4058_p10 = scmp.ne.s32.totalorder %s144_s1, %s4057_s7  ;;  %p4063_p12 = scmp.lt.s32.totalorder %s4057_s7, %s4057_s7 }
  0x51   :  { %p4064_p13 = por %p4063_p12, %p4062_p11 }
  0x53   :  { %p4065_p0 = pnand %p4064_p13, %p4058_p10 }
  0x55   :  { %4068 = shalt.err (!%p4065_p0)
}
  0x56   :  { %149 = dma.hbm_to_vmem [thread:$0]  %s4494_s8, 256, %s144_s1, [#allocation12], %s4420_s0, %s4420_s0, %s4421_s22  }
  0x57   :  { %s4424_s21 = smov [#allocation14]   ;;  %s4425_s11 = smov [#allocation17]  }
  0x58   :  { %s168_s10 = sshll.u32 %s4424_s21, 4  ;;  %s188_s15 = sshll.u32 %s4425_s11, 4  ;;  %s169_s10 = int_to_ptr.vmem [resolvable:$true] %s168_s10  ;;  %s189_s15 = int_to_ptr.vmem [resolvable:$true] %s188_s15 }
  0x59   :  { %s4077_s16 = scalar_lea.vmem %s169_s10, 16  ;;  %s4081_s29 = scalar_lea.vmem %s169_s10, 32 }
  0x5a   :  { %p4078_p1 = scmp.ne.s32.totalorder %s169_s10, %s4077_s16  ;;  %p4082_p2 = scmp.lt.s32.totalorder %s169_s10, %s169_s10 }
  0x5b   :  { %p4083_p3 = scmp.lt.s32.totalorder %s4081_s29, %s4077_s16 }
  0x5d   :  { %p4084_p4 = por %p4083_p3, %p4082_p2 }
  0x5f   :  { %p4085_p5 = pnand %p4084_p4, %p4078_p1 }
  0x61   :  { %4088 = shalt.err (!%p4085_p5)
}
  0x62   :  { %171 = dma.hbm_to_vmem [thread:$0]  %s4509_s24, 16, %s169_s10, [#allocation15]  }
  0x63   :  { %s4097_s18 = scalar_lea.vmem %s189_s15, 16  ;;  %s4101_s23 = scalar_lea.vmem %s189_s15, 32 }
  0x64   :  { %p4098_p6 = scmp.ne.s32.totalorder %s189_s15, %s4097_s18  ;;  %p4102_p7 = scmp.lt.s32.totalorder %s189_s15, %s189_s15 }
  0x65   :  { %p4103_p8 = scmp.lt.s32.totalorder %s4101_s23, %s4097_s18 }
  0x67   :  { %p4104_p9 = por %p4103_p8, %p4102_p7 }
  0x69   :  { %p4105_p10 = pnand %p4104_p9, %p4098_p6 }
  0x6b   :  { %4108 = shalt.err (!%p4105_p10)
}
  0x6c   :  { %191 = dma.hbm_to_vmem [thread:$0]  %s4519_s6, 16, %s189_s15, [#allocation18]  }
  0x6d   :  { %s4426_s8 = smov [#allocation20]   ;;  %s4427_s28 = smov [#allocation23]  }
  0x6e   :  { %s210_s26 = sshll.u32 %s4426_s8, 4  ;;  %s232_s1 = sshll.u32 %s4427_s28, 4  ;;  %s211_s26 = int_to_ptr.vmem [resolvable:$true] %s210_s26  ;;  %s233_s1 = int_to_ptr.vmem [resolvable:$true] %s232_s1 }
  0x6f   :  { %s4117_s2 = scalar_lea.vmem %s211_s26, 16  ;;  %s4121_s7 = scalar_lea.vmem %s211_s26, 32 }
  0x70   :  { %p4118_p11 = scmp.ne.s32.totalorder %s211_s26, %s4117_s2  ;;  %p4122_p12 = scmp.lt.s32.totalorder %s211_s26, %s211_s26 }
  0x71   :  { %p4123_p13 = scmp.lt.s32.totalorder %s4121_s7, %s4117_s2 }
  0x73   :  { %p4124_p0 = por %p4123_p13, %p4122_p12 }
  0x75   :  { %p4125_p1 = pnand %p4124_p0, %p4118_p11 }
  0x77   :  { %4128 = shalt.err (!%p4125_p1)
}
  0x78   :  { %213 = dma.hbm_to_vmem [thread:$0]  %s4529_s20, 16, %s211_s26, [#allocation21]  }
  0x79   :  { %s4137_s24 = scalar_lea.vmem %s233_s1, 16  ;;  %s4141_s21 = scalar_lea.vmem %s233_s1, 32 }
  0x7a   :  { %p4138_p2 = scmp.ne.s32.totalorder %s233_s1, %s4137_s24  ;;  %p4142_p3 = scmp.lt.s32.totalorder %s233_s1, %s233_s1 }
  0x7b   :  { %p4143_p4 = scmp.lt.s32.totalorder %s4141_s21, %s4137_s24 }
  0x7d   :  { %p4144_p5 = por %p4143_p4, %p4142_p3 }
  0x7f   :  { %p4145_p6 = pnand %p4144_p5, %p4138_p2 }
  0x81   :  { %4148 = shalt.err (!%p4145_p6)
}
  0x82   :  { %235 = dma.hbm_to_vmem [thread:$0]  %s4539_s4, 16, %s233_s1, [#allocation24]  }
  0x83   :  { %s4428_s6 = smov [#allocation26]   ;;  %s4429_s11 = smov [#allocation2]  }
  0x84   :  { %s255_s10 = sshll.u32 %s4428_s6, 4  ;;  %s85_s15 = sshll.u32 %s4429_s11, 4  ;;  %s256_s10 = int_to_ptr.vmem [resolvable:$true] %s255_s10  ;;  %s86_s15 = int_to_ptr.vmem [resolvable:$true] %s85_s15 }
  0x85   :  { %s4157_s16 = scalar_lea.vmem %s256_s10, 256  ;;  %p4162_p8 = scmp.lt.s32.totalorder %s256_s10, %s256_s10 }
  0x86   :  { %p4158_p7 = scmp.ne.s32.totalorder %s256_s10, %s4157_s16  ;;  %p4163_p9 = scmp.lt.s32.totalorder %s4157_s16, %s4157_s16 }
  0x88   :  { %p4164_p10 = por %p4163_p9, %p4162_p8 }
  0x8a   :  { %p4165_p11 = pnand %p4164_p10, %p4158_p7 }
  0x8c   :  { %4168 = shalt.err (!%p4165_p11)
}
  0x8d   :  { %261 = dma.hbm_to_vmem [thread:$0]  %s4554_s19, 256, %s256_s10, [#allocation27], %s4420_s0, %s4420_s0, %s4421_s22  }
  0x8e   :  { %s4177_s20 = scalar_lea.vmem %s86_s15, 256  ;;  %p4182_p13 = scmp.lt.s32.totalorder %s86_s15, %s86_s15 }
  0x8f   :  { %p4178_p12 = scmp.ne.s32.totalorder %s86_s15, %s4177_s20  ;;  %p4183_p0 = scmp.lt.s32.totalorder %s4177_s20, %s4177_s20 }
  0x91   :  { %p4184_p1 = por %p4183_p0, %p4182_p13 }
  0x93   :  { %p4185_p2 = pnand %p4184_p1, %p4178_p12 }
  0x95   :  { %4188 = shalt.err (!%p4185_p2)
}
  0x96   :  { %s4430_s4 = smov 128   ;;  %s4431_s29 = smov 8  }
  0x97   :  { %91 = dma.hbm_to_vmem [thread:$0]  %s4464_s13, 256, %s86_s15, [#allocation3], %s4430_s4, %s4430_s4, %s4431_s29  }
  0x98   :  { %s4432_s18 = smov [#allocation7]   ;;  %s4433_s8 = smov [#allocation10]  }
  0x99   :  { %s112_s23 = sshll.u32 %s4432_s18, 4  ;;  %s134_s19 = sshll.u32 %s4433_s8, 4  ;;  %s113_s23 = int_to_ptr.vmem [resolvable:$true] %s112_s23  ;;  %s135_s19 = int_to_ptr.vmem [resolvable:$true] %s134_s19 }
  0x9a   :  { %s4197_s26 = scalar_lea.vmem %s113_s23, 16  ;;  %s4201_s28 = scalar_lea.vmem %s113_s23, 32 }
  0x9b   :  { %p4198_p3 = scmp.ne.s32.totalorder %s113_s23, %s4197_s26  ;;  %p4202_p4 = scmp.lt.s32.totalorder %s113_s23, %s113_s23 }
  0x9c   :  { %p4203_p5 = scmp.lt.s32.totalorder %s4201_s28, %s4197_s26 }
  0x9e   :  { %p4204_p6 = por %p4203_p5, %p4202_p4 }
  0xa0   :  { %p4205_p7 = pnand %p4204_p6, %p4198_p3 }
  0xa2   :  { %4208 = shalt.err (!%p4205_p7)
}
  0xa3   :  { %115 = dma.hbm_to_vmem [thread:$0]  %s4479_s25, 16, %s113_s23, [#allocation6]  }
  0xa4   :  { %s4217_s1 = scalar_lea.vmem %s135_s19, 16  ;;  %s4221_s2 = scalar_lea.vmem %s135_s19, 32 }
  0xa5   :  { %p4218_p8 = scmp.ne.s32.totalorder %s135_s19, %s4217_s1  ;;  %p4222_p9 = scmp.lt.s32.totalorder %s135_s19, %s135_s19 }
  0xa6   :  { %p4223_p10 = scmp.lt.s32.totalorder %s4221_s2, %s4217_s1 }
  0xa8   :  { %p4224_p11 = por %p4223_p10, %p4222_p9 }
  0xaa   :  { %p4225_p12 = pnand %p4224_p11, %p4218_p8 }
  0xac   :  { %4228 = shalt.err (!%p4225_p12)
}
  0xad   :  { %137 = dma.hbm_to_vmem [thread:$0]  %s4489_s3, 16, %s135_s19, [#allocation9]  }
  0xae   :  { %s4434_s13 = smov [#allocation13]   ;;  %s4435_s24 = smov [#allocation16]  }
  0xaf   :  { %s156_s7 = sshll.u32 %s4434_s13, 4  ;;  %s178_s21 = sshll.u32 %s4435_s24, 4  ;;  %s157_s7 = int_to_ptr.vmem [resolvable:$true] %s156_s7  ;;  %s179_s21 = int_to_ptr.vmem [resolvable:$true] %s178_s21 }
  0xb0   :  { %s4237_s6 = scalar_lea.vmem %s157_s7, 16  ;;  %s4241_s10 = scalar_lea.vmem %s157_s7, 32 }
  0xb1   :  { %p4238_p13 = scmp.ne.s32.totalorder %s157_s7, %s4237_s6  ;;  %p4242_p0 = scmp.lt.s32.totalorder %s157_s7, %s157_s7 }
  0xb2   :  { %p4243_p1 = scmp.lt.s32.totalorder %s4241_s10, %s4237_s6 }
  0xb4   :  { %p4244_p2 = por %p4243_p1, %p4242_p0 }
  0xb6   :  { %p4245_p3 = pnand %p4244_p2, %p4238_p13 }
  0xb8   :  { %4248 = shalt.err (!%p4245_p3)
}
  0xb9   :  { %159 = dma.hbm_to_vmem [thread:$0]  %s4499_s14, 16, %s157_s7, [#allocation12]  }
  0xba   :  { %s4257_s25 = scalar_lea.vmem %s179_s21, 16  ;;  %s4261_s11 = scalar_lea.vmem %s179_s21, 32 }
  0xbb   :  { %p4258_p4 = scmp.ne.s32.totalorder %s179_s21, %s4257_s25  ;;  %p4262_p5 = scmp.lt.s32.totalorder %s179_s21, %s179_s21 }
  0xbc   :  { %p4263_p6 = scmp.lt.s32.totalorder %s4261_s11, %s4257_s25 }
  0xbe   :  { %p4264_p7 = por %p4263_p6, %p4262_p5 }
  0xc0   :  { %p4265_p8 = pnand %p4264_p7, %p4258_p4 }
  0xc2   :  { %4268 = shalt.err (!%p4265_p8)
}
  0xc3   :  { %181 = dma.hbm_to_vmem [thread:$0]  %s4514_s30, 16, %s179_s21, [#allocation15]  }
  0xc4   :  { %s4436_s3 = smov [#allocation19]   ;;  %s4437_s16 = smov [#allocation22]  }
  0xc5   :  { %s197_s15 = sshll.u32 %s4436_s3, 4  ;;  %s219_s20 = sshll.u32 %s4437_s16, 4  ;;  %s198_s15 = int_to_ptr.vmem [resolvable:$true] %s197_s15  ;;  %s220_s20 = int_to_ptr.vmem [resolvable:$true] %s219_s20 }
  0xc6   :  { %s4277_s18 = scalar_lea.vmem %s198_s15, 256  ;;  %p4282_p10 = scmp.lt.s32.totalorder %s198_s15, %s198_s15 }
  0xc7   :  { %p4278_p9 = scmp.ne.s32.totalorder %s198_s15, %s4277_s18  ;;  %p4283_p11 = scmp.lt.s32.totalorder %s4277_s18, %s4277_s18 }
  0xc9   :  { %p4284_p12 = por %p4283_p11, %p4282_p10 }
  0xcb   :  { %p4285_p13 = pnand %p4284_p12, %p4278_p9 }
  0xcd   :  { %4288 = shalt.err (!%p4285_p13)
}
  0xce   :  { %203 = dma.hbm_to_vmem [thread:$0]  %s4524_s12, 256, %s198_s15, [#allocation18], %s4420_s0, %s4420_s0, %s4421_s22  }
  0xcf   :  { %s4297_s14 = scalar_lea.vmem %s220_s20, 256  ;;  %p4302_p1 = scmp.lt.s32.totalorder %s220_s20, %s220_s20 }
  0xd0   :  { %p4298_p0 = scmp.ne.s32.totalorder %s220_s20, %s4297_s14  ;;  %p4303_p2 = scmp.lt.s32.totalorder %s4297_s14, %s4297_s14 }
  0xd2   :  { %p4304_p3 = por %p4303_p2, %p4302_p1 }
  0xd4   :  { %p4305_p4 = pnand %p4304_p3, %p4298_p0 }
  0xd6   :  { %4308 = shalt.err (!%p4305_p4)
}
  0xd7   :  { %s5138_s30 = sld [smem:[#allocation44_spill]]  ;;  %s4438_s23 = smov [#allocation25]  }
  0xd8   :  { %s241_s8 = sshll.u32 %s4438_s23, 4  ;;  %s4439_s19 = smov [#allocation28]   ;;  %s242_s8 = int_to_ptr.vmem [resolvable:$true] %s241_s8 }
  0xd9   :  { %s273_s26 = sshll.u32 %s4439_s19, 4  ;;  %s4317_s28 = scalar_lea.vmem %s242_s8, 256  ;;  %s274_s26 = int_to_ptr.vmem [resolvable:$true] %s273_s26 }
  0xda   :  { %p4318_p5 = scmp.ne.s32.totalorder %s242_s8, %s4317_s28  ;;  %p4322_p6 = scmp.lt.s32.totalorder %s242_s8, %s242_s8 }
  0xdb   :  { %p4323_p7 = scmp.lt.s32.totalorder %s4317_s28, %s4317_s28 }
  0xdd   :  { %225 = dma.hbm_to_vmem [thread:$0]  %s5138_s30, 256, %s220_s20, [#allocation21], %s4420_s0, %s4420_s0, %s4421_s22  }
  0xde   :  { %p4324_p8 = por %p4323_p7, %p4322_p6 }
  0xe0   :  { %p4325_p9 = pnand %p4324_p8, %p4318_p5 }
  0xe2   :  { %4328 = shalt.err (!%p4325_p9)
}
  0xe3   :  { %s5139_s12 = sld [smem:[#allocation45_spill]]  ;;  %s4337_s1 = scalar_lea.vmem %s274_s26, 256 }
  0xe4   :  { %p4338_p10 = scmp.ne.s32.totalorder %s274_s26, %s4337_s1  ;;  %p4342_p11 = scmp.lt.s32.totalorder %s274_s26, %s274_s26 }
  0xe5   :  { %p4343_p12 = scmp.lt.s32.totalorder %s4337_s1, %s4337_s1 }
  0xe7   :  { %p4344_p13 = por %p4343_p12, %p4342_p11 }
  0xe9   :  { %247 = dma.hbm_to_vmem [thread:$0]  %s5139_s12, 256, %s242_s8, [#allocation24], %s4420_s0, %s4420_s0, %s4421_s22  }
  0xea   :  { %p4345_p0 = pnand %p4344_p13, %p4338_p10 }
  0xec   :  { %4348 = shalt.err (!%p4345_p0)
}
  0xed   :  { %s5140_s2 = sld [smem:[#allocation50_spill]] }
  0xf3   :  { %279 = dma.hbm_to_vmem [thread:$0]  %s5140_s2, 256, %s274_s26, [#allocation27], %s4420_s0, %s4420_s0, %s4421_s22  }
  0xf4   :  { %4369 = dma.done.wait [#allocation3], 256  }
  0xf5   :  { %4370 = vsyncadd [#allocation3], 4294967040 }
  0xf6   :  { %4371 = dma.done.wait [#allocation6], 272  }
  0xf7   :  { %4372 = vsyncadd [#allocation6], 4294967024 }
  0xf8   :  { %4373 = dma.done.wait [#allocation9], 272  }
  0xf9   :  { %4374 = vsyncadd [#allocation9], 4294967024 }
  0xfa   :  { %4375 = dma.done.wait [#allocation12], 272  }
  0xfb   :  { %4376 = vsyncadd [#allocation12], 4294967024 }
  0xfc   :  { %4377 = dma.done.wait [#allocation15], 32  }
  0xfd   :  { %4378 = vsyncadd [#allocation15], 4294967264 }
  0xfe   :  { %4379 = dma.done.wait [#allocation18], 272  }
  0xff   :  { %4380 = vsyncadd [#allocation18], 4294967024 }
 0x100   :  { %4381 = dma.done.wait [#allocation21], 272  }
 0x101   :  { %4382 = vsyncadd [#allocation21], 4294967024 }
 0x102   :  { %4383 = dma.done.wait [#allocation24], 272  }
 0x103   :  { %4384 = vsyncadd [#allocation24], 4294967024 }
 0x104   :  { %4385 = dma.done.wait [#allocation27], 512  }
 0x105   :  { %4386 = vsyncadd [#allocation27], 4294966784  ;;  %s5141_s13 = sld [smem:[#allocation40_spill]]  ;;  %v4440_v0 = vmov 0.0   ;;  %vm4441_vm0 = vmmov 0   ;;  %v3911_v1 = vld [vmem:[#allocation5 + $0x8] sm:$0xff]  }
 0x106   :  { %3538 = vmatprep.subr.bf16.mxu0 %v4440_v0  ;;  %3542 = vmatprep.mubr.msk.bf16.mxu0 %vm4441_vm0, %v4440_v0  ;;  %v3912_v2 = vld [vmem:[#allocation5] sm:$0xff]   ;;  %v4662_v5 = vld [vmem:[#allocation2] sm:$0xff]  ;;  %v4665_v6 = vld [vmem:[#allocation2 + $0x8] sm:$0xff]  ;;  %vm443_vm1 = vcmask 261120   ;;  %vm623_vm2 = vcmask 64512   ;;  %vm743_vm3 = vcmask 1043456  }
 0x107   :  { %3562 = vmatprep.subr.bf16.mxu1 %v4440_v0  ;;  %3564 = vmatprep.mubr.msk.bf16.mxu1 %vm4441_vm0, %v4440_v0  ;;  %v3913_v9 = vld [vmem:[#allocation8 + $0x8] sm:$0xff]   ;;  %v3914_v11 = vld [vmem:[#allocation8] sm:$0xff]   ;;  %v3916_v13 = vld [vmem:[#allocation11] sm:$0xff]   ;;  %s4442_s0 = smov 120   ;;  %s5142_s22 = sld [smem:[#allocation43_spill]]  ;;  %vm2068_vm4 = vcmask 130048  }
 0x108   :  { %3539 = vmatpush3.bf16.msra.mxu0 %v3911_v1  ;;  %v3915_v12 = vld [vmem:[#allocation11 + $0x8] sm:$0xff]   ;;  %v3343_v19 = vld [vmem:[#allocation10] ss:$0 sm:$0xff]  ;;  %v3347_v35 = vld [vmem:[#allocation13] ss:$0 sm:$0xff]  ;;  %s4443_s7 = smov 112  }
 0x109   :  { %3540 = vmatprep.subr.bf16.mxu0 %v4440_v0  ;;  %v3339_v24 = vld [vmem:[#allocation7] ss:$0 sm:$0xff]  ;;  %s4444_s24 = smov 104   ;;  %s5143_s21 = sld [smem:[#allocation41_spill]] }
 0x10a   :  { %s5144_s6 = sld [smem:[#allocation42_spill]] }
 0x10b   :  { %v4657_v3 = vld [vmem:[%s5141_s13] sm:$0xff]  ;;  %v4660_v4 = vld [vmem:[%s5141_s13 + $0x8] sm:$0xff]  ;;  %s5145_s10 = sld [smem:[#allocation46_spill]] }
 0x10c   :  { %v422_v7 = vadd.f32 %v4662_v5, %v4657_v3  ;;  %v423_v8 = vadd.f32 %v4665_v6, %v4660_v4  ;;  %3541 = vmatpush3.bf16.msra.mxu0 %v3912_v2  ;;  %v547_v14 = vpack.c.bf16 %v4660_v4, %v4657_v3  ;;  %s5146_s25 = sld [smem:[#allocation47_spill]] }
 0x10d   :  { %3546 = vmatprep.subr.bf16.mxu0 %v4440_v0  ;;  %s5147_s11 = sld [smem:[#allocation52_spill]] }
 0x10e   :  { %v424_v10 = vpack.c.bf16 %v423_v8, %v422_v7  ;;  %s5148_s3 = sld [smem:[#allocation48_spill]] }
 0x10f   :  { %s5149_s15 = sld [smem:[#allocation49_spill]] }
 0x110   :  { %3543 = vmatmul.mubr.msk.bf16.vlgmr.msra.gmra.mxu0 %vm443_vm1, %v424_v10  ;;  %s5150_s16 = sld [smem:[#allocation51_spill]] }
 0x111   :  { %3547 = vmatpush3.bf16.msra.mxu0 %v3913_v9  ;;  %3550 = vmatprep.mubr.msk.bf16.mxu0 %vm4441_vm0, %v4440_v0 }
 0x112   :  { %3548 = vmatprep.subr.bf16.mxu0 %v4440_v0 }
 0x115   :  { %3549 = vmatpush3.bf16.msra.mxu0 %v3914_v11 }
 0x116   :  { %3554 = vmatprep.subr.bf16.mxu0 %v4440_v0 }
 0x118   :  { %3551 = vmatmul.mubr.msk.bf16.vlgmr.msra.gmra.mxu0 %vm443_vm1, %v424_v10 }
 0x119   :  { %3558 = vmatprep.mubr.msk.bf16.mxu0 %vm4441_vm0, %v4440_v0  ;;  %3555 = vmatpush3.bf16.msra.mxu0 %v3915_v12 }
 0x11a   :  { %3556 = vmatprep.subr.bf16.mxu0 %v4440_v0 }
 0x11d   :  { %3557 = vmatpush3.bf16.msra.mxu0 %v3916_v13 }
 0x11e   :  { %3568 = vmatprep.subr.bf16.mxu0 %v4440_v0 }
 0x120   :  { %3559 = vmatmul.mubr.msk.bf16.vlgmr.msra.gmra.mxu0 %vm443_vm1, %v547_v14 }
 0x121   :  { %3570 = vmatprep.mubr.msk.bf16.mxu0 %vm4441_vm0, %v4440_v0 }
 0x1d0   :  { %v481_v15 = vpop.f32.mrf.mxu0 }
 0x1d1   :  { %v482_v29 = vadd.f32 %v3339_v24, %v481_v15 }
 0x1d2   :  { %v3544_v16 = vpop.f32.mrf.mxu0 }
 0x1d3   :  { %v4696_v32 = vpack.c.bf16 %v482_v29, %v482_v29 }
 0x1d4   :  { %v484_v17 = vpop.f32.mrf.mxu0 }
 0x1d5   :  { %v485_v33 = vadd.f32 %v3339_v24, %v484_v17 }
 0x1d6   :  { %v3545_v18 = vpop.f32.mrf.mxu0 }
 0x1d7   :  { %v4703_v34 = vpack.c.bf16 %v485_v33, %v485_v33 }
 0x1d8   :  { %v540_v20 = vpop.f32.mrf.mxu0 }
 0x1d9   :  { %v541_v21 = vadd.f32 %v3343_v19, %v540_v20 }
 0x1da   :  { %v3552_v22 = vpop.f32.mrf.mxu0 }
 0x1db   :  { %v4687_v23 = vpack.c.bf16 %v541_v21, %v541_v21 }
 0x1dc   :  { %v543_v25 = vpop.f32.mrf.mxu0 }
 0x1dd   :  { %v544_v26 = vadd.f32 %v3343_v19, %v543_v25  ;;  %v628_v27 = vsel %vm623_vm2, %v4687_v23, 0  ;;  %v369_v19 = vld [vmem:[%s5142_s22] sm:$0xf] }
 0x1de   :  { %v3553_v28 = vpop.f32.mrf.mxu0  ;;  %3563 = vmatpush3.bf16.xpose.msra.mxu1 %v628_v27  ;;  %v838_v20 = vsel %vm743_vm3, %v369_v19, 0 }
 0x1df   :  { %v4691_v30 = vpack.c.bf16 %v544_v26, %v544_v26  ;;  %3574 = vmatprep.subr.bf16.mxu1 %v4440_v0 }
 0x1e0   :  { %v603_v36 = vpop.f32.mrf.mxu0 }
 0x1e1   :  { %v674_v31 = vsel %vm623_vm2, %v4691_v30, 0  ;;  %v604_v38 = vadd.f32 %v3347_v35, %v603_v36 }
 0x1e2   :  { %3569 = vmatpush3.bf16.xpose.msra.mxu0 %v674_v31  ;;  %v3560_v37 = vpop.f32.mrf.mxu0 }
 0x1e3   :  { %3580 = vmatprep.subr.bf16.mxu0 %v4440_v0  ;;  %v4709_v42 = vpack.c.bf16 %v604_v38, %v604_v38 }
 0x1e4   :  { %v606_v39 = vpop.f32.mrf.mxu0 }
 0x1e5   :  { %3565 = vmatmul.mubr.msk.bf16.vlgmr.msra.gmra.mxu1 %vm623_vm2, %v4696_v32  ;;  %v607_v40 = vadd.f32 %v3347_v35, %v606_v39  ;;  %v745_v44 = vsel %vm743_vm3, %v4709_v42, 0 }
 0x1e6   :  { %3576 = vmatprep.mubr.msk.bf16.mxu1 %vm4441_vm0, %v4440_v0  ;;  %v3561_v41 = vpop.f32.mrf.mxu0  ;;  %3575 = vmatpush3.bf16.msra.mxu1 %v745_v44 }
 0x1e7   :  { %v4711_v43 = vpack.c.bf16 %v607_v40, %v607_v40  ;;  %3586 = vmatprep.subr.bf16.mxu1 %v4440_v0 }
 0x1e9   :  { %3571 = vmatmul.mubr.msk.bf16.vlgmr.msra.gmra.mxu0 %vm623_vm2, %v4703_v34  ;;  %v791_v45 = vsel %vm743_vm3, %v4711_v43, 0 }
 0x1ea   :  { %3582 = vmatprep.mubr.msk.bf16.mxu0 %vm4441_vm0, %v4440_v0  ;;  %3581 = vmatpush3.bf16.msra.mxu0 %v791_v45 }
 0x1eb   :  { %3592 = vmatprep.subr.bf16.mxu0 %v4440_v0 }
 0x2a5   :  { %v664_v46 = vpop.f32.mrf.mxu1 }
 0x2a6   :  { %v716_v47 = vsel %vm623_vm2, %v664_v46, -inf }
 0x2a7   :  { %717 = vmax.xlane.f32.xlu0 %v716_v47  ;;  %v3566_v48 = vpop.f32.mrf.mxu1 }
 0x2a9   :  { %v667_v49 = vpop.f32.mrf.mxu1  ;;  %v710_v50 = vpop.f32.mrf.mxu0 }
 0x2aa   :  { %v719_v51 = vsel %vm623_vm2, %v710_v50, -inf }
 0x2ab   :  { %v3567_v52 = vpop.f32.mrf.mxu1  ;;  %720 = vmax.xlane.f32.xlu0 %v719_v51  ;;  %v3572_v53 = vpop.f32.mrf.mxu0 }
 0x2ad   :  { %v713_v54 = vpop.f32.mrf.mxu0 }
 0x2af   :  { %v3573_v55 = vpop.f32.mrf.mxu0 }
 0x2c1   :  { %887 = vrot.lane.b32.xlu0 %v4687_v23, %s4442_s0 }
 0x330   :  { %v718_v56 = vpop.xlane.xlu0 %717 }
 0x331   :  { %v722_v57 = vsub.f32 %v664_v46, %v718_v56 }
 0x333   :  { %v724_v58 = vmul.f32 1.442695, %v722_v57 }
 0x334   :  { %v721_v59 = vpop.xlane.xlu0 %720 }
 0x335   :  { %3933 = vpow2.f32 %v724_v58  ;;  %v723_v60 = vsub.f32 %v710_v50, %v721_v59 }
 0x337   :  { %v726_v61 = vmul.f32 1.442695, %v723_v60 }
 0x338   :  { %v888_v14 = vpop.permute.xlu0 %887 }
 0x339   :  { %3935 = vpow2.f32 %v726_v61  ;;  %v893_v16 = vsel %vm623_vm2, %v888_v14, 0 }
 0x342   :  { %v3934_v62 = vpop.eup %3933 }
 0x343   :  { %v728_v63 = vsel %vm623_vm2, %v3934_v62, 0.0 }
 0x344   :  { %729 = vadd.xlane.f32.xlu1 %v728_v63 }
 0x346   :  { %v3936_v1 = vpop.eup %3935 }
 0x347   :  { %v731_v2 = vsel %vm623_vm2, %v3936_v1, 0.0 }
 0x348   :  { %732 = vadd.xlane.f32.xlu1 %v731_v2 }
 0x359   :  { %939 = vrot.lane.b32.xlu1 %v4691_v30, %s4442_s0 }
 0x35d   :  { %884 = vrot.lane.b32.xlu1 %v4696_v32, %s4442_s0 }
 0x361   :  { %936 = vrot.lane.b32.xlu1 %v4703_v34, %s4442_s0 }
 0x3cd   :  { %v730_v7 = vpop.xlane.xlu1 %729 }
 0x3ce   :  { %3937 = vrcp.f32 %v730_v7 }
 0x3d1   :  { %v733_v8 = vpop.xlane.xlu1 %732 }
 0x3d2   :  { %3939 = vrcp.f32 %v733_v8 }
 0x3d5   :  { %v940_v17 = vpop.permute.xlu1 %939 }
 0x3d6   :  { %v945_v29 = vsel %vm623_vm2, %v940_v17, 0 }
 0x3d9   :  { %v885_v18 = vpop.permute.xlu1 %884 }
 0x3db   :  { %v3938_v9 = vpop.eup %3937 }
 0x3dc   :  { %v735_v10 = vmul.f32 %v3938_v9, %v3934_v62 }
 0x3dd   :  { %v937_v37 = vpop.permute.xlu1 %936 }
 0x3de   :  { %v738_v11 = vpack.c.bf16 %v735_v10, %v735_v10 }
 0x3df   :  { %v3940_v12 = vpop.eup %3939 }
 0x3e0   :  { %3577 = vmatmul.mubr.msk.bf16.vlgmr.msra.gmra.mxu1 %vm623_vm2, %v738_v11  ;;  %v737_v13 = vmul.f32 %v3940_v12, %v3936_v1 }
 0x3e1   :  { %3588 = vmatprep.mubr.msk.bf16.mxu1 %vm4441_vm0, %v4440_v0  ;;  %3587 = vmatpush3.bf16.msra.mxu1 %v838_v20 }
 0x3e2   :  { %v739_v15 = vpack.c.bf16 %v737_v13, %v737_v13  ;;  %3598 = vmatprep.subr.bf16.mxu1 %v4440_v0 }
 0x3e4   :  { %3583 = vmatmul.mubr.msk.bf16.vlgmr.msra.gmra.mxu0 %vm623_vm2, %v739_v15 }
 0x3e5   :  { %3593 = vmatpush3.bf16.xpose.msra.mxu0 %v893_v16  ;;  %3594 = vmatprep.mubr.msk.bf16.mxu0 %vm4441_vm0, %v4440_v0 }
 0x3e6   :  { %3604 = vmatprep.subr.bf16.mxu0 %v4440_v0 }
 0x3ec   :  { %3595 = vmatmul.mubr.msk.bf16.vlgmr.msra.gmra.mxu0 %vm623_vm2, %v885_v18  ;;  %v370_v18 = vld [vmem:[%s5142_s22 + $0x4] sm:$0xf] }
 0x3ed   :  { %3606 = vmatprep.mubr.msk.bf16.mxu0 %vm4441_vm0, %v4440_v0  ;;  %v1114_v19 = vsel %vm743_vm3, %v370_v18, 0 }
 0x4a0   :  { %v781_v21 = vpop.f32.mrf.mxu1 }
 0x4a2   :  { %v3578_v22 = vpop.f32.mrf.mxu1 }
 0x4a4   :  { %v784_v24 = vpop.f32.mrf.mxu1  ;;  %v827_v25 = vpop.f32.mrf.mxu0 }
 0x4a5   :  { %v833_v26 = vpack.c.bf16 %v827_v25, %v781_v21 }
 0x4a6   :  { %v3579_v27 = vpop.f32.mrf.mxu1  ;;  %v3584_v28 = vpop.f32.mrf.mxu0 }
 0x4a7   :  { %3589 = vmatmul.mubr.msk.bf16.vlgmr.msra.gmra.mxu1 %vm623_vm2, %v833_v26 }
 0x4a8   :  { %3599 = vmatpush3.bf16.xpose.msra.mxu1 %v945_v29  ;;  %v830_v31 = vpop.f32.mrf.mxu0  ;;  %3600 = vmatprep.mubr.msk.bf16.mxu1 %vm4441_vm0, %v4440_v0 }
 0x4a9   :  { %3610 = vmatprep.subr.bf16.mxu1 %v4440_v0 }
 0x4aa   :  { %v3585_v33 = vpop.f32.mrf.mxu0 }
 0x4ac   :  { %v929_v35 = vpop.f32.mrf.mxu0 }
 0x4ad   :  { %v987_v36 = vsel %vm623_vm2, %v929_v35, -inf }
 0x4ae   :  { %988 = vmax.xlane.f32.xlu0 %v987_v36  ;;  %v3596_v38 = vpop.f32.mrf.mxu0 }
 0x4af   :  { %3601 = vmatmul.mubr.msk.bf16.vlgmr.msra.gmra.mxu1 %vm623_vm2, %v937_v37 }
 0x4b0   :  { %v932_v39 = vpop.f32.mrf.mxu0  ;;  %3612 = vmatprep.mubr.msk.bf16.mxu1 %vm4441_vm0, %v4440_v0 }
 0x4b2   :  { %v3597_v40 = vpop.f32.mrf.mxu0 }
 0x537   :  { %v989_v41 = vpop.xlane.xlu0 %988 }
 0x538   :  { %v993_v44 = vsub.f32 %v929_v35, %v989_v41 }
 0x53a   :  { %v995_v45 = vmul.f32 1.442695, %v993_v44 }
 0x53c   :  { %3941 = vpow2.f32 %v995_v45 }
 0x549   :  { %v3942_v46 = vpop.eup %3941 }
 0x54a   :  { %v999_v47 = vsel %vm623_vm2, %v3942_v46, 0.0 }
 0x54b   :  { %1000 = vadd.xlane.f32.xlu0 %v999_v47 }
 0x567   :  { %v4755_v48 = vpop.f32.mrf.mxu1 }
 0x569   :  { %v3590_v49 = vpop.f32.mrf.mxu1 }
 0x56a   :  { %v3351_v49 = vld [vmem:[#allocation14] ss:$0 sm:$0xff] }
 0x56b   :  { %v4757_v50 = vpop.f32.mrf.mxu1 }
 0x56d   :  { %v3591_v51 = vpop.f32.mrf.mxu1 }
 0x56e   :  { %v881_v51 = vadd.f32 %v3351_v49, %v4755_v48 }
 0x56f   :  { %v981_v52 = vpop.f32.mrf.mxu1 }
 0x570   :  { %v990_v53 = vsel %vm623_vm2, %v981_v52, -inf }
 0x571   :  { %991 = vmax.xlane.f32.xlu1 %v990_v53  ;;  %v3602_v54 = vpop.f32.mrf.mxu1 }
 0x573   :  { %v984_v55 = vpop.f32.mrf.mxu1 }
 0x574   :  { %v882_v55 = vadd.f32 %v3351_v49, %v4757_v50 }
 0x575   :  { %v3603_v56 = vpop.f32.mrf.mxu1 }
 0x582   :  { %1061 = vrot.lane.b32.xlu1 %v4711_v43, %s4442_s0 }
 0x586   :  { %1161 = vrot.lane.b32.xlu1 %v4687_v23, %s4443_s7 }
 0x58a   :  { %1211 = vrot.lane.b32.xlu1 %v4691_v30, %s4443_s7 }
 0x58e   :  { %1209 = vrot.lane.b32.xlu1 %v4703_v34, %s4443_s7 }
 0x5d4   :  { %v1001_v1 = vpop.xlane.xlu0 %1000 }
 0x5fa   :  { %v992_v57 = vpop.xlane.xlu1 %991 }
 0x5fb   :  { %v994_v58 = vsub.f32 %v981_v52, %v992_v57 }
 0x5fd   :  { %v997_v59 = vmul.f32 1.442695, %v994_v58 }
 0x5fe   :  { %v1062_v60 = vpop.permute.xlu1 %1061 }
 0x5ff   :  { %3943 = vpow2.f32 %v997_v59  ;;  %v1067_v61 = vsel %vm743_vm3, %v1062_v60, 0 }
 0x600   :  { %3611 = vmatpush3.bf16.msra.mxu1 %v1067_v61  ;;  %3945 = vrcp.f32 %v1001_v1 }
 0x601   :  { %3622 = vmatprep.subr.bf16.mxu1 %v4440_v0 }
 0x602   :  { %v1162_v14 = vpop.permute.xlu1 %1161 }
 0x603   :  { %v1167_v16 = vsel %vm623_vm2, %v1162_v14, 0 }
 0x606   :  { %v1212_v25 = vpop.permute.xlu1 %1211 }
 0x607   :  { %v1217_v29 = vsel %vm623_vm2, %v1212_v25, 0 }
 0x60a   :  { %v1210_v37 = vpop.permute.xlu1 %1209 }
 0x60c   :  { %v3944_v62 = vpop.eup %3943 }
 0x60d   :  { %v1002_v63 = vsel %vm623_vm2, %v3944_v62, 0.0  ;;  %v3946_v2 = vpop.eup %3945 }
 0x60e   :  { %1003 = vadd.xlane.f32.xlu0 %v1002_v63  ;;  %v1006_v8 = vmul.f32 %v3946_v2, %v3942_v46 }
 0x610   :  { %v1009_v11 = vpack.c.bf16 %v1006_v8, %v1006_v8 }
 0x624   :  { %1012 = vrot.lane.b32.xlu0 %v4709_v42, %s4442_s0 }
 0x628   :  { %1159 = vrot.lane.b32.xlu0 %v4696_v32, %s4443_s7 }
 0x697   :  { %v1004_v7 = vpop.xlane.xlu0 %1003 }
 0x698   :  { %3947 = vrcp.f32 %v1004_v7 }
 0x69b   :  { %v1013_v9 = vpop.permute.xlu0 %1012 }
 0x69c   :  { %v1018_v10 = vsel %vm743_vm3, %v1013_v9, 0 }
 0x69d   :  { %3605 = vmatpush3.bf16.msra.mxu0 %v1018_v10 }
 0x69e   :  { %3616 = vmatprep.subr.bf16.mxu0 %v4440_v0 }
 0x69f   :  { %v1160_v17 = vpop.permute.xlu0 %1159 }
 0x6a0   :  { %3607 = vmatmul.mubr.msk.bf16.vlgmr.msra.gmra.mxu0 %vm623_vm2, %v1009_v11 }
 0x6a1   :  { %3618 = vmatprep.mubr.msk.bf16.mxu0 %vm4441_vm0, %v4440_v0  ;;  %3617 = vmatpush3.bf16.msra.mxu0 %v1114_v19  ;;  %v371_v19 = vld [vmem:[%s5142_s22 + $0x8] sm:$0xf] }
 0x6a2   :  { %3628 = vmatprep.subr.bf16.mxu0 %v4440_v0 }
 0x6a5   :  { %v3948_v12 = vpop.eup %3947 }
 0x6a6   :  { %v1008_v13 = vmul.f32 %v3948_v12, %v3944_v62 }
 0x6a8   :  { %v1010_v15 = vpack.c.bf16 %v1008_v13, %v1008_v13 }
 0x6aa   :  { %3613 = vmatmul.mubr.msk.bf16.vlgmr.msra.gmra.mxu1 %vm623_vm2, %v1010_v15 }
 0x6ab   :  { %3623 = vmatpush3.bf16.xpose.msra.mxu1 %v1167_v16  ;;  %3624 = vmatprep.mubr.msk.bf16.mxu1 %vm4441_vm0, %v4440_v0 }
 0x6ac   :  { %3634 = vmatprep.subr.bf16.mxu1 %v4440_v0 }
 0x6b2   :  { %3625 = vmatmul.mubr.msk.bf16.vlgmr.msra.gmra.mxu1 %vm623_vm2, %v1160_v17 }
 0x6b3   :  { %3636 = vmatprep.mubr.msk.bf16.mxu1 %vm4441_vm0, %v4440_v0 }
 0x760   :  { %v1054_v20 = vpop.f32.mrf.mxu0 }
 0x762   :  { %v3608_v21 = vpop.f32.mrf.mxu0 }
 0x764   :  { %v1057_v22 = vpop.f32.mrf.mxu0 }
 0x766   :  { %v3609_v24 = vpop.f32.mrf.mxu0 }
 0x76a   :  { %v1103_v26 = vpop.f32.mrf.mxu1 }
 0x76b   :  { %v1109_v27 = vpack.c.bf16 %v1103_v26, %v1054_v20  ;;  %v1384_v20 = vsel %vm743_vm3, %v371_v19, 0 }
 0x76c   :  { %v3614_v28 = vpop.f32.mrf.mxu1 }
 0x76d   :  { %3619 = vmatmul.mubr.msk.bf16.vlgmr.msra.gmra.mxu0 %vm623_vm2, %v1109_v27 }
 0x76e   :  { %3629 = vmatpush3.bf16.xpose.msra.mxu0 %v1217_v29  ;;  %v1106_v31 = vpop.f32.mrf.mxu1  ;;  %3630 = vmatprep.mubr.msk.bf16.mxu0 %vm4441_vm0, %v4440_v0 }
 0x76f   :  { %3640 = vmatprep.subr.bf16.mxu0 %v4440_v0 }
 0x770   :  { %v3615_v33 = vpop.f32.mrf.mxu1 }
 0x772   :  { %v1203_v35 = vpop.f32.mrf.mxu1 }
 0x773   :  { %v1259_v36 = vsel %vm623_vm2, %v1203_v35, -inf }
 0x774   :  { %1260 = vmax.xlane.f32.xlu0 %v1259_v36  ;;  %v3626_v38 = vpop.f32.mrf.mxu1 }
 0x775   :  { %3631 = vmatmul.mubr.msk.bf16.vlgmr.msra.gmra.mxu0 %vm623_vm2, %v1210_v37 }
 0x776   :  { %v1206_v39 = vpop.f32.mrf.mxu1  ;;  %3642 = vmatprep.mubr.msk.bf16.mxu0 %vm4441_vm0, %v4440_v0 }
 0x778   :  { %v3627_v40 = vpop.f32.mrf.mxu1 }
 0x7fd   :  { %v1261_v41 = vpop.xlane.xlu0 %1260 }
 0x7fe   :  { %v1265_v44 = vsub.f32 %v1203_v35, %v1261_v41 }
 0x800   :  { %v1267_v45 = vmul.f32 1.442695, %v1265_v44 }
 0x802   :  { %3949 = vpow2.f32 %v1267_v45 }
 0x80f   :  { %v3950_v46 = vpop.eup %3949 }
 0x810   :  { %v1271_v47 = vsel %vm623_vm2, %v3950_v46, 0.0 }
 0x811   :  { %1272 = vadd.xlane.f32.xlu0 %v1271_v47 }
 0x82d   :  { %v1150_v52 = vpop.f32.mrf.mxu0 }
 0x82e   :  { %v4802_v53 = vadd.f32 %v1150_v52, %v881_v51 }
 0x82f   :  { %v3620_v54 = vpop.f32.mrf.mxu0 }
 0x831   :  { %v1153_v56 = vpop.f32.mrf.mxu0 }
 0x832   :  { %v4805_v57 = vadd.f32 %v1153_v56, %v882_v55 }
 0x833   :  { %v3621_v58 = vpop.f32.mrf.mxu0 }
 0x835   :  { %v1253_v59 = vpop.f32.mrf.mxu0 }
 0x836   :  { %v1262_v60 = vsel %vm623_vm2, %v1253_v59, -inf }
 0x837   :  { %1263 = vmax.xlane.f32.xlu1 %v1262_v60  ;;  %v3632_v61 = vpop.f32.mrf.mxu0 }
 0x839   :  { %v1256_v62 = vpop.f32.mrf.mxu0 }
 0x83b   :  { %v3633_v63 = vpop.f32.mrf.mxu0 }
 0x848   :  { %1331 = vrot.lane.b32.xlu1 %v4711_v43, %s4443_s7 }
 0x84c   :  { %1431 = vrot.lane.b32.xlu1 %v4687_v23, %s4444_s24 }
 0x850   :  { %1481 = vrot.lane.b32.xlu1 %v4691_v30, %s4444_s24 }
 0x854   :  { %1479 = vrot.lane.b32.xlu1 %v4703_v34, %s4444_s24 }
 0x89a   :  { %v1273_v23 = vpop.xlane.xlu0 %1272 }
 0x8c0   :  { %v1264_v48 = vpop.xlane.xlu1 %1263 }
 0x8c1   :  { %v1266_v50 = vsub.f32 %v1253_v59, %v1264_v48 }
 0x8c3   :  { %v1269_v1 = vmul.f32 1.442695, %v1266_v50 }
 0x8c4   :  { %v1332_v2 = vpop.permute.xlu1 %1331 }
 0x8c5   :  { %3951 = vpow2.f32 %v1269_v1  ;;  %v1337_v7 = vsel %vm743_vm3, %v1332_v2, 0 }
 0x8c6   :  { %3641 = vmatpush3.bf16.msra.mxu0 %v1337_v7  ;;  %3953 = vrcp.f32 %v1273_v23 }
 0x8c7   :  { %3652 = vmatprep.subr.bf16.mxu0 %v4440_v0 }
 0x8c8   :  { %v1432_v15 = vpop.permute.xlu1 %1431 }
 0x8c9   :  { %v1437_v17 = vsel %vm623_vm2, %v1432_v15, 0 }
 0x8cc   :  { %v1482_v26 = vpop.permute.xlu1 %1481 }
 0x8cd   :  { %v1487_v31 = vsel %vm623_vm2, %v1482_v26, 0 }
 0x8d0   :  { %v1480_v38 = vpop.permute.xlu1 %1479 }
 0x8d2   :  { %v3952_v8 = vpop.eup %3951 }
 0x8d3   :  { %v1274_v9 = vsel %vm623_vm2, %v3952_v8, 0.0  ;;  %v3954_v30 = vpop.eup %3953 }
 0x8d4   :  { %1275 = vadd.xlane.f32.xlu0 %v1274_v9  ;;  %v1278_v10 = vmul.f32 %v3954_v30, %v3950_v46 }
 0x8d6   :  { %v1281_v13 = vpack.c.bf16 %v1278_v10, %v1278_v10 }
 0x8ea   :  { %1283 = vrot.lane.b32.xlu0 %v4709_v42, %s4443_s7 }
 0x8ee   :  { %1429 = vrot.lane.b32.xlu0 %v4696_v32, %s4444_s24 }
 0x95d   :  { %v1276_v34 = vpop.xlane.xlu0 %1275 }
 0x95e   :  { %3955 = vrcp.f32 %v1276_v34 }
 0x961   :  { %v1284_v11 = vpop.permute.xlu0 %1283 }
 0x962   :  { %v1289_v12 = vsel %vm743_vm3, %v1284_v11, 0 }
 0x963   :  { %3635 = vmatpush3.bf16.msra.mxu1 %v1289_v12 }
 0x964   :  { %3646 = vmatprep.subr.bf16.mxu1 %v4440_v0 }
 0x965   :  { %v1430_v18 = vpop.permute.xlu0 %1429 }
 0x966   :  { %3637 = vmatmul.mubr.msk.bf16.vlgmr.msra.gmra.mxu1 %vm623_vm2, %v1281_v13  ;;  %v372_v13 = vld [vmem:[%s5142_s22 + $0xc] sm:$0xf] }
 0x967   :  { %3648 = vmatprep.mubr.msk.bf16.mxu1 %vm4441_vm0, %v4440_v0  ;;  %3647 = vmatpush3.bf16.msra.mxu1 %v1384_v20 }
 0x968   :  { %3658 = vmatprep.subr.bf16.mxu1 %v4440_v0 }
 0x96b   :  { %v3956_v32 = vpop.eup %3955 }
 0x96c   :  { %v1280_v14 = vmul.f32 %v3956_v32, %v3952_v8  ;;  %v1654_v32 = vsel %vm743_vm3, %v372_v13, 0  ;;  %v3373_v13 = vld [vmem:[#allocation17] ss:$0 sm:$0xff] }
 0x96e   :  { %v1282_v16 = vpack.c.bf16 %v1280_v14, %v1280_v14 }
 0x970   :  { %3643 = vmatmul.mubr.msk.bf16.vlgmr.msra.gmra.mxu0 %vm623_vm2, %v1282_v16 }
 0x971   :  { %3653 = vmatpush3.bf16.xpose.msra.mxu0 %v1437_v17  ;;  %3654 = vmatprep.mubr.msk.bf16.mxu0 %vm4441_vm0, %v4440_v0 }
 0x972   :  { %3664 = vmatprep.subr.bf16.mxu0 %v4440_v0 }
 0x978   :  { %3655 = vmatmul.mubr.msk.bf16.vlgmr.msra.gmra.mxu0 %vm623_vm2, %v1430_v18 }
 0x979   :  { %3666 = vmatprep.mubr.msk.bf16.mxu0 %vm4441_vm0, %v4440_v0 }
 0xa26   :  { %v1325_v21 = vpop.f32.mrf.mxu1 }
 0xa28   :  { %v3638_v22 = vpop.f32.mrf.mxu1 }
 0xa2a   :  { %v1328_v24 = vpop.f32.mrf.mxu1 }
 0xa2c   :  { %v3639_v25 = vpop.f32.mrf.mxu1 }
 0xa30   :  { %v1373_v27 = vpop.f32.mrf.mxu0 }
 0xa31   :  { %v1379_v28 = vpack.c.bf16 %v1373_v27, %v1325_v21 }
 0xa32   :  { %v3644_v29 = vpop.f32.mrf.mxu0 }
 0xa33   :  { %3649 = vmatmul.mubr.msk.bf16.vlgmr.msra.gmra.mxu1 %vm623_vm2, %v1379_v28 }
 0xa34   :  { %3659 = vmatpush3.bf16.xpose.msra.mxu1 %v1487_v31  ;;  %v1376_v33 = vpop.f32.mrf.mxu0  ;;  %3660 = vmatprep.mubr.msk.bf16.mxu1 %vm4441_vm0, %v4440_v0 }
 0xa35   :  { %3670 = vmatprep.subr.bf16.mxu1 %v4440_v0 }
 0xa36   :  { %v3645_v35 = vpop.f32.mrf.mxu0 }
 0xa38   :  { %v1473_v36 = vpop.f32.mrf.mxu0 }
 0xa39   :  { %v1529_v37 = vsel %vm623_vm2, %v1473_v36, -inf }
 0xa3a   :  { %1530 = vmax.xlane.f32.xlu0 %v1529_v37  ;;  %v3656_v39 = vpop.f32.mrf.mxu0 }
 0xa3b   :  { %3661 = vmatmul.mubr.msk.bf16.vlgmr.msra.gmra.mxu1 %vm623_vm2, %v1480_v38 }
 0xa3c   :  { %v1476_v40 = vpop.f32.mrf.mxu0  ;;  %3672 = vmatprep.mubr.msk.bf16.mxu1 %vm4441_vm0, %v4440_v0 }
 0xa3e   :  { %v3657_v41 = vpop.f32.mrf.mxu0 }
 0xac3   :  { %v1531_v44 = vpop.xlane.xlu0 %1530 }
 0xac4   :  { %v1535_v45 = vsub.f32 %v1473_v36, %v1531_v44 }
 0xac6   :  { %v1537_v46 = vmul.f32 1.442695, %v1535_v45 }
 0xac8   :  { %3957 = vpow2.f32 %v1537_v46 }
 0xad5   :  { %v3958_v47 = vpop.eup %3957 }
 0xad6   :  { %v1541_v49 = vsel %vm623_vm2, %v3958_v47, 0.0 }
 0xad7   :  { %1542 = vadd.xlane.f32.xlu0 %v1541_v49  ;;  %v3918_v49 = vld [vmem:[#allocation22] sm:$0xff]  }
 0xaf3   :  { %v1420_v51 = vpop.f32.mrf.mxu1 }
 0xaf4   :  { %v1427_v52 = vadd.f32 %v1420_v51, %v4802_v53  ;;  %v344_v51 = vld [vmem:[%s5143_s21] sm:$0xff] }
 0xaf5   :  { %v3650_v54 = vpop.f32.mrf.mxu1 }
 0xaf6   :  { %v350_v54 = vld [vmem:[%s5144_s6] sm:$0xff] }
 0xaf7   :  { %v1423_v55 = vpop.f32.mrf.mxu1 }
 0xaf8   :  { %v1428_v56 = vadd.f32 %v1423_v55, %v4805_v57  ;;  %v351_v55 = vld [vmem:[%s5144_s6 + $0x8] sm:$0xff] }
 0xaf9   :  { %v3651_v58 = vpop.f32.mrf.mxu1 }
 0xafa   :  { %v1746_v58 = vadd.f32 %v350_v54, %v344_v51 }
 0xafb   :  { %v1523_v59 = vpop.f32.mrf.mxu1 }
 0xafc   :  { %v1532_v60 = vsel %vm623_vm2, %v1523_v59, -inf }
 0xafd   :  { %1533 = vmax.xlane.f32.xlu1 %v1532_v60  ;;  %v3662_v61 = vpop.f32.mrf.mxu1  ;;  %v347_v60 = vld [vmem:[%s5143_s21 + $0x18] sm:$0xff] }
 0xafe   :  { %v352_v61 = vld [vmem:[%s5144_s6 + $0x10] sm:$0xff] }
 0xaff   :  { %v1526_v62 = vpop.f32.mrf.mxu1 }
 0xb00   :  { %v353_v62 = vld [vmem:[%s5144_s6 + $0x18] sm:$0xff] }
 0xb01   :  { %v3663_v63 = vpop.f32.mrf.mxu1 }
 0xb0e   :  { %1601 = vrot.lane.b32.xlu1 %v4711_v43, %s4444_s24 }
 0xb60   :  { %v1543_v8 = vpop.xlane.xlu0 %1542 }
 0xb86   :  { %v1534_v48 = vpop.xlane.xlu1 %1533 }
 0xb87   :  { %v1536_v50 = vsub.f32 %v1523_v59, %v1534_v48  ;;  %v1749_v48 = vadd.f32 %v353_v62, %v347_v60 }
 0xb89   :  { %v1539_v1 = vmul.f32 1.442695, %v1536_v50 }
 0xb8a   :  { %v1602_v2 = vpop.permute.xlu1 %1601 }
 0xb8b   :  { %3959 = vpow2.f32 %v1539_v1  ;;  %v1607_v53 = vsel %vm743_vm3, %v1602_v2, 0  ;;  %v3919_v2 = vld [vmem:[#allocation19 + $0x8] sm:$0xff]  }
 0xb8c   :  { %3671 = vmatpush3.bf16.msra.mxu1 %v1607_v53  ;;  %3961 = vrcp.f32 %v1543_v8  ;;  %v3920_v53 = vld [vmem:[#allocation19] sm:$0xff]  }
 0xb8d   :  { %3682 = vmatprep.subr.bf16.mxu1 %v4440_v0 }
 0xb98   :  { %v3960_v57 = vpop.eup %3959 }
 0xb99   :  { %v1544_v7 = vsel %vm623_vm2, %v3960_v57, 0.0  ;;  %v3962_v43 = vpop.eup %3961 }
 0xb9a   :  { %1545 = vadd.xlane.f32.xlu0 %v1544_v7  ;;  %v1548_v23 = vmul.f32 %v3962_v43, %v3958_v47  ;;  %v3917_v47 = vld [vmem:[#allocation22 + $0x8] sm:$0xff]  }
 0xb9c   :  { %v1551_v10 = vpack.c.bf16 %v1548_v23, %v1548_v23 }
 0xbb0   :  { %1553 = vrot.lane.b32.xlu0 %v4709_v42, %s4444_s24 }
 0xc23   :  { %v1546_v9 = vpop.xlane.xlu0 %1545 }
 0xc24   :  { %3963 = vrcp.f32 %v1546_v9 }
 0xc27   :  { %v1554_v30 = vpop.permute.xlu0 %1553 }
 0xc28   :  { %v1559_v34 = vsel %vm743_vm3, %v1554_v30, 0 }
 0xc29   :  { %3665 = vmatpush3.bf16.msra.mxu0 %v1559_v34 }
 0xc2a   :  { %3676 = vmatprep.subr.bf16.mxu0 %v4440_v0 }
 0xc2c   :  { %3667 = vmatmul.mubr.msk.bf16.vlgmr.msra.gmra.mxu0 %vm623_vm2, %v1551_v10  ;;  %v3372_v10 = vld [vmem:[#allocation16] ss:$0 sm:$0xff] }
 0xc2d   :  { %3678 = vmatprep.mubr.msk.bf16.mxu0 %vm4441_vm0, %v4440_v0  ;;  %3677 = vmatpush3.bf16.msra.mxu0 %v1654_v32 }
 0xc2e   :  { %3690 = vmatprep.subr.bf16.mxu0 %v3917_v47 }
 0xc31   :  { %v3964_v42 = vpop.eup %3963 }
 0xc32   :  { %v1550_v11 = vmul.f32 %v3964_v42, %v3960_v57  ;;  %v3921_v57 = vld [vmem:[#allocation25 + $0x8] sm:$0xff]  }
 0xc34   :  { %v1552_v12 = vpack.c.bf16 %v1550_v11, %v1550_v11 }
 0xc36   :  { %3673 = vmatmul.mubr.msk.bf16.vlgmr.msra.gmra.mxu1 %vm623_vm2, %v1552_v12 }
 0xc37   :  { %3686 = vmatprep.mubr.msk.bf16.mxu1 %vm4441_vm0, %v4440_v0  ;;  %3683 = vmatpush3.bf16.msra.mxu1 %v3919_v2 }
 0xc38   :  { %3684 = vmatprep.subr.bf16.mxu1 %v4440_v0 }
 0xc3b   :  { %3685 = vmatpush3.bf16.msra.mxu1 %v3920_v53 }
 0xc3c   :  { %3698 = vmatprep.subr.bf16.mxu1 %v3921_v57 }
 0xcec   :  { %v1595_v14 = vpop.f32.mrf.mxu0 }
 0xcee   :  { %v3668_v15 = vpop.f32.mrf.mxu0 }
 0xcf0   :  { %v1598_v16 = vpop.f32.mrf.mxu0 }
 0xcf2   :  { %v3669_v17 = vpop.f32.mrf.mxu0 }
 0xcf6   :  { %v1643_v18 = vpop.f32.mrf.mxu1 }
 0xcf7   :  { %v1649_v19 = vpack.c.bf16 %v1643_v18, %v1595_v14 }
 0xcf8   :  { %v3674_v20 = vpop.f32.mrf.mxu1 }
 0xcf9   :  { %3679 = vmatmul.mubr.msk.bf16.vlgmr.msra.gmra.mxu0 %vm623_vm2, %v1649_v19 }
 0xcfa   :  { %v1646_v21 = vpop.f32.mrf.mxu1  ;;  %3691 = vmatpush3.bf16.msra.mxu0 %v3917_v47 }
 0xcfb   :  { %3692 = vmatprep.subr.bf16.mxu0 %v3918_v49  ;;  %v3922_v21 = vld [vmem:[#allocation25] sm:$0xff]  }
 0xcfc   :  { %v3675_v22 = vpop.f32.mrf.mxu1 }
 0xcfe   :  { %3693 = vmatpush3.bf16.msra.mxu0 %v3918_v49  ;;  %v3383_v49 = vld [vmem:[%s5145_s10] ss:$0 sm:$0xff] }
 0xcff   :  { %3706 = vmatprep.subr.bf16.mxu0 %v4440_v0 }
 0xdb9   :  { %v1690_v24 = vpop.f32.mrf.mxu0 }
 0xdba   :  { %v1697_v25 = vadd.f32 %v1690_v24, %v1427_v52  ;;  %v345_v52 = vld [vmem:[%s5143_s21 + $0x8] sm:$0xff] }
 0xdbb   :  { %v3680_v26 = vpop.f32.mrf.mxu0  ;;  %v1747_v59 = vadd.f32 %v351_v55, %v345_v52  ;;  %v1888_v19 = vpack.c.bf16 %v345_v52, %v344_v51 }
 0xdbc   :  { %v1699_v27 = vadd.f32 %v1697_v25, %v4657_v3 }
 0xdbd   :  { %v1693_v28 = vpop.f32.mrf.mxu0  ;;  %v1813_v50 = vpack.c.bf16 %v1747_v59, %v1746_v58 }
 0xdbe   :  { %v1698_v29 = vadd.f32 %v1693_v28, %v1428_v56  ;;  %v1701_v31 = vsel %vm443_vm1, %v1699_v27, 0.0  ;;  %v346_v56 = vld [vmem:[%s5143_s21 + $0x10] sm:$0xff] }
 0xdbf   :  { %1702 = vadd.xlane.f32.xlu1 %v1701_v31  ;;  %v3681_v33 = vpop.f32.mrf.mxu0  ;;  %v1748_v63 = vadd.f32 %v352_v61, %v346_v56  ;;  %3694 = vmatprep.mubr.msk.bf16.mxu0 %vm443_vm1, %v1813_v50  ;;  %v1889_v22 = vpack.c.bf16 %v347_v60, %v346_v56 }
 0xdc0   :  { %v1700_v35 = vadd.f32 %v1698_v29, %v4660_v4 }
 0xdc1   :  { %v1814_v1 = vpack.c.bf16 %v1749_v48, %v1748_v63 }
 0xdc2   :  { %v1704_v36 = vsel %vm443_vm1, %v1700_v35, 0.0 }
 0xdc3   :  { %1705 = vadd.xlane.f32.xlu0 %v1704_v36  ;;  %3695 = vmatmul.mubr.msk.bf16.vlgmr.msra.gmra.mxu0 %vm443_vm1, %v1814_v1 }
 0xdc4   :  { %3708 = vmatprep.mubr.msk.bf16.mxu0 %vm4441_vm0, %v4440_v0 }
 0xe48   :  { %v1703_v37 = vpop.xlane.xlu1 %1702 }
 0xe49   :  { %v1708_v38 = vmul.f32 0.03125, %v1703_v37 }
 0xe4b   :  { %v1710_v39 = vsub.f32 %v1699_v27, %v1708_v38  ;;  %v3374_v38 = vld [vmem:[#allocation20] ss:$0 sm:$0xff] }
 0xe4c   :  { %v1706_v40 = vpop.xlane.xlu0 %1705 }
 0xe4d   :  { %v1709_v3 = vmul.f32 0.03125, %v1706_v40  ;;  %v1712_v41 = vmul.f32 %v1710_v39, %v1710_v39 }
 0xe4f   :  { %v1711_v44 = vsub.f32 %v1700_v35, %v1709_v3  ;;  %v1714_v45 = vsel %vm443_vm1, %v1712_v41, 0.0 }
 0xe50   :  { %1715 = vadd.xlane.f32.xlu0 %v1714_v45 }
 0xe51   :  { %v1713_v4 = vmul.f32 %v1711_v44, %v1711_v44 }
 0xe53   :  { %v1717_v46 = vsel %vm443_vm1, %v1713_v4, 0.0 }
 0xe54   :  { %1718 = vadd.xlane.f32.xlu1 %v1717_v46 }
 0xed9   :  { %v1716_v7 = vpop.xlane.xlu0 %1715 }
 0xeda   :  { %v1720_v8 = vmul.f32 0.03125, %v1716_v7 }
 0xedc   :  { %v1722_v43 = vadd.f32 1e-05, %v1720_v8 }
 0xedd   :  { %v1719_v9 = vpop.xlane.xlu1 %1718 }
 0xede   :  { %3965 = vrsqrt.f32 %v1722_v43  ;;  %v1721_v23 = vmul.f32 0.03125, %v1719_v9 }
 0xee0   :  { %v1723_v30 = vadd.f32 1e-05, %v1721_v23 }
 0xee2   :  { %3967 = vrsqrt.f32 %v1723_v30 }
 0xeeb   :  { %v3966_v34 = vpop.eup %3965 }
 0xeec   :  { %v1726_v42 = vmul.f32 %v3966_v34, %v1710_v39 }
 0xeee   :  { %v1734_v11 = vmul.f32 %v3372_v10, %v1726_v42 }
 0xeef   :  { %v3968_v12 = vpop.eup %3967 }
 0xef0   :  { %v1727_v32 = vmul.f32 %v3968_v12, %v1711_v44  ;;  %v4890_v15 = vadd.f32 %v3373_v13, %v1734_v11 }
 0xef2   :  { %v1735_v14 = vmul.f32 %v3372_v10, %v1727_v32  ;;  %v1744_v17 = vadd.f32 %v4890_v15, %v4662_v5  ;;  %v3696_v5 = vpop.f32.mrf.mxu0 }
 0xef4   :  { %v4892_v16 = vadd.f32 %v3373_v13, %v1735_v14  ;;  %v1873_v24 = vpop.f32.mrf.mxu0 }
 0xef6   :  { %v1745_v18 = vadd.f32 %v4892_v16, %v4665_v6  ;;  %v3378_v6 = vld [vmem:[#allocation23] ss:$0 sm:$0xff]  ;;  %v3697_v26 = vpop.f32.mrf.mxu0 }
 0xef7   :  { %v1882_v25 = vadd.f32 %v3696_v5, %v3378_v6  ;;  %v1874_v27 = vadd.f32 %v3378_v6, %v1873_v24  ;;  %v1885_v28 = vadd.f32 %v3697_v26, %v3378_v6  ;;  %v389_v26 = vld [vmem:[#allocation26] sm:$0xf] }
 0xef8   :  { %v1750_v20 = vpack.c.bf16 %v1745_v18, %v1744_v17  ;;  %v1876_v29 = vpop.f32.mrf.mxu0 }
 0xef9   :  { %v4904_v31 = vpack.c.bf16 %v1885_v28, %v1882_v25  ;;  %v1877_v33 = vadd.f32 %v3378_v6, %v1876_v29 }
 0xefa   :  { %3687 = vmatmul.mubr.msk.bf16.vlgmr.msra.gmra.mxu1 %vm443_vm1, %v1750_v20 }
 0xefb   :  { %3699 = vmatpush3.bf16.msra.mxu1 %v3921_v57  ;;  %3702 = vmatprep.mubr.msk.bf16.mxu1 %vm443_vm1, %v1888_v19  ;;  %v4906_v35 = vpack.c.bf16 %v1877_v33, %v1874_v27  ;;  %v2026_v36 = vsel %vm623_vm2, %v4904_v31, 0  ;;  %v2184_v27 = vsel %vm743_vm3, %v389_v26, 0 }
 0xefc   :  { %3700 = vmatprep.subr.bf16.mxu1 %v3922_v21 }
 0xefd   :  { %v1980_v37 = vsel %vm623_vm2, %v4906_v35, 0 }
 0xefe   :  { %3707 = vmatpush3.bf16.xpose.msra.mxu0 %v1980_v37 }
 0xeff   :  { %3701 = vmatpush3.bf16.msra.mxu1 %v3922_v21  ;;  %3718 = vmatprep.subr.bf16.mxu0 %v4440_v0 }
 0xf00   :  { %3712 = vmatprep.subr.bf16.mxu1 %v4440_v0 }
 0xf02   :  { %3703 = vmatmul.mubr.msk.bf16.vlgmr.msra.gmra.mxu1 %vm443_vm1, %v1889_v22 }
 0xf03   :  { %3714 = vmatprep.mubr.msk.bf16.mxu1 %vm4441_vm0, %v4440_v0  ;;  %3713 = vmatpush3.bf16.xpose.msra.mxu1 %v2026_v36 }
 0xf04   :  { %3724 = vmatprep.subr.bf16.mxu1 %v4440_v0 }
 0xfba   :  { %v1806_v39 = vpop.f32.mrf.mxu1 }
 0xfbb   :  { %v1807_v40 = vadd.f32 %v3374_v38, %v1806_v39 }
 0xfbc   :  { %v3688_v3 = vpop.f32.mrf.mxu1 }
 0xfbd   :  { %v4914_v41 = vpack.c.bf16 %v1807_v40, %v1807_v40 }
 0xfbe   :  { %v1809_v44 = vpop.f32.mrf.mxu1 }
 0xfbf   :  { %v1810_v45 = vadd.f32 %v3374_v38, %v1809_v44  ;;  %3709 = vmatmul.mubr.msk.bf16.vlgmr.msra.gmra.mxu0 %vm623_vm2, %v4914_v41 }
 0xfc0   :  { %v3689_v4 = vpop.f32.mrf.mxu1  ;;  %3720 = vmatprep.mubr.msk.bf16.mxu0 %vm4441_vm0, %v4440_v0 }
 0xfc1   :  { %v4920_v46 = vpack.c.bf16 %v1810_v45, %v1810_v45 }
 0xfc2   :  { %v3704_v47 = vpop.f32.mrf.mxu1 }
 0xfc3   :  { %3715 = vmatmul.mubr.msk.bf16.vlgmr.msra.gmra.mxu1 %vm623_vm2, %v4920_v46  ;;  %v1957_v52 = vadd.f32 %v3704_v47, %v3383_v49 }
 0xfc4   :  { %v1948_v51 = vpop.f32.mrf.mxu1  ;;  %3726 = vmatprep.mubr.msk.bf16.mxu1 %vm4441_vm0, %v4440_v0 }
 0xfc5   :  { %v1949_v55 = vadd.f32 %v3383_v49, %v1948_v51 }
 0xfc6   :  { %v3705_v54 = vpop.f32.mrf.mxu1 }
 0xfc7   :  { %v1960_v56 = vadd.f32 %v3705_v54, %v3383_v49 }
 0xfc8   :  { %v1951_v58 = vpop.f32.mrf.mxu1 }
 0xfc9   :  { %v4927_v59 = vpack.c.bf16 %v1960_v56, %v1957_v52  ;;  %v1952_v60 = vadd.f32 %v3383_v49, %v1951_v58 }
 0xfcb   :  { %v4929_v61 = vpack.c.bf16 %v1952_v60, %v1949_v55  ;;  %3725 = vmatpush3.bf16.msra.mxu1 %v4927_v59 }
 0xfcc   :  { %3736 = vmatprep.subr.bf16.mxu1 %v4440_v0 }
 0xfcd   :  { %3719 = vmatpush3.bf16.msra.mxu0 %v4929_v61 }
 0xfce   :  { %3730 = vmatprep.subr.bf16.mxu0 %v4440_v0 }
0x107f   :  { %v2016_v62 = vpop.f32.mrf.mxu0 }
0x1080   :  { %v2069_v63 = vsel %vm2068_vm4, %v2016_v62, -inf }
0x1081   :  { %2070 = vmax.xlane.f32.xlu0 %v2069_v63  ;;  %v3710_v48 = vpop.f32.mrf.mxu0 }
0x1083   :  { %v2019_v50 = vpop.f32.mrf.mxu0  ;;  %v2062_v1 = vpop.f32.mrf.mxu1 }
0x1084   :  { %v2072_v2 = vsel %vm2068_vm4, %v2062_v1, -inf }
0x1085   :  { %2073 = vmax.xlane.f32.xlu1 %v2072_v2  ;;  %v3711_v53 = vpop.f32.mrf.mxu0  ;;  %v3716_v57 = vpop.f32.mrf.mxu1 }
0x1087   :  { %v2065_v7 = vpop.f32.mrf.mxu1 }
0x1089   :  { %v3717_v8 = vpop.f32.mrf.mxu1 }
0x110a   :  { %v2071_v43 = vpop.xlane.xlu0 %2070 }
0x110b   :  { %v2075_v9 = vsub.f32 %v2016_v62, %v2071_v43 }
0x110d   :  { %v2077_v23 = vmul.f32 1.442695, %v2075_v9 }
0x110e   :  { %v2074_v30 = vpop.xlane.xlu1 %2073 }
0x110f   :  { %3969 = vpow2.f32 %v2077_v23  ;;  %v2076_v34 = vsub.f32 %v2062_v1, %v2074_v30 }
0x1111   :  { %v2079_v10 = vmul.f32 1.442695, %v2076_v34 }
0x1113   :  { %3971 = vpow2.f32 %v2079_v10 }
0x111c   :  { %v3970_v42 = vpop.eup %3969 }
0x111d   :  { %v2081_v11 = vsel %vm2068_vm4, %v3970_v42, 0.0 }
0x111e   :  { %2082 = vadd.xlane.f32.xlu0 %v2081_v11 }
0x1120   :  { %v3972_v12 = vpop.eup %3971 }
0x1121   :  { %v2084_v13 = vsel %vm2068_vm4, %v3972_v12, 0.0 }
0x1122   :  { %2085 = vadd.xlane.f32.xlu1 %v2084_v13 }
0x1133   :  { %2285 = vrot.lane.b32.xlu1 %v4904_v31, %s4442_s0 }
0x1134   :  { %2233 = vrot.lane.b32.xlu0 %v4906_v35, %s4442_s0 }
0x1137   :  { %2230 = vrot.lane.b32.xlu1 %v4914_v41, %s4442_s0 }
0x113b   :  { %2282 = vrot.lane.b32.xlu1 %v4920_v46, %s4442_s0 }
0x11a7   :  { %v2083_v32 = vpop.xlane.xlu0 %2082 }
0x11a8   :  { %3973 = vrcp.f32 %v2083_v32 }
0x11ab   :  { %v2086_v14 = vpop.xlane.xlu1 %2085  ;;  %v2234_v22 = vpop.permute.xlu0 %2233 }
0x11ac   :  { %3975 = vrcp.f32 %v2086_v14  ;;  %v2239_v6 = vsel %vm623_vm2, %v2234_v22, 0  ;;  %v390_v22 = vld [vmem:[#allocation26 + $0x4] sm:$0xf] }
0x11af   :  { %v2286_v24 = vpop.permute.xlu1 %2285 }
0x11b0   :  { %v2291_v40 = vsel %vm623_vm2, %v2286_v24, 0 }
0x11b3   :  { %v2231_v25 = vpop.permute.xlu1 %2230 }
0x11b5   :  { %v3974_v17 = vpop.eup %3973 }
0x11b6   :  { %v2088_v18 = vmul.f32 %v3974_v17, %v3970_v42 }
0x11b7   :  { %v2283_v47 = vpop.permute.xlu1 %2282 }
0x11b8   :  { %v2091_v19 = vpack.c.bf16 %v2088_v18, %v2088_v18 }
0x11b9   :  { %v3976_v20 = vpop.eup %3975 }
0x11ba   :  { %3721 = vmatmul.mubr.msk.bf16.vlgmr.msra.gmra.mxu0 %vm2068_vm4, %v2091_v19  ;;  %v2090_v21 = vmul.f32 %v3976_v20, %v3972_v12 }
0x11bb   :  { %3732 = vmatprep.mubr.msk.bf16.mxu0 %vm4441_vm0, %v4440_v0  ;;  %3731 = vmatpush3.bf16.msra.mxu0 %v2184_v27 }
0x11bc   :  { %v2092_v5 = vpack.c.bf16 %v2090_v21, %v2090_v21  ;;  %3742 = vmatprep.subr.bf16.mxu0 %v4440_v0 }
0x11be   :  { %3727 = vmatmul.mubr.msk.bf16.vlgmr.msra.gmra.mxu1 %vm2068_vm4, %v2092_v5  ;;  %v2456_v5 = vsel %vm743_vm3, %v390_v22, 0 }
0x11bf   :  { %3737 = vmatpush3.bf16.xpose.msra.mxu1 %v2239_v6  ;;  %3738 = vmatprep.mubr.msk.bf16.mxu1 %vm4441_vm0, %v4440_v0 }
0x11c0   :  { %3748 = vmatprep.subr.bf16.mxu1 %v4440_v0 }
0x11c6   :  { %3739 = vmatmul.mubr.msk.bf16.vlgmr.msra.gmra.mxu1 %vm623_vm2, %v2231_v25 }
0x11c7   :  { %3750 = vmatprep.mubr.msk.bf16.mxu1 %vm4441_vm0, %v4440_v0 }
0x127a   :  { %v2130_v28 = vpop.f32.mrf.mxu0 }
0x127c   :  { %v3722_v29 = vpop.f32.mrf.mxu0 }
0x127e   :  { %v2133_v33 = vpop.f32.mrf.mxu0  ;;  %v2173_v36 = vpop.f32.mrf.mxu1 }
0x127f   :  { %v2179_v37 = vpack.c.bf16 %v2173_v36, %v2130_v28 }
0x1280   :  { %v3723_v38 = vpop.f32.mrf.mxu0  ;;  %v3728_v39 = vpop.f32.mrf.mxu1 }
0x1281   :  { %3733 = vmatmul.mubr.msk.bf16.vlgmr.msra.gmra.mxu0 %vm623_vm2, %v2179_v37 }
0x1282   :  { %3743 = vmatpush3.bf16.xpose.msra.mxu0 %v2291_v40  ;;  %v2176_v3 = vpop.f32.mrf.mxu1  ;;  %3744 = vmatprep.mubr.msk.bf16.mxu0 %vm4441_vm0, %v4440_v0 }
0x1283   :  { %3754 = vmatprep.subr.bf16.mxu0 %v4440_v0 }
0x1284   :  { %v3729_v44 = vpop.f32.mrf.mxu1 }
0x1286   :  { %v2275_v45 = vpop.f32.mrf.mxu1 }
0x1287   :  { %v2333_v4 = vsel %vm2068_vm4, %v2275_v45, -inf }
0x1288   :  { %2334 = vmax.xlane.f32.xlu0 %v2333_v4  ;;  %v3740_v49 = vpop.f32.mrf.mxu1 }
0x1289   :  { %3745 = vmatmul.mubr.msk.bf16.vlgmr.msra.gmra.mxu0 %vm623_vm2, %v2283_v47 }
0x128a   :  { %v2278_v51 = vpop.f32.mrf.mxu1  ;;  %3756 = vmatprep.mubr.msk.bf16.mxu0 %vm4441_vm0, %v4440_v0 }
0x128c   :  { %v3741_v52 = vpop.f32.mrf.mxu1 }
0x1311   :  { %v2335_v54 = vpop.xlane.xlu0 %2334 }
0x1312   :  { %v2339_v55 = vsub.f32 %v2275_v45, %v2335_v54 }
0x1314   :  { %v2341_v56 = vmul.f32 1.442695, %v2339_v55  ;;  %v3388_v55 = vld [vmem:[%s5146_s25] ss:$0 sm:$0xff] }
0x1316   :  { %3977 = vpow2.f32 %v2341_v56 }
0x1323   :  { %v3978_v58 = vpop.eup %3977 }
0x1324   :  { %v2345_v60 = vsel %vm2068_vm4, %v3978_v58, 0.0 }
0x1325   :  { %2346 = vadd.xlane.f32.xlu0 %v2345_v60 }
0x1341   :  { %v4970_v62 = vpop.f32.mrf.mxu0 }
0x1342   :  { %v2227_v56 = vadd.f32 %v3388_v55, %v4970_v62 }
0x1343   :  { %v3734_v63 = vpop.f32.mrf.mxu0 }
0x1345   :  { %v4972_v48 = vpop.f32.mrf.mxu0 }
0x1347   :  { %v3735_v50 = vpop.f32.mrf.mxu0 }
0x1348   :  { %v2228_v50 = vadd.f32 %v3388_v55, %v4972_v48 }
0x1349   :  { %v2327_v1 = vpop.f32.mrf.mxu0 }
0x134a   :  { %v2336_v2 = vsel %vm2068_vm4, %v2327_v1, -inf }
0x134b   :  { %2337 = vmax.xlane.f32.xlu1 %v2336_v2  ;;  %v3746_v53 = vpop.f32.mrf.mxu0 }
0x134d   :  { %v2330_v57 = vpop.f32.mrf.mxu0 }
0x134f   :  { %v3747_v7 = vpop.f32.mrf.mxu0 }
0x135c   :  { %2405 = vrot.lane.b32.xlu1 %v4927_v59, %s4442_s0 }
0x1360   :  { %2503 = vrot.lane.b32.xlu1 %v4906_v35, %s4443_s7 }
0x1364   :  { %2553 = vrot.lane.b32.xlu1 %v4904_v31, %s4443_s7 }
0x1368   :  { %2551 = vrot.lane.b32.xlu1 %v4920_v46, %s4443_s7 }
0x13ae   :  { %v2347_v10 = vpop.xlane.xlu0 %2346 }
0x13d4   :  { %v2338_v8 = vpop.xlane.xlu1 %2337 }
0x13d5   :  { %v2340_v43 = vsub.f32 %v2327_v1, %v2338_v8 }
0x13d7   :  { %v2343_v9 = vmul.f32 1.442695, %v2340_v43 }
0x13d8   :  { %v2406_v23 = vpop.permute.xlu1 %2405 }
0x13d9   :  { %3979 = vpow2.f32 %v2343_v9  ;;  %3755 = vmatpush3.bf16.msra.mxu0 %v2406_v23 }
0x13da   :  { %3766 = vmatprep.subr.bf16.mxu0 %v4440_v0  ;;  %3981 = vrcp.f32 %v2347_v10 }
0x13dc   :  { %v2504_v18 = vpop.permute.xlu1 %2503 }
0x13dd   :  { %v2509_v20 = vsel %vm623_vm2, %v2504_v18, 0 }
0x13e0   :  { %v2554_v27 = vpop.permute.xlu1 %2553 }
0x13e1   :  { %v2559_v36 = vsel %vm623_vm2, %v2554_v27, 0 }
0x13e4   :  { %v2552_v3 = vpop.permute.xlu1 %2551 }
0x13e6   :  { %v3980_v30 = vpop.eup %3979 }
0x13e7   :  { %v2348_v34 = vsel %vm2068_vm4, %v3980_v30, 0.0  ;;  %v3982_v42 = vpop.eup %3981 }
0x13e8   :  { %2349 = vadd.xlane.f32.xlu0 %v2348_v34  ;;  %v2352_v12 = vmul.f32 %v3982_v42, %v3978_v58 }
0x13ea   :  { %v2355_v32 = vpack.c.bf16 %v2352_v12, %v2352_v12 }
0x13fe   :  { %2358 = vrot.lane.b32.xlu0 %v4929_v61, %s4442_s0 }
0x1402   :  { %2501 = vrot.lane.b32.xlu0 %v4914_v41, %s4443_s7 }
0x1471   :  { %v2350_v11 = vpop.xlane.xlu0 %2349 }
0x1472   :  { %3983 = vrcp.f32 %v2350_v11 }
0x1475   :  { %v2359_v13 = vpop.permute.xlu0 %2358 }
0x1476   :  { %3749 = vmatpush3.bf16.msra.mxu1 %v2359_v13 }
0x1477   :  { %3760 = vmatprep.subr.bf16.mxu1 %v4440_v0 }
0x1479   :  { %3751 = vmatmul.mubr.msk.bf16.vlgmr.msra.gmra.mxu1 %vm2068_vm4, %v2355_v32  ;;  %v2502_v21 = vpop.permute.xlu0 %2501 }
0x147a   :  { %3762 = vmatprep.mubr.msk.bf16.mxu1 %vm4441_vm0, %v4440_v0  ;;  %3761 = vmatpush3.bf16.msra.mxu1 %v2456_v5 }
0x147b   :  { %3772 = vmatprep.subr.bf16.mxu1 %v4440_v0 }
0x147f   :  { %v3984_v14 = vpop.eup %3983 }
0x1480   :  { %v2354_v17 = vmul.f32 %v3984_v14, %v3980_v30 }
0x1482   :  { %v2356_v19 = vpack.c.bf16 %v2354_v17, %v2354_v17 }
0x1484   :  { %3757 = vmatmul.mubr.msk.bf16.vlgmr.msra.gmra.mxu0 %vm2068_vm4, %v2356_v19  ;;  %v391_v19 = vld [vmem:[#allocation26 + $0x8] sm:$0xf] }
0x1485   :  { %3767 = vmatpush3.bf16.xpose.msra.mxu0 %v2509_v20  ;;  %3768 = vmatprep.mubr.msk.bf16.mxu0 %vm4441_vm0, %v4440_v0  ;;  %v2722_v20 = vsel %vm743_vm3, %v391_v19, 0 }
0x1486   :  { %3778 = vmatprep.subr.bf16.mxu0 %v4440_v0 }
0x148c   :  { %3769 = vmatmul.mubr.msk.bf16.vlgmr.msra.gmra.mxu0 %vm623_vm2, %v2502_v21 }
0x148d   :  { %3780 = vmatprep.mubr.msk.bf16.mxu0 %vm4441_vm0, %v4440_v0 }
0x1539   :  { %v2398_v6 = vpop.f32.mrf.mxu1 }
0x153b   :  { %v3752_v24 = vpop.f32.mrf.mxu1 }
0x153d   :  { %v2401_v25 = vpop.f32.mrf.mxu1 }
0x153f   :  { %v3753_v26 = vpop.f32.mrf.mxu1 }
0x1544   :  { %v2445_v28 = vpop.f32.mrf.mxu0 }
0x1545   :  { %v2451_v29 = vpack.c.bf16 %v2445_v28, %v2398_v6 }
0x1546   :  { %v3758_v33 = vpop.f32.mrf.mxu0 }
0x1547   :  { %3763 = vmatmul.mubr.msk.bf16.vlgmr.msra.gmra.mxu1 %vm623_vm2, %v2451_v29 }
0x1548   :  { %3773 = vmatpush3.bf16.xpose.msra.mxu1 %v2559_v36  ;;  %v2448_v37 = vpop.f32.mrf.mxu0  ;;  %3774 = vmatprep.mubr.msk.bf16.mxu1 %vm4441_vm0, %v4440_v0 }
0x1549   :  { %3784 = vmatprep.subr.bf16.mxu1 %v4440_v0 }
0x154a   :  { %v3759_v38 = vpop.f32.mrf.mxu0 }
0x154c   :  { %v2545_v39 = vpop.f32.mrf.mxu0 }
0x154d   :  { %v2601_v40 = vsel %vm2068_vm4, %v2545_v39, -inf }
0x154e   :  { %2602 = vmax.xlane.f32.xlu0 %v2601_v40  ;;  %v3770_v44 = vpop.f32.mrf.mxu0 }
0x154f   :  { %3775 = vmatmul.mubr.msk.bf16.vlgmr.msra.gmra.mxu1 %vm623_vm2, %v2552_v3 }
0x1550   :  { %v2548_v45 = vpop.f32.mrf.mxu0  ;;  %3786 = vmatprep.mubr.msk.bf16.mxu1 %vm4441_vm0, %v4440_v0 }
0x1552   :  { %v3771_v4 = vpop.f32.mrf.mxu0 }
0x15d7   :  { %v2603_v47 = vpop.xlane.xlu0 %2602 }
0x15d8   :  { %v2607_v49 = vsub.f32 %v2545_v39, %v2603_v47 }
0x15da   :  { %v2609_v51 = vmul.f32 1.442695, %v2607_v49 }
0x15dc   :  { %3985 = vpow2.f32 %v2609_v51 }
0x15e9   :  { %v3986_v52 = vpop.eup %3985 }
0x15ea   :  { %v2613_v54 = vsel %vm2068_vm4, %v3986_v52, 0.0 }
0x15eb   :  { %2614 = vadd.xlane.f32.xlu0 %v2613_v54 }
0x1607   :  { %v2492_v58 = vpop.f32.mrf.mxu1 }
0x1608   :  { %v5015_v60 = vadd.f32 %v2492_v58, %v2227_v56 }
0x1609   :  { %v3764_v63 = vpop.f32.mrf.mxu1 }
0x160b   :  { %v2495_v1 = vpop.f32.mrf.mxu1 }
0x160c   :  { %v5018_v2 = vadd.f32 %v2495_v1, %v2228_v50 }
0x160d   :  { %v3765_v53 = vpop.f32.mrf.mxu1 }
0x160f   :  { %v2595_v57 = vpop.f32.mrf.mxu1 }
0x1610   :  { %v2604_v7 = vsel %vm2068_vm4, %v2595_v57, -inf }
0x1611   :  { %2605 = vmax.xlane.f32.xlu1 %v2604_v7  ;;  %v3776_v8 = vpop.f32.mrf.mxu1 }
0x1613   :  { %v2598_v43 = vpop.f32.mrf.mxu1 }
0x1615   :  { %v3777_v9 = vpop.f32.mrf.mxu1 }
0x1622   :  { %2671 = vrot.lane.b32.xlu1 %v4927_v59, %s4443_s7 }
0x1626   :  { %2769 = vrot.lane.b32.xlu1 %v4906_v35, %s4444_s24 }
0x162a   :  { %2819 = vrot.lane.b32.xlu1 %v4904_v31, %s4444_s24 }
0x162e   :  { %2817 = vrot.lane.b32.xlu1 %v4920_v46, %s4444_s24 }
0x1674   :  { %v2615_v31 = vpop.xlane.xlu0 %2614 }
0x169a   :  { %v2606_v62 = vpop.xlane.xlu1 %2605 }
0x169b   :  { %v2608_v48 = vsub.f32 %v2595_v57, %v2606_v62 }
0x169d   :  { %v2611_v23 = vmul.f32 1.442695, %v2608_v48 }
0x169e   :  { %v2672_v30 = vpop.permute.xlu1 %2671 }
0x169f   :  { %3987 = vpow2.f32 %v2611_v23  ;;  %3785 = vmatpush3.bf16.msra.mxu1 %v2672_v30 }
0x16a0   :  { %3796 = vmatprep.subr.bf16.mxu1 %v4440_v0  ;;  %3989 = vrcp.f32 %v2615_v31 }
0x16a2   :  { %v2770_v14 = vpop.permute.xlu1 %2769 }
0x16a3   :  { %v2775_v17 = vsel %vm623_vm2, %v2770_v14, 0 }
0x16a6   :  { %v2820_v24 = vpop.permute.xlu1 %2819 }
0x16a7   :  { %v2825_v28 = vsel %vm623_vm2, %v2820_v24, 0 }
0x16aa   :  { %v2818_v38 = vpop.permute.xlu1 %2817 }
0x16ac   :  { %v3988_v34 = vpop.eup %3987 }
0x16ad   :  { %v2616_v10 = vsel %vm2068_vm4, %v3988_v34, 0.0  ;;  %v3990_v35 = vpop.eup %3989 }
0x16ae   :  { %2617 = vadd.xlane.f32.xlu0 %v2616_v10  ;;  %v2620_v42 = vmul.f32 %v3990_v35, %v3986_v52 }
0x16b0   :  { %v2623_v12 = vpack.c.bf16 %v2620_v42, %v2620_v42 }
0x16c4   :  { %2625 = vrot.lane.b32.xlu0 %v4929_v61, %s4443_s7 }
0x16c8   :  { %2767 = vrot.lane.b32.xlu0 %v4914_v41, %s4444_s24 }
0x1737   :  { %v2618_v46 = vpop.xlane.xlu0 %2617 }
0x1738   :  { %3991 = vrcp.f32 %v2618_v46 }
0x173b   :  { %v2626_v11 = vpop.permute.xlu0 %2625 }
0x173c   :  { %3779 = vmatpush3.bf16.msra.mxu0 %v2626_v11 }
0x173d   :  { %3790 = vmatprep.subr.bf16.mxu0 %v4440_v0 }
0x173f   :  { %3781 = vmatmul.mubr.msk.bf16.vlgmr.msra.gmra.mxu0 %vm2068_vm4, %v2623_v12  ;;  %v2768_v18 = vpop.permute.xlu0 %2767 }
0x1740   :  { %3792 = vmatprep.mubr.msk.bf16.mxu0 %vm4441_vm0, %v4440_v0  ;;  %3791 = vmatpush3.bf16.msra.mxu0 %v2722_v20 }
0x1741   :  { %3802 = vmatprep.subr.bf16.mxu0 %v4440_v0 }
0x1745   :  { %v3992_v13 = vpop.eup %3991 }
0x1746   :  { %v2622_v32 = vmul.f32 %v3992_v13, %v3988_v34 }
0x1748   :  { %v2624_v41 = vpack.c.bf16 %v2622_v32, %v2622_v32 }
0x174a   :  { %3787 = vmatmul.mubr.msk.bf16.vlgmr.msra.gmra.mxu1 %vm2068_vm4, %v2624_v41 }
0x174b   :  { %3797 = vmatpush3.bf16.xpose.msra.mxu1 %v2775_v17  ;;  %3798 = vmatprep.mubr.msk.bf16.mxu1 %vm4441_vm0, %v4440_v0 }
0x174c   :  { %3808 = vmatprep.subr.bf16.mxu1 %v4440_v0 }
0x1752   :  { %3799 = vmatmul.mubr.msk.bf16.vlgmr.msra.gmra.mxu1 %vm623_vm2, %v2768_v18 }
0x1753   :  { %3810 = vmatprep.mubr.msk.bf16.mxu1 %vm4441_vm0, %v4440_v0 }
0x17ff   :  { %v2665_v21 = vpop.f32.mrf.mxu0 }
0x1801   :  { %v3782_v22 = vpop.f32.mrf.mxu0 }
0x1803   :  { %v2668_v5 = vpop.f32.mrf.mxu0 }
0x1805   :  { %v3783_v6 = vpop.f32.mrf.mxu0 }
0x180a   :  { %v2711_v25 = vpop.f32.mrf.mxu1 }
0x180b   :  { %v2717_v26 = vpack.c.bf16 %v2711_v25, %v2665_v21 }
0x180c   :  { %v3788_v27 = vpop.f32.mrf.mxu1 }
0x180d   :  { %3793 = vmatmul.mubr.msk.bf16.vlgmr.msra.gmra.mxu0 %vm623_vm2, %v2717_v26 }
0x180e   :  { %3803 = vmatpush3.bf16.xpose.msra.mxu0 %v2825_v28  ;;  %v2714_v29 = vpop.f32.mrf.mxu1  ;;  %3804 = vmatprep.mubr.msk.bf16.mxu0 %vm4441_vm0, %v4440_v0 }
0x180f   :  { %3814 = vmatprep.subr.bf16.mxu0 %v4440_v0 }
0x1810   :  { %v3789_v33 = vpop.f32.mrf.mxu1 }
0x1812   :  { %v2811_v36 = vpop.f32.mrf.mxu1 }
0x1813   :  { %v2867_v37 = vsel %vm2068_vm4, %v2811_v36, -inf }
0x1814   :  { %2868 = vmax.xlane.f32.xlu0 %v2867_v37  ;;  %v3800_v39 = vpop.f32.mrf.mxu1 }
0x1815   :  { %3805 = vmatmul.mubr.msk.bf16.vlgmr.msra.gmra.mxu0 %vm623_vm2, %v2818_v38 }
0x1816   :  { %v2814_v40 = vpop.f32.mrf.mxu1  ;;  %3816 = vmatprep.mubr.msk.bf16.mxu0 %vm4441_vm0, %v4440_v0 }
0x1818   :  { %v3801_v3 = vpop.f32.mrf.mxu1 }
0x1819   :  { %v3923_v3 = vld [vmem:[#allocation28 + $0x8] sm:$0xff]  }
0x189d   :  { %v2869_v44 = vpop.xlane.xlu0 %2868 }
0x189e   :  { %v2873_v45 = vsub.f32 %v2811_v36, %v2869_v44  ;;  %v3924_v44 = vld [vmem:[#allocation28] sm:$0xff]  }
0x18a0   :  { %v2875_v4 = vmul.f32 1.442695, %v2873_v45  ;;  %v3925_v45 = vld [vmem:[%s5147_s11 + $0x38] sm:$0xff]  }
0x18a2   :  { %3993 = vpow2.f32 %v2875_v4  ;;  %v3926_v4 = vld [vmem:[%s5147_s11 + $0x30] sm:$0xff]  }
0x18af   :  { %v3994_v47 = vpop.eup %3993 }
0x18b0   :  { %v2879_v49 = vsel %vm2068_vm4, %v3994_v47, 0.0 }
0x18b1   :  { %2880 = vadd.xlane.f32.xlu0 %v2879_v49  ;;  %v3928_v49 = vld [vmem:[%s5147_s11 + $0x20] sm:$0xff]  }
0x18cd   :  { %v2758_v51 = vpop.f32.mrf.mxu0 }
0x18ce   :  { %v2765_v52 = vadd.f32 %v2758_v51, %v5015_v60  ;;  %v3929_v51 = vld [vmem:[%s5147_s11 + $0x18] sm:$0xff]  }
0x18cf   :  { %v3794_v54 = vpop.f32.mrf.mxu0 }
0x18d1   :  { %v2761_v55 = vpop.f32.mrf.mxu0 }
0x18d2   :  { %v2766_v56 = vadd.f32 %v2761_v55, %v5018_v2 }
0x18d3   :  { %v3795_v58 = vpop.f32.mrf.mxu0 }
0x18d5   :  { %v2861_v63 = vpop.f32.mrf.mxu0 }
0x18d6   :  { %v2870_v50 = vsel %vm2068_vm4, %v2861_v63, -inf }
0x18d7   :  { %2871 = vmax.xlane.f32.xlu1 %v2870_v50  ;;  %v3806_v1 = vpop.f32.mrf.mxu0 }
0x18d9   :  { %v2864_v53 = vpop.f32.mrf.mxu0 }
0x18da   :  { %v3409_v53 = vld [vmem:[%s5148_s3] ss:$0 sm:$0xff] }
0x18db   :  { %v3807_v57 = vpop.f32.mrf.mxu0 }
0x18e8   :  { %2937 = vrot.lane.b32.xlu1 %v4927_v59, %s4444_s24 }
0x193a   :  { %v2881_v62 = vpop.xlane.xlu0 %2880 }
0x1960   :  { %v2872_v7 = vpop.xlane.xlu1 %2871 }
0x1961   :  { %v2874_v8 = vsub.f32 %v2861_v63, %v2872_v7 }
0x1963   :  { %v2877_v43 = vmul.f32 1.442695, %v2874_v8 }
0x1964   :  { %v2938_v9 = vpop.permute.xlu1 %2937 }
0x1965   :  { %3995 = vpow2.f32 %v2877_v43  ;;  %3815 = vmatpush3.bf16.msra.mxu0 %v2938_v9  ;;  %v3410_v43 = vld [vmem:[%s5149_s15] ss:$0 sm:$0xff] }
0x1966   :  { %3826 = vmatprep.subr.bf16.mxu0 %v4440_v0  ;;  %3997 = vrcp.f32 %v2881_v62 }
0x1972   :  { %v3996_v60 = vpop.eup %3995 }
0x1973   :  { %v2882_v2 = vsel %vm2068_vm4, %v3996_v60, 0.0  ;;  %v3998_v48 = vpop.eup %3997 }
0x1974   :  { %2883 = vadd.xlane.f32.xlu0 %v2882_v2  ;;  %v2886_v59 = vmul.f32 %v3998_v48, %v3994_v47  ;;  %v3927_v47 = vld [vmem:[%s5147_s11 + $0x28] sm:$0xff]   ;;  %v3930_v48 = vld [vmem:[%s5147_s11 + $0x10] sm:$0xff]  }
0x1976   :  { %v2889_v34 = vpack.c.bf16 %v2886_v59, %v2886_v59  ;;  %v3932_v59 = vld [vmem:[%s5147_s11] sm:$0xff]  }
0x198a   :  { %2891 = vrot.lane.b32.xlu0 %v4929_v61, %s4444_s24  ;;  %v392_v61 = vld [vmem:[#allocation26 + $0xc] sm:$0xf] }
0x198b   :  { %v2988_v46 = vsel %vm743_vm3, %v392_v61, 0 }
0x19fd   :  { %v2884_v23 = vpop.xlane.xlu0 %2883 }
0x19fe   :  { %3999 = vrcp.f32 %v2884_v23  ;;  %v3931_v23 = vld [vmem:[%s5147_s11 + $0x8] sm:$0xff]  }
0x1a01   :  { %v2892_v30 = vpop.permute.xlu0 %2891 }
0x1a02   :  { %3809 = vmatpush3.bf16.msra.mxu1 %v2892_v30  ;;  %v3411_v30 = vld [vmem:[%s5150_s16] ss:$0 sm:$0xff] }
0x1a03   :  { %3820 = vmatprep.subr.bf16.mxu1 %v4440_v0 }
0x1a05   :  { %3811 = vmatmul.mubr.msk.bf16.vlgmr.msra.gmra.mxu1 %vm2068_vm4, %v2889_v34 }
0x1a06   :  { %3822 = vmatprep.mubr.msk.bf16.mxu1 %vm4441_vm0, %v4440_v0  ;;  %3821 = vmatpush3.bf16.msra.mxu1 %v2988_v46 }
0x1a07   :  { %3834 = vmatprep.subr.bf16.mxu1 %v4440_v0 }
0x1a0b   :  { %v4000_v10 = vpop.eup %3999 }
0x1a0c   :  { %v2888_v31 = vmul.f32 %v4000_v10, %v3996_v60 }
0x1a0e   :  { %v2890_v35 = vpack.c.bf16 %v2888_v31, %v2888_v31 }
0x1a10   :  { %3817 = vmatmul.mubr.msk.bf16.vlgmr.msra.gmra.mxu0 %vm2068_vm4, %v2890_v35 }
0x1a11   :  { %3830 = vmatprep.mubr.msk.bf16.mxu0 %vm4441_vm0, %v4440_v0  ;;  %3827 = vmatpush3.bf16.msra.mxu0 %v3923_v3 }
0x1a12   :  { %3828 = vmatprep.subr.bf16.mxu0 %v4440_v0 }
0x1a15   :  { %3829 = vmatpush3.bf16.msra.mxu0 %v3924_v44  ;;  %v3424_v44 = vld [vmem:[%s4594_s27] ss:$0 sm:$0xff] }
0x1ac5   :  { %v2931_v42 = vpop.f32.mrf.mxu1 }
0x1ac7   :  { %v3812_v11 = vpop.f32.mrf.mxu1 }
0x1ac9   :  { %v2934_v12 = vpop.f32.mrf.mxu1 }
0x1acb   :  { %v3813_v13 = vpop.f32.mrf.mxu1 }
0x1acc   :  { %v3415_v13 = vld [vmem:[%s4589_s9] ss:$0 sm:$0xff]  ;;  %s4445_s9 = smov [#allocation29]  }
0x1acd   :  { %s3289_s20 = sshll.u32 %s4445_s9, 4  ;;  %s3290_s20 = int_to_ptr.vmem [resolvable:$true] %s3289_s20 }
0x1ace   :  { %s4349_s18 = scalar_lea.vmem %s3290_s20, 256  ;;  %p4354_p2 = scmp.lt.s32.totalorder %s3290_s20, %s3290_s20 }
0x1acf   :  { %p4350_p1 = scmp.ne.s32.totalorder %s3290_s20, %s4349_s18  ;;  %p4355_p3 = scmp.lt.s32.totalorder %s4349_s18, %s4349_s18 }
0x1ad0   :  { %v2977_v32 = vpop.f32.mrf.mxu0 }
0x1ad1   :  { %v2983_v14 = vpack.c.bf16 %v2977_v32, %v2931_v42  ;;  %p4356_p4 = por %p4355_p3, %p4354_p2 }
0x1ad2   :  { %v3818_v41 = vpop.f32.mrf.mxu0 }
0x1ad3   :  { %3823 = vmatmul.mubr.msk.bf16.vlgmr.msra.gmra.mxu1 %vm623_vm2, %v2983_v14  ;;  %p4357_p5 = pnand %p4356_p4, %p4350_p1 }
0x1ad4   :  { %v2980_v17 = vpop.f32.mrf.mxu0  ;;  %3850 = vmatprep.mubr.msk.bf16.mxu1 %vm4441_vm0, %v4440_v0  ;;  %3835 = vmatpush3.bf16.msra.mxu1 %v3925_v45 }
0x1ad5   :  { %3836 = vmatprep.subr.bf16.mxu1 %v4440_v0 }
0x1ad6   :  { %v3819_v18 = vpop.f32.mrf.mxu0 }
0x1ad8   :  { %3837 = vmatpush3.bf16.msra.mxu1 %v3926_v4  ;;  %v3425_v4 = vld [vmem:[%s4599_s5] ss:$0 sm:$0xff] }
0x1ad9   :  { %3838 = vmatprep.subr.bf16.mxu1 %v4440_v0 }
0x1adc   :  { %3839 = vmatpush3.bf16.msra.mxu1 %v3927_v47 }
0x1add   :  { %3840 = vmatprep.subr.bf16.mxu1 %v4440_v0 }
0x1ae0   :  { %3841 = vmatpush3.bf16.msra.mxu1 %v3928_v49 }
0x1ae1   :  { %3842 = vmatprep.subr.bf16.mxu1 %v4440_v0 }
0x1ae4   :  { %3843 = vmatpush3.bf16.msra.mxu1 %v3929_v51 }
0x1ae5   :  { %3844 = vmatprep.subr.bf16.mxu1 %v4440_v0 }
0x1ae8   :  { %3845 = vmatpush3.bf16.msra.mxu1 %v3930_v48 }
0x1ae9   :  { %3846 = vmatprep.subr.bf16.mxu1 %v4440_v0 }
0x1aec   :  { %3847 = vmatpush3.bf16.msra.mxu1 %v3931_v23 }
0x1aed   :  { %3848 = vmatprep.subr.bf16.mxu1 %v4440_v0 }
0x1af0   :  { %3849 = vmatpush3.bf16.msra.mxu1 %v3932_v59 }
0x1b93   :  { %v3024_v19 = vpop.f32.mrf.mxu1 }
0x1b94   :  { %v3031_v20 = vadd.f32 %v3024_v19, %v2765_v52 }
0x1b95   :  { %v3824_v21 = vpop.f32.mrf.mxu1 }
0x1b96   :  { %v3033_v22 = vadd.f32 %v3031_v20, %v4890_v15 }
0x1b97   :  { %v3027_v5 = vpop.f32.mrf.mxu1 }
0x1b98   :  { %v3032_v6 = vadd.f32 %v3027_v5, %v2766_v56  ;;  %v3035_v24 = vsel %vm443_vm1, %v3033_v22, 0.0 }
0x1b99   :  { %3036 = vadd.xlane.f32.xlu1 %v3035_v24  ;;  %v3825_v25 = vpop.f32.mrf.mxu1 }
0x1b9a   :  { %v3034_v26 = vadd.f32 %v3032_v6, %v4892_v16 }
0x1b9c   :  { %v3038_v27 = vsel %vm443_vm1, %v3034_v26, 0.0 }
0x1b9d   :  { %3039 = vadd.xlane.f32.xlu0 %v3038_v27 }
0x1c22   :  { %v3037_v28 = vpop.xlane.xlu1 %3036 }
0x1c23   :  { %v3041_v29 = vmul.f32 0.03125, %v3037_v28 }
0x1c25   :  { %v3043_v33 = vsub.f32 %v3033_v22, %v3041_v29 }
0x1c26   :  { %v3040_v36 = vpop.xlane.xlu0 %3039 }
0x1c27   :  { %v3042_v37 = vmul.f32 0.03125, %v3040_v36  ;;  %v3045_v38 = vmul.f32 %v3043_v33, %v3043_v33 }
0x1c29   :  { %v3044_v15 = vsub.f32 %v3034_v26, %v3042_v37  ;;  %v3047_v39 = vsel %vm443_vm1, %v3045_v38, 0.0 }
0x1c2a   :  { %3048 = vadd.xlane.f32.xlu0 %v3047_v39 }
0x1c2b   :  { %v3046_v40 = vmul.f32 %v3044_v15, %v3044_v15 }
0x1c2d   :  { %v3050_v16 = vsel %vm443_vm1, %v3046_v40, 0.0 }
0x1c2e   :  { %3051 = vadd.xlane.f32.xlu1 %v3050_v16 }
0x1cb3   :  { %v3049_v52 = vpop.xlane.xlu0 %3048 }
0x1cb4   :  { %v3053_v54 = vmul.f32 0.03125, %v3049_v52 }
0x1cb6   :  { %v3055_v55 = vadd.f32 1e-05, %v3053_v54 }
0x1cb7   :  { %v3052_v56 = vpop.xlane.xlu1 %3051 }
0x1cb8   :  { %4001 = vrsqrt.f32 %v3055_v55  ;;  %v3054_v58 = vmul.f32 0.03125, %v3052_v56 }
0x1cba   :  { %v3056_v63 = vadd.f32 1e-05, %v3054_v58 }
0x1cbc   :  { %4003 = vrsqrt.f32 %v3056_v63 }
0x1cc5   :  { %v4002_v50 = vpop.eup %4001 }
0x1cc6   :  { %v3059_v1 = vmul.f32 %v4002_v50, %v3043_v33 }
0x1cc8   :  { %v3067_v8 = vmul.f32 %v3409_v53, %v3059_v1 }
0x1cc9   :  { %v4004_v57 = vpop.eup %4003 }
0x1cca   :  { %v3060_v7 = vmul.f32 %v4004_v57, %v3044_v15  ;;  %v3075_v60 = vadd.f32 %v3410_v43, %v3067_v8 }
0x1ccc   :  { %v3068_v9 = vmul.f32 %v3409_v53, %v3060_v7 }
0x1cce   :  { %v3076_v2 = vadd.f32 %v3410_v43, %v3068_v9 }
0x1cd0   :  { %v3077_v62 = vpack.c.bf16 %v3076_v2, %v3075_v60 }
0x1cd2   :  { %3831 = vmatmul.mubr.msk.bf16.vlgmr.msra.gmra.mxu0 %vm443_vm1, %v3077_v62 }
0x1d92   :  { %v3133_v34 = vpop.f32.mrf.mxu0 }
0x1d93   :  { %v3134_v31 = vadd.f32 %v3411_v30, %v3133_v34 }
0x1d94   :  { %v3832_v10 = vpop.f32.mrf.mxu0 }
0x1d95   :  { %v3140_v42 = vmax.f32 %v3134_v31, 0.0 }
0x1d96   :  { %v3136_v35 = vpop.f32.mrf.mxu0 }
0x1d97   :  { %v3137_v61 = vadd.f32 %v3411_v30, %v3136_v35 }
0x1d98   :  { %v3833_v46 = vpop.f32.mrf.mxu0 }
0x1d99   :  { %v3141_v11 = vmax.f32 %v3137_v61, 0.0 }
0x1d9b   :  { %v3142_v12 = vpack.c.bf16 %v3141_v11, %v3140_v42 }
0x1d9d   :  { %3851 = vmatmul.mubr.bf16.vlgmr.msra.gmra.mxu1 %v3142_v12 }
0x1e5d   :  { %v3231_v32 = vpop.f32.mrf.mxu1 }
0x1e5e   :  { %v3232_v14 = vadd.f32 %v3415_v13, %v3231_v32 }
0x1e5f   :  { %v3852_v41 = vpop.f32.mrf.mxu1 }
0x1e60   :  { %v3238_v17 = vadd.f32 %v3232_v14, %v3075_v60 }
0x1e61   :  { %v3234_v18 = vpop.f32.mrf.mxu1 }
0x1e62   :  { %v3235_v0 = vadd.f32 %v3415_v13, %v3234_v18  ;;  %v3240_v19 = vsel %vm443_vm1, %v3238_v17, 0.0 }
0x1e63   :  { %3241 = vadd.xlane.f32.xlu0 %v3240_v19  ;;  %v3853_v20 = vpop.f32.mrf.mxu1 }
0x1e64   :  { %v3239_v21 = vadd.f32 %v3235_v0, %v3076_v2 }
0x1e66   :  { %v3243_v22 = vsel %vm443_vm1, %v3239_v21, 0.0 }
0x1e67   :  { %3244 = vadd.xlane.f32.xlu1 %v3243_v22 }
0x1eec   :  { %v3242_v5 = vpop.xlane.xlu0 %3241 }
0x1eed   :  { %v3246_v6 = vmul.f32 0.03125, %v3242_v5 }
0x1eef   :  { %v3248_v24 = vsub.f32 %v3238_v17, %v3246_v6 }
0x1ef0   :  { %v3245_v25 = vpop.xlane.xlu1 %3244 }
0x1ef1   :  { %v3247_v26 = vmul.f32 0.03125, %v3245_v25  ;;  %v3250_v27 = vmul.f32 %v3248_v24, %v3248_v24 }
0x1ef3   :  { %v3249_v28 = vsub.f32 %v3239_v21, %v3247_v26  ;;  %v3252_v29 = vsel %vm443_vm1, %v3250_v27, 0.0 }
0x1ef4   :  { %3253 = vadd.xlane.f32.xlu0 %v3252_v29 }
0x1ef5   :  { %v3251_v33 = vmul.f32 %v3249_v28, %v3249_v28 }
0x1ef7   :  { %v3255_v36 = vsel %vm443_vm1, %v3251_v33, 0.0 }
0x1ef8   :  { %3256 = vadd.xlane.f32.xlu1 %v3255_v36 }
0x1f7d   :  { %v3254_v37 = vpop.xlane.xlu0 %3253 }
0x1f7e   :  { %v3258_v38 = vmul.f32 0.03125, %v3254_v37 }
0x1f80   :  { %v3260_v15 = vadd.f32 1e-05, %v3258_v38 }
0x1f81   :  { %v3257_v39 = vpop.xlane.xlu1 %3256 }
0x1f82   :  { %4005 = vrsqrt.f32 %v3260_v15  ;;  %v3259_v40 = vmul.f32 0.03125, %v3257_v39 }
0x1f84   :  { %v3261_v16 = vadd.f32 1e-05, %v3259_v40 }
0x1f86   :  { %4007 = vrsqrt.f32 %v3261_v16 }
0x1f8f   :  { %v4006_v3 = vpop.eup %4005 }
0x1f90   :  { %v3264_v45 = vmul.f32 %v4006_v3, %v3248_v24 }
0x1f92   :  { %v3272_v47 = vmul.f32 %v3424_v44, %v3264_v45 }
0x1f93   :  { %v4008_v49 = vpop.eup %4007 }
0x1f94   :  { %v3265_v51 = vmul.f32 %v4008_v49, %v3249_v28  ;;  %v3280_v52 = vadd.f32 %v3425_v4, %v3272_v47 }
0x1f96   :  { %v3273_v54 = vmul.f32 %v3424_v44, %v3265_v51  ;;  %3282 = vst.msk [vmem:[#allocation29] sm:$0xff] %vm443_vm1, %v3280_v52 }
0x1f98   :  { %v3281_v55 = vadd.f32 %v3425_v4, %v3273_v54 }
0x1f9a   :  { %3283 = vst.msk [vmem:[#allocation29 + $0x8] sm:$0xff] %vm443_vm1, %v3281_v55 }
0x1f9b   :  { %4360 = shalt.err (!%p4357_p5)
}
0x1f9c   :  { %3295 = dma.vmem_to_hbm [thread:$0]  %s3290_s20, 256, %s4604_s17, [#allocation4], %s4430_s4, %s4430_s4, %s4431_s29  }
0x1f9d   :  { %4387 = dma.done.wait [#allocation4], 256  }
0x1f9e   :  { %4388 = vsyncadd [#allocation4], 4294967040 }
0x1f9f   :  { %3299 = vsyncpa [#allocation3], 1 }
0x1fa0   :  { %3300 = vsyncpa [#allocation6], 1 }
0x1fa1   :  { %3301 = vsyncpa [#allocation9], 1 }
0x1fa2   :  { %3302 = vsyncpa [#allocation12], 1 }
0x1fa3   :  { %3303 = vsyncpa [#allocation15], 1 }
0x1fa4   :  { %3304 = vsyncpa [#allocation18], 1 }
0x1fa5   :  { %3305 = vsyncpa [#allocation21], 1 }
0x1fa6   :  { %3306 = vsyncpa [#allocation24], 1 }
0x1fa7   :  { %3307 = vsyncpa [#allocation27], 1 }
0x1fa8   :  { %3308 = vsyncpa [#allocation4], 1 }

</bundles_post_ra>
